<compile_context>
chip_gen: v5e
topology: v5e:2x2
jax: 0.10.0
libtpu: 0.0.40
codegen_flags: <defaults>
</compile_context>

<pallas_src>
import functools

import jax
import jax.numpy as jnp
from jax import lax
from jax.experimental import pallas as pl
from jax.experimental.pallas import tpu as pltpu

_LANE = 128
_SUBLANE = 16                       # bf16-friendly sublane multiple
_VMEM_LIMIT = 48 * 1024 * 1024      # fits v7x (64 MiB physical) and v5e/v6e


# ---------------------------------------------------------------------------
# Pallas kernels
# ---------------------------------------------------------------------------
def _matmul_shift_relu_kernel(p_ref, w_ref, b_ref, o_ref):
    """One BasicConv2d as an im2col matmul: o = relu(p @ w_folded + shift)."""
    acc = jnp.dot(p_ref[...], w_ref[...], preferred_element_type=jnp.float32)
    o_ref[...] = jnp.maximum(acc + b_ref[...], 0.0).astype(o_ref.dtype)


def _inception_b_tail_kernel(p3_ref, w3_ref, b3_ref,
                             pd_ref, wd_ref, bd_ref, o_ref):
    """Fused tail: branch3x3 (s2) + branch3x3dbl_3 (s2) + 3x3/s2 max-pool + concat.

    p3_ref : (TM, 9*C)      bf16 im2col patches of x (also feeds the pool branch)
    w3_ref : (9*C, 384)     bf16 BN-folded weights;   b3_ref: (1, 384) f32 shift
    pd_ref : (TM, 9*96)     bf16 im2col patches of branch3x3dbl_2 output
    wd_ref : (9*96, 128)    bf16 BN-folded weights (96 padded to 128); bd_ref (1,128)
    o_ref  : (TM, 384 + 128 + Cpad) f32 — every slice store is 128-lane aligned.
    """
    o3 = w3_ref.shape[1]            # 384
    od = wd_ref.shape[1]            # 128 (96 + zero pad)
    k3 = p3_ref.shape[1]
    c = k3 // 9
    c_pad = o_ref.shape[1] - o3 - od

    p3 = p3_ref[...]

    y3 = jnp.dot(p3, w3_ref[...], preferred_element_type=jnp.float32)
    y3 = jnp.maximum(y3 + b3_ref[...], 0.0)

    yd = jnp.dot(pd_ref[...], wd_ref[...], preferred_element_type=jnp.float32)
    yd = jnp.maximum(yd + bd_ref[...], 0.0)

    # Max-pool branch: max over the nine C-wide tap column groups of p3
    # (same data / same tap order as the stride-2 3x3 conv patches).
    yp = p3[:, 0:c]
    for t in range(1, 9):
        yp = jnp.maximum(yp, p3[:, t * c:(t + 1) * c])
    yp = yp.astype(jnp.float32)
    if c_pad > c:
        yp = jnp.concatenate(
            [yp, jnp.zeros((yp.shape[0], c_pad - c), jnp.float32)], axis=-1)

    # Fused channel concat: each section starts on a 128-lane boundary and is a
    # multiple of 128 lanes wide -> unmasked full-width stores.
    o_ref[:, 0:o3] = y3.astype(o_ref.dtype)
    o_ref[:, o3:o3 + od] = yd.astype(o_ref.dtype)
    o_ref[:, o3 + od:] = yp.astype(o_ref.dtype)


# ---------------------------------------------------------------------------
# Wrapper-side glue (layout, im2col, BN folding, tiling)
# ---------------------------------------------------------------------------
def _cdiv(a, b):
    return (a + b - 1) // b


def _round_up(x, m):
    return _cdiv(x, m) * m


def _pick_block_m(m, target):
    """Row tile near `target`, multiple of 16, with >=2 grid steps when possible."""
    target = max(_SUBLANE, _round_up(target, _SUBLANE))
    steps = max(1, _cdiv(m, target))
    if steps < 2 and m > _SUBLANE:
        steps = 2
    bm = _round_up(_cdiv(m, steps), _SUBLANE)
    return max(_SUBLANE, min(bm, _round_up(m, _SUBLANE)))


def _fold_bn(weight_oihw, gamma, beta, mean, var, eps, o_pad=None):
    """Fold eval-mode BN into the conv -> bf16 (KH*KW*C, Opad) weights + f32 (1, Opad) shift."""
    o, c, kh, kw = weight_oihw.shape
    scale = gamma / jnp.sqrt(var + eps)                               # (O,)
    w = jnp.transpose(weight_oihw, (2, 3, 1, 0)).reshape(kh * kw * c, o)
    w = w * scale[None, :]
    shift = (beta - mean * scale).reshape(1, o)
    if o_pad is not None and o_pad != o:
        w = jnp.pad(w, ((0, 0), (0, o_pad - o)))
        shift = jnp.pad(shift, ((0, 0), (0, o_pad - o)))
    return w.astype(jnp.bfloat16), shift.astype(jnp.float32)


def _im2col(x_nhwc, kh, kw, stride, padding):
    """Conv patches -> (N*OH*OW, KH*KW*C). Column order matches (KH,KW,C,O) weights."""
    n, h, w, c = x_nhwc.shape
    if padding:
        x_nhwc = jnp.pad(x_nhwc, ((0, 0), (padding, padding),
                                  (padding, padding), (0, 0)))
    hp, wp = h + 2 * padding, w + 2 * padding
    oh = (hp - kh) // stride + 1
    ow = (wp - kw) // stride + 1
    cols = []
    for i in range(kh):
        for j in range(kw):
            sl = lax.slice(x_nhwc, (0, i, j, 0),
                           (n, i + (oh - 1) * stride + 1,
                            j + (ow - 1) * stride + 1, c),
                           (1, stride, stride, 1))                    # (N,OH,OW,C)
            cols.append(sl)
    patches = jnp.concatenate(cols, axis=-1)                          # (N,OH,OW,KH*KW*C)
    return patches.reshape(n * oh * ow, kh * kw * c), oh, ow


def _conv_bn_relu(x_nhwc, weight_oihw, gamma, beta, mean, var, *,
                  stride=1, padding=0, eps=1e-3, block_m=512,
                  out_dtype=jnp.bfloat16):
    """BasicConv2d (conv + eval-BN + ReLU) via bf16 im2col + one tiled Pallas matmul."""
    o, _, kh, kw = weight_oihw.shape
    n = x_nhwc.shape[0]
    o_pad = _round_up(o, _LANE)                          # lane-dense output columns
    w_mat, shift = _fold_bn(weight_oihw, gamma, beta, mean, var, eps, o_pad)

    patches, oh, ow = _im2col(x_nhwc.astype(jnp.bfloat16), kh, kw, stride, padding)
    m, k = patches.shape

    bm = _pick_block_m(m, block_m)
    mp = _round_up(m, bm)
    if mp != m:
        patches = jnp.pad(patches, ((0, mp - m), (0, 0)))

    out_isz = jnp.dtype(out_dtype).itemsize
    cost = pl.CostEstimate(
        flops=2 * mp * k * o_pad,
        transcendentals=0,
        bytes_accessed=2 * (mp * k + k * o_pad) + 4 * o_pad + out_isz * mp * o_pad)

    out = pl.pallas_call(
        _matmul_shift_relu_kernel,
        out_shape=jax.ShapeDtypeStruct((mp, o_pad), out_dtype),
        grid=(mp // bm,),
        in_specs=[
            pl.BlockSpec((bm, k), lambda i: (i, 0)),
            pl.BlockSpec((k, o_pad), lambda i: (0, 0)),
            pl.BlockSpec((1, o_pad), lambda i: (0, 0)),
        ],
        out_specs=pl.BlockSpec((bm, o_pad), lambda i: (i, 0)),
        compiler_params=pltpu.CompilerParams(
            dimension_semantics=("parallel",), vmem_limit_bytes=_VMEM_LIMIT),
        cost_estimate=cost,
    )(patches, w_mat, shift)

    # Strip row padding and the zero-padded output channels before the next layer.
    return out[:m, :o].reshape(n, oh, ow, o)


def _inception_b_tail(x_nhwc, dbl2_nhwc,
                      w3_oihw, g3, b3, m3, v3,
                      wd_oihw, gd, bd, md, vd,
                      *, eps=1e-3, block_m=256):
    """branch3x3 (s2) + branch3x3dbl_3 (s2) + max-pool (s2) + channel concat, fused."""
    n, h, w, c = x_nhwc.shape
    o3 = w3_oihw.shape[0]                       # 384 (already a multiple of 128)
    od = wd_oihw.shape[0]                       # 96
    od_pad = _round_up(od, _LANE)               # 128
    c_pad = _round_up(c, _LANE)
    o_total = o3 + od_pad + c_pad

    w3_mat, s3 = _fold_bn(w3_oihw, g3, b3, m3, v3, eps)
    wd_mat, sd = _fold_bn(wd_oihw, gd, bd, md, vd, eps, od_pad)

    p3, oh, ow = _im2col(x_nhwc.astype(jnp.bfloat16), 3, 3, 2, 0)
    pd, oh2, ow2 = _im2col(dbl2_nhwc.astype(jnp.bfloat16), 3, 3, 2, 0)
    assert (oh, ow) == (oh2, ow2)

    m = n * oh * ow
    k3 = p3.shape[1]
    kd = pd.shape[1]

    bm = _pick_block_m(m, block_m)
    mp = _round_up(m, bm)
    if mp != m:
        p3 = jnp.pad(p3, ((0, mp - m), (0, 0)))
        pd = jnp.pad(pd, ((0, mp - m), (0, 0)))

    cost = pl.CostEstimate(
        flops=2 * mp * (k3 * o3 + kd * od_pad),
        transcendentals=0,
        bytes_accessed=2 * (mp * (k3 + kd) + k3 * o3 + kd * od_pad)
                       + 4 * (o3 + od_pad + mp * o_total))

    out = pl.pallas_call(
        _inception_b_tail_kernel,
        out_shape=jax.ShapeDtypeStruct((mp, o_total), jnp.float32),
        grid=(mp // bm,),
        in_specs=[
            pl.BlockSpec((bm, k3), lambda i: (i, 0)),
            pl.BlockSpec((k3, o3), lambda i: (0, 0)),
            pl.BlockSpec((1, o3), lambda i: (0, 0)),
            pl.BlockSpec((bm, kd), lambda i: (i, 0)),
            pl.BlockSpec((kd, od_pad), lambda i: (0, 0)),
            pl.BlockSpec((1, od_pad), lambda i: (0, 0)),
        ],
        out_specs=pl.BlockSpec((bm, o_total), lambda i: (i, 0)),
        compiler_params=pltpu.CompilerParams(
            dimension_semantics=("parallel",), vmem_limit_bytes=_VMEM_LIMIT),
        cost_estimate=cost,
    )(p3, w3_mat, s3, pd, wd_mat, sd)

    out = out[:m].reshape(n, oh, ow, o_total)
    # Drop the lane padding between sections and re-assemble the true concat order.
    b3_out = out[..., :o3]
    dbl_out = out[..., o3:o3 + od]
    pool_out = out[..., o3 + od_pad:o3 + od_pad + c]
    return jnp.concatenate([b3_out, dbl_out, pool_out], axis=-1)


@functools.partial(jax.jit, static_argnames=("eps",))
def inception_b(x_nchw, params, *, eps=1e-3):
    """Forward pass of InceptionB. Input/output are NCHW to match the PyTorch module."""
    x = jnp.transpose(x_nchw, (0, 2, 3, 1))                           # NHWC once

    # branch3x3dbl chain: 1x1 conv -> 3x3 pad=1 conv (stride-1 convs, own kernels)
    dbl1 = _conv_bn_relu(x, *params["dbl1"], stride=1, padding=0, eps=eps, block_m=512)
    dbl2 = _conv_bn_relu(dbl1, *params["dbl2"], stride=1, padding=1, eps=eps, block_m=512)

    # fused tail: branch3x3 (s2) + branch3x3dbl_3 (s2) + max-pool (s2) + concat
    out_nhwc = _inception_b_tail(x, dbl2, *params["b3x3"], *params["dbl3"],
                                 eps=eps, block_m=256)
    return jnp.transpose(out_nhwc, (0, 3, 1, 2)).astype(jnp.float32)  # back to NCHW


# ---------------------------------------------------------------------------
# Reference (pure XLA, f32) and test harness
# ---------------------------------------------------------------------------
def _conv_bn_relu_ref(x_nchw, weight, gamma, beta, mean, var, *, stride, padding, eps):
    y = lax.conv_general_dilated(
        x_nchw, weight, window_strides=(stride, stride),
        padding=[(padding, padding), (padding, padding)],
        dimension_numbers=("NCHW", "OIHW", "NCHW"),
        precision=lax.Precision.HIGHEST)
    scale = gamma / jnp.sqrt(var + eps)
    y = y * scale[None, :, None, None] + (beta - mean * scale)[None, :, None, None]
    return jnp.maximum(y, 0.0)


def _inception_b_ref(x_nchw, params, eps=1e-3):
    b3 = _conv_bn_relu_ref(x_nchw, *params["b3x3"], stride=2, padding=0, eps=eps)
    d = _conv_bn_relu_ref(x_nchw, *params["dbl1"], stride=1, padding=0, eps=eps)
    d = _conv_bn_relu_ref(d, *params["dbl2"], stride=1, padding=1, eps=eps)
    d = _conv_bn_relu_ref(d, *params["dbl3"], stride=2, padding=0, eps=eps)
    pool = lax.reduce_window(x_nchw, -jnp.inf, lax.max,
                             (1, 1, 3, 3), (1, 1, 2, 2), "VALID")
    return jnp.concatenate([b3, d, pool], axis=1)


def _make_basic_conv_params(key, in_c, out_c, k):
    k1, k2, k3, k4, k5 = jax.random.split(key, 5)
    fan_in = float(in_c * k * k)
    weight = jax.random.normal(k1, (out_c, in_c, k, k), jnp.float32) / (fan_in ** 0.5)
    gamma = 1.0 + 0.1 * jax.random.normal(k2, (out_c,), jnp.float32)
    beta = 0.1 * jax.random.normal(k3, (out_c,), jnp.float32)
    mean = 0.1 * jax.random.normal(k4, (out_c,), jnp.float32)
    var = jax.nn.softplus(jax.random.normal(k5, (out_c,), jnp.float32)) + 0.5
    return (weight, gamma, beta, mean, var)


if __name__ == "__main__":
    key = jax.random.PRNGKey(0)
    kx, k1, k2, k3, k4 = jax.random.split(key, 5)

    # Small input; spatial=17 so the stride-2 VALID convs / pool give an 8x8 output.
    N, C, H, W = 2, 4, 17, 17
    x = jax.random.normal(kx, (N, C, H, W), jnp.float32)

    params = {
        "b3x3": _make_basic_conv_params(k1, C, 384, 3),   # Conv(C,384,k=3,s=2)
        "dbl1": _make_basic_conv_params(k2, C, 64, 1),    # Conv(C,64,k=1)
        "dbl2": _make_basic_conv_params(k3, 64, 96, 3),   # Conv(64,96,k=3,p=1)
        "dbl3": _make_basic_conv_params(k4, 96, 96, 3),   # Conv(96,96,k=3,s=2)
    }

    out = inception_b(x, params, eps=1e-3)
    out = jax.block_until_ready(out)

    ref = _inception_b_ref(x, params, eps=1e-3)
    OH = (H - 3) // 2 + 1
    assert out.shape == (N, 384 + 96 + C, OH, OH), out.shape
    # bf16 MXU operands (f32 accumulation) vs the f32 XLA reference: check the
    # relative Frobenius error rather than a tight elementwise tolerance.
    rel_err = float(jnp.linalg.norm(out - ref) / jnp.linalg.norm(ref))
    assert rel_err < 2e-2, rel_err
    print("KERNEL_OK")
</pallas_src>

<mosaic_0001>
module attributes {stable_mosaic.version = 11 : i64} {
  func.func @_matmul_shift_relu_kernel(%arg0: i32, %arg1: memref<304x4xbf16, #tpu.memory_space<vmem>>, %arg2: memref<4x128xbf16, #tpu.memory_space<vmem>>, %arg3: memref<1x128xf32, #tpu.memory_space<vmem>>, %arg4: memref<304x128xbf16, #tpu.memory_space<vmem>>) attributes {dimension_semantics = [#tpu.dimension_semantics<parallel>], iteration_bounds = array<i64: 2>, scalar_prefetch = 0 : i64, scratch_operands = 0 : i64, tpu.core_type = #tpu.core_type<tc>, window_params = [{transform_indices = @transform_0, window_bounds = array<i64: 304, 4>}, {pipeline_mode = #tpu.pipeline_mode<synchronous>, transform_indices = @transform_1, window_bounds = array<i64: 4, 128>}, {pipeline_mode = #tpu.pipeline_mode<synchronous>, transform_indices = @transform_2, window_bounds = array<i64: 1, 128>}, {transform_indices = @transform_3, window_bounds = array<i64: 304, 128>}]} {
    %c0 = arith.constant 0 : index
    %c0_0 = arith.constant 0 : index
    %0 = vector.load %arg1[%c0, %c0_0] : memref<304x4xbf16, #tpu.memory_space<vmem>>, vector<304x4xbf16>
    %c0_1 = arith.constant 0 : index
    %c0_2 = arith.constant 0 : index
    %1 = vector.load %arg2[%c0_1, %c0_2] : memref<4x128xbf16, #tpu.memory_space<vmem>>, vector<4x128xbf16>
    %cst = arith.constant dense<0.000000e+00> : vector<304x128xf32>
    %2 = tpu.matmul %0, %1, %cst {dimension_numbers = #tpu.dot_dimension_numbers<[1], [0], [0], [1], [0, 0, 1, 1], [], []>} : vector<304x4xbf16>, vector<4x128xbf16>, vector<304x128xf32> -> vector<304x128xf32>
    %c0_3 = arith.constant 0 : index
    %c0_4 = arith.constant 0 : index
    %3 = vector.load %arg3[%c0_3, %c0_4] : memref<1x128xf32, #tpu.memory_space<vmem>>, vector<1x128xf32>
    %4 = vector.broadcast %3 : vector<1x128xf32> to vector<304x128xf32>
    %5 = arith.addf %2, %4 : vector<304x128xf32>
    %cst_5 = arith.constant 0.000000e+00 : f32
    %6 = vector.broadcast %cst_5 : f32 to vector<304x128xf32>
    %7 = arith.maximumf %5, %6 : vector<304x128xf32>
    %8 = arith.truncf %7 : vector<304x128xf32> to vector<304x128xbf16>
    %c0_6 = arith.constant 0 : index
    %c0_7 = arith.constant 0 : index
    %9 = vector.load %arg4[%c0_6, %c0_7] : memref<304x128xbf16, #tpu.memory_space<vmem>>, vector<304x128xbf16>
    tpu.vector_store %arg4[%c0_6, %c0_7], %8 {strides = array<i32>} : memref<304x128xbf16, #tpu.memory_space<vmem>>, vector<304x128xbf16>,
    return
  }
  func.func @transform_0(%arg0: i32) -> (i32, i32) {
    %c0_i32 = arith.constant 0 : i32
    %c0_i32_0 = arith.constant 0 : i32
    return %arg0, %c0_i32 : i32, i32
  }
  func.func @transform_1(%arg0: i32) -> (i32, i32) {
    %c0_i32 = arith.constant 0 : i32
    %c0_i32_0 = arith.constant 0 : i32
    %c0_i32_1 = arith.constant 0 : i32
    return %c0_i32, %c0_i32_0 : i32, i32
  }
  func.func @transform_2(%arg0: i32) -> (i32, i32) {
    %c0_i32 = arith.constant 0 : i32
    %c0_i32_0 = arith.constant 0 : i32
    %c0_i32_1 = arith.constant 0 : i32
    return %c0_i32, %c0_i32_0 : i32, i32
  }
  func.func @transform_3(%arg0: i32) -> (i32, i32) {
    %c0_i32 = arith.constant 0 : i32
    %c0_i32_0 = arith.constant 0 : i32
    return %arg0, %c0_i32 : i32, i32
  }
}

module attributes {stable_mosaic.version = 11 : i64} {
  func.func @_matmul_shift_relu_kernel(%arg0: i32, %arg1: memref<304x576xbf16, #tpu.memory_space<vmem>>, %arg2: memref<576x128xbf16, #tpu.memory_space<vmem>>, %arg3: memref<1x128xf32, #tpu.memory_space<vmem>>, %arg4: memref<304x128xbf16, #tpu.memory_space<vmem>>) attributes {dimension_semantics = [#tpu.dimension_semantics<parallel>], iteration_bounds = array<i64: 2>, scalar_prefetch = 0 : i64, scratch_operands = 0 : i64, tpu.core_type = #tpu.core_type<tc>, window_params = [{transform_indices = @transform_0, window_bounds = array<i64: 304, 576>}, {pipeline_mode = #tpu.pipeline_mode<synchronous>, transform_indices = @transform_1, window_bounds = array<i64: 576, 128>}, {pipeline_mode = #tpu.pipeline_mode<synchronous>, transform_indices = @transform_2, window_bounds = array<i64: 1, 128>}, {transform_indices = @transform_3, window_bounds = array<i64: 304, 128>}]} {
    %c0 = arith.constant 0 : index
    %c0_0 = arith.constant 0 : index
    %0 = vector.load %arg1[%c0, %c0_0] : memref<304x576xbf16, #tpu.memory_space<vmem>>, vector<304x576xbf16>
    %c0_1 = arith.constant 0 : index
    %c0_2 = arith.constant 0 : index
    %1 = vector.load %arg2[%c0_1, %c0_2] : memref<576x128xbf16, #tpu.memory_space<vmem>>, vector<576x128xbf16>
    %cst = arith.constant dense<0.000000e+00> : vector<304x128xf32>
    %2 = tpu.matmul %0, %1, %cst {dimension_numbers = #tpu.dot_dimension_numbers<[1], [0], [0], [1], [0, 0, 1, 1], [], []>} : vector<304x576xbf16>, vector<576x128xbf16>, vector<304x128xf32> -> vector<304x128xf32>
    %c0_3 = arith.constant 0 : index
    %c0_4 = arith.constant 0 : index
    %3 = vector.load %arg3[%c0_3, %c0_4] : memref<1x128xf32, #tpu.memory_space<vmem>>, vector<1x128xf32>
    %4 = vector.broadcast %3 : vector<1x128xf32> to vector<304x128xf32>
    %5 = arith.addf %2, %4 : vector<304x128xf32>
    %cst_5 = arith.constant 0.000000e+00 : f32
    %6 = vector.broadcast %cst_5 : f32 to vector<304x128xf32>
    %7 = arith.maximumf %5, %6 : vector<304x128xf32>
    %8 = arith.truncf %7 : vector<304x128xf32> to vector<304x128xbf16>
    %c0_6 = arith.constant 0 : index
    %c0_7 = arith.constant 0 : index
    %9 = vector.load %arg4[%c0_6, %c0_7] : memref<304x128xbf16, #tpu.memory_space<vmem>>, vector<304x128xbf16>
    tpu.vector_store %arg4[%c0_6, %c0_7], %8 {strides = array<i32>} : memref<304x128xbf16, #tpu.memory_space<vmem>>, vector<304x128xbf16>,
    return
  }
  func.func @transform_0(%arg0: i32) -> (i32, i32) {
    %c0_i32 = arith.constant 0 : i32
    %c0_i32_0 = arith.constant 0 : i32
    return %arg0, %c0_i32 : i32, i32
  }
  func.func @transform_1(%arg0: i32) -> (i32, i32) {
    %c0_i32 = arith.constant 0 : i32
    %c0_i32_0 = arith.constant 0 : i32
    %c0_i32_1 = arith.constant 0 : i32
    return %c0_i32, %c0_i32_0 : i32, i32
  }
  func.func @transform_2(%arg0: i32) -> (i32, i32) {
    %c0_i32 = arith.constant 0 : i32
    %c0_i32_0 = arith.constant 0 : i32
    %c0_i32_1 = arith.constant 0 : i32
    return %c0_i32, %c0_i32_0 : i32, i32
  }
  func.func @transform_3(%arg0: i32) -> (i32, i32) {
    %c0_i32 = arith.constant 0 : i32
    %c0_i32_0 = arith.constant 0 : i32
    return %arg0, %c0_i32 : i32, i32
  }
}

module attributes {stable_mosaic.version = 11 : i64} {
  func.func @_inception_b_tail_kernel(%arg0: i32, %arg1: memref<64x36xbf16, #tpu.memory_space<vmem>>, %arg2: memref<36x384xbf16, #tpu.memory_space<vmem>>, %arg3: memref<1x384xf32, #tpu.memory_space<vmem>>, %arg4: memref<64x864xbf16, #tpu.memory_space<vmem>>, %arg5: memref<864x128xbf16, #tpu.memory_space<vmem>>, %arg6: memref<1x128xf32, #tpu.memory_space<vmem>>, %arg7: memref<64x640xf32, #tpu.memory_space<vmem>>) attributes {dimension_semantics = [#tpu.dimension_semantics<parallel>], iteration_bounds = array<i64: 2>, scalar_prefetch = 0 : i64, scratch_operands = 0 : i64, tpu.core_type = #tpu.core_type<tc>, window_params = [{transform_indices = @transform_0, window_bounds = array<i64: 64, 36>}, {pipeline_mode = #tpu.pipeline_mode<synchronous>, transform_indices = @transform_1, window_bounds = array<i64: 36, 384>}, {pipeline_mode = #tpu.pipeline_mode<synchronous>, transform_indices = @transform_2, window_bounds = array<i64: 1, 384>}, {transform_indices = @transform_3, window_bounds = array<i64: 64, 864>}, {pipeline_mode = #tpu.pipeline_mode<synchronous>, transform_indices = @transform_4, window_bounds = array<i64: 864, 128>}, {pipeline_mode = #tpu.pipeline_mode<synchronous>, transform_indices = @transform_5, window_bounds = array<i64: 1, 128>}, {transform_indices = @transform_6, window_bounds = array<i64: 64, 640>}]} {
    %c0 = arith.constant 0 : index
    %c0_0 = arith.constant 0 : index
    %0 = vector.load %arg1[%c0, %c0_0] : memref<64x36xbf16, #tpu.memory_space<vmem>>, vector<64x36xbf16>
    %c0_1 = arith.constant 0 : index
    %c0_2 = arith.constant 0 : index
    %1 = vector.load %arg2[%c0_1, %c0_2] : memref<36x384xbf16, #tpu.memory_space<vmem>>, vector<36x384xbf16>
    %cst = arith.constant dense<0.000000e+00> : vector<64x384xf32>
    %2 = tpu.matmul %0, %1, %cst {dimension_numbers = #tpu.dot_dimension_numbers<[1], [0], [0], [1], [0, 0, 1, 1], [], []>} : vector<64x36xbf16>, vector<36x384xbf16>, vector<64x384xf32> -> vector<64x384xf32>
    %c0_3 = arith.constant 0 : index
    %c0_4 = arith.constant 0 : index
    %3 = vector.load %arg3[%c0_3, %c0_4] : memref<1x384xf32, #tpu.memory_space<vmem>>, vector<1x384xf32>
    %4 = vector.broadcast %3 : vector<1x384xf32> to vector<64x384xf32>
    %5 = arith.addf %2, %4 : vector<64x384xf32>
    %cst_5 = arith.constant 0.000000e+00 : f32
    %6 = vector.broadcast %cst_5 : f32 to vector<64x384xf32>
    %7 = arith.maximumf %5, %6 : vector<64x384xf32>
    %c0_6 = arith.constant 0 : index
    %c0_7 = arith.constant 0 : index
    %8 = vector.load %arg4[%c0_6, %c0_7] : memref<64x864xbf16, #tpu.memory_space<vmem>>, vector<64x864xbf16>
    %c0_8 = arith.constant 0 : index
    %c0_9 = arith.constant 0 : index
    %9 = vector.load %arg5[%c0_8, %c0_9] : memref<864x128xbf16, #tpu.memory_space<vmem>>, vector<864x128xbf16>
    %cst_10 = arith.constant dense<0.000000e+00> : vector<64x128xf32>
    %10 = tpu.matmul %8, %9, %cst_10 {dimension_numbers = #tpu.dot_dimension_numbers<[1], [0], [0], [1], [0, 0, 1, 1], [], []>} : vector<64x864xbf16>, vector<864x128xbf16>, vector<64x128xf32> -> vector<64x128xf32>
    %c0_11 = arith.constant 0 : index
    %c0_12 = arith.constant 0 : index
    %11 = vector.load %arg6[%c0_11, %c0_12] : memref<1x128xf32, #tpu.memory_space<vmem>>, vector<1x128xf32>
    %12 = vector.broadcast %11 : vector<1x128xf32> to vector<64x128xf32>
    %13 = arith.addf %10, %12 : vector<64x128xf32>
    %cst_13 = arith.constant 0.000000e+00 : f32
    %14 = vector.broadcast %cst_13 : f32 to vector<64x128xf32>
    %15 = arith.maximumf %13, %14 : vector<64x128xf32>
    %16 = vector.extract_strided_slice %0 {offsets = [0, 0], sizes = [64, 4], strides = [1, 1]} : vector<64x36xbf16> to vector<64x4xbf16>
    %17 = vector.extract_strided_slice %0 {offsets = [0, 4], sizes = [64, 4], strides = [1, 1]} : vector<64x36xbf16> to vector<64x4xbf16>
    %18 = arith.maximumf %16, %17 : vector<64x4xbf16>
    %19 = vector.extract_strided_slice %0 {offsets = [0, 8], sizes = [64, 4], strides = [1, 1]} : vector<64x36xbf16> to vector<64x4xbf16>
    %20 = arith.maximumf %18, %19 : vector<64x4xbf16>
    %21 = vector.extract_strided_slice %0 {offsets = [0, 12], sizes = [64, 4], strides = [1, 1]} : vector<64x36xbf16> to vector<64x4xbf16>
    %22 = arith.maximumf %20, %21 : vector<64x4xbf16>
    %23 = vector.extract_strided_slice %0 {offsets = [0, 16], sizes = [64, 4], strides = [1, 1]} : vector<64x36xbf16> to vector<64x4xbf16>
    %24 = arith.maximumf %22, %23 : vector<64x4xbf16>
    %25 = vector.extract_strided_slice %0 {offsets = [0, 20], sizes = [64, 4], strides = [1, 1]} : vector<64x36xbf16> to vector<64x4xbf16>
    %26 = arith.maximumf %24, %25 : vector<64x4xbf16>
    %27 = vector.extract_strided_slice %0 {offsets = [0, 24], sizes = [64, 4], strides = [1, 1]} : vector<64x36xbf16> to vector<64x4xbf16>
    %28 = arith.maximumf %26, %27 : vector<64x4xbf16>
    %29 = vector.extract_strided_slice %0 {offsets = [0, 28], sizes = [64, 4], strides = [1, 1]} : vector<64x36xbf16> to vector<64x4xbf16>
    %30 = arith.maximumf %28, %29 : vector<64x4xbf16>
    %31 = vector.extract_strided_slice %0 {offsets = [0, 32], sizes = [64, 4], strides = [1, 1]} : vector<64x36xbf16> to vector<64x4xbf16>
    %32 = arith.maximumf %30, %31 : vector<64x4xbf16>
    %33 = arith.extf %32 : vector<64x4xbf16> to vector<64x4xf32>
    %cst_14 = arith.constant 0.000000e+00 : f32
    %34 = vector.broadcast %cst_14 : f32 to vector<64x124xf32>
    %35 = tpu.concatenate %33, %34 in 1 : vector<64x4xf32>, vector<64x124xf32> -> vector<64x128xf32>
    %c0_15 = arith.constant 0 : index
    %c0_16 = arith.constant 0 : index
    %36 = vector.load %arg7[%c0_15, %c0_16] : memref<64x640xf32, #tpu.memory_space<vmem>>, vector<64x384xf32>
    tpu.vector_store %arg7[%c0_15, %c0_16], %7 {strides = array<i32>} : memref<64x640xf32, #tpu.memory_space<vmem>>, vector<64x384xf32>,
    %c0_17 = arith.constant 0 : index
    %c384 = arith.constant 384 : index
    %37 = vector.load %arg7[%c0_17, %c384] : memref<64x640xf32, #tpu.memory_space<vmem>>, vector<64x128xf32>
    tpu.vector_store %arg7[%c0_17, %c384], %15 {strides = array<i32>} : memref<64x640xf32, #tpu.memory_space<vmem>>, vector<64x128xf32>,
    %c0_18 = arith.constant 0 : index
    %c512 = arith.constant 512 : index
    %38 = vector.load %arg7[%c0_18, %c512] : memref<64x640xf32, #tpu.memory_space<vmem>>, vector<64x128xf32>
    tpu.vector_store %arg7[%c0_18, %c512], %35 {strides = array<i32>} : memref<64x640xf32, #tpu.memory_space<vmem>>, vector<64x128xf32>,
    return
  }
  func.func @transform_0(%arg0: i32) -> (i32, i32) {
    %c0_i32 = arith.constant 0 : i32
    %c0_i32_0 = arith.constant 0 : i32
    return %arg0, %c0_i32 : i32, i32
  }
  func.func @transform_1(%arg0: i32) -> (i32, i32) {
    %c0_i32 = arith.constant 0 : i32
    %c0_i32_0 = arith.constant 0 : i32
    %c0_i32_1 = arith.constant 0 : i32
    return %c0_i32, %c0_i32_0 : i32, i32
  }
  func.func @transform_2(%arg0: i32) -> (i32, i32) {
    %c0_i32 = arith.constant 0 : i32
    %c0_i32_0 = arith.constant 0 : i32
    %c0_i32_1 = arith.constant 0 : i32
    return %c0_i32, %c0_i32_0 : i32, i32
  }
  func.func @transform_3(%arg0: i32) -> (i32, i32) {
    %c0_i32 = arith.constant 0 : i32
    %c0_i32_0 = arith.constant 0 : i32
    return %arg0, %c0_i32 : i32, i32
  }
  func.func @transform_4(%arg0: i32) -> (i32, i32) {
    %c0_i32 = arith.constant 0 : i32
    %c0_i32_0 = arith.constant 0 : i32
    %c0_i32_1 = arith.constant 0 : i32
    return %c0_i32, %c0_i32_0 : i32, i32
  }
  func.func @transform_5(%arg0: i32) -> (i32, i32) {
    %c0_i32 = arith.constant 0 : i32
    %c0_i32_0 = arith.constant 0 : i32
    %c0_i32_1 = arith.constant 0 : i32
    return %c0_i32, %c0_i32_0 : i32, i32
  }
  func.func @transform_6(%arg0: i32) -> (i32, i32) {
    %c0_i32 = arith.constant 0 : i32
    %c0_i32_0 = arith.constant 0 : i32
    return %arg0, %c0_i32 : i32, i32
  }
}

</mosaic_0001>

<bundles_post_ra>
// kernel: inception_b.3
= control target key start
LH: loop header
LB: loop body
LE: loop exit
PB: predicated region body
PF: predicated region fallthrough
CT: control target
= control target key end

     0   :  { %s925_s12 = smov 0   ;;  %s1056_s0 = inlined_call_operand.vmem [shape: bf16[608,4], index: 0, kind: input, shape index: {}]   ;;  %s1057_s1 = inlined_call_operand.vmem [shape: bf16[4,128], index: 1, kind: input, shape index: {}]   ;;  %s1058_s2 = inlined_call_operand.vmem [shape: f32[1,128], index: 2, kind: input, shape index: {}]   ;;  %s1059_s3 = inlined_call_operand.vmem [shape: bf16[608,128], index: 3, kind: output, shape index: {}]  }
   0x1 LB: > { %s649_s13 = sadd.s32 4294967295, %s903_s12   ;;  %p653_p0 = scmp.ge.s32.totalorder %s903_s12, 1  ;;  %s903_s12 = sphi %s925_s12, %s13_s12  }
   0x2   : > { %p138_p1 = scmp.lt.s32.totalorder %s903_s12, 3 }
   0x4   : > { %p139_p2 = pnand %p653_p0, %p138_p1 }
   0x5   : > { %s162_s16 = smul.u32 (!%p139_p2), 38, %s649_s13 }
   0x6   : > { %142 = sbr.rel (%p139_p2) target bundleno = 228 (0xe4), region = 32 }
   0x7   : > { %p163_p3 = scmp.lt.s32.totalorder (!%p139_p2), %s162_s16, 75 }
   0xb   : > { %v213_v0 = vld [vmem:[%s1057_s1] sm:$0x3]  ;;  %vm371_vm0 = vcmask 1041408   ;;  %s1061_s16 = smov (!%p163_p3, %s162_s16), 75  ;;  %vm313_vm1 = vcmask 31744  }
   0xc   : > { %v373_v1 = vsel %vm371_vm0, %v213_v0, 0  ;;  %s654_s17 = sshll.u32 %s1061_s16, 2  ;;  %v987_v23 = vld [vmem:[%s1058_s2] ss:$0 sm:$0xff] }
   0xd   : > { %382 = vmatpush.bf16.msra.mxu0 %v373_v1  ;;  %885 = vmatpush.bf16.msra.mxu1 %v373_v1  ;;  %s944_s20 = scalar_lea.vmem %s1056_s0, %s654_s17  ;;  %s998_s25 = scalar_lea.vmem %s1059_s3, %s654_s17 }
   0xe   : > { %886 = vmatpush.bf16.msra.mxu2 %v373_v1  ;;  %887 = vmatpush.bf16.msra.mxu3 %v373_v1  ;;  %v753_v2 = vld [vmem:[%s944_s20] sm:$0xff]  ;;  %v758_v3 = vld [vmem:[%s944_s20 + $0x28] sm:$0xff]  ;;  %v763_v4 = vld [vmem:[%s944_s20 + $0x50] sm:$0xff] }
   0xf   : > { %v768_v5 = vld [vmem:[%s944_s20 + $0x78] sm:$0xff]  ;;  %v754_v6 = vld [vmem:[%s944_s20 + $0x8] sm:$0xff]  ;;  %v759_v7 = vld [vmem:[%s944_s20 + $0x30] sm:$0xff] }
  0x10   : > { %732 = vmatmul.msk.bf16.vlgmr.msra.gmra.mxu0 %vm313_vm1, %v753_v2  ;;  %737 = vmatmul.msk.bf16.vlgmr.msra.gmra.mxu1 %vm313_vm1, %v758_v3  ;;  %v764_v8 = vld [vmem:[%s944_s20 + $0x58] sm:$0xff]  ;;  %v769_v9 = vld [vmem:[%s944_s20 + $0x80] sm:$0xff]  ;;  %v755_v10 = vld [vmem:[%s944_s20 + $0x10] sm:$0xff] }
  0x11   : > { %742 = vmatmul.msk.bf16.vlgmr.msra.gmra.mxu2 %vm313_vm1, %v763_v4  ;;  %747 = vmatmul.msk.bf16.vlgmr.msra.gmra.mxu3 %vm313_vm1, %v768_v5  ;;  %v760_v11 = vld [vmem:[%s944_s20 + $0x38] sm:$0xff]  ;;  %v765_v12 = vld [vmem:[%s944_s20 + $0x60] sm:$0xff]  ;;  %v770_v13 = vld [vmem:[%s944_s20 + $0x88] sm:$0xff] }
  0x12   : > { %v756_v14 = vld [vmem:[%s944_s20 + $0x18] sm:$0xff]  ;;  %v761_v15 = vld [vmem:[%s944_s20 + $0x40] sm:$0xff]  ;;  %v766_v16 = vld [vmem:[%s944_s20 + $0x68] sm:$0xff] }
  0x13   : > { %v771_v17 = vld [vmem:[%s944_s20 + $0x90] sm:$0xff]  ;;  %v757_v18 = vld [vmem:[%s944_s20 + $0x20] sm:$0xff]  ;;  %v762_v19 = vld [vmem:[%s944_s20 + $0x48] sm:$0xff] }
  0x14   : > { %v767_v20 = vld [vmem:[%s944_s20 + $0x70] sm:$0xff] }
  0x20   : > { %733 = vmatmul.msk.bf16.gmra.mxu0 %vm313_vm1, %v754_v6  ;;  %738 = vmatmul.msk.bf16.gmra.mxu1 %vm313_vm1, %v759_v7 }
  0x21   : > { %743 = vmatmul.msk.bf16.gmra.mxu2 %vm313_vm1, %v764_v8  ;;  %748 = vmatmul.msk.bf16.gmra.mxu3 %vm313_vm1, %v769_v9 }
  0x30   : > { %734 = vmatmul.msk.bf16.gmra.mxu0 %vm313_vm1, %v755_v10  ;;  %739 = vmatmul.msk.bf16.gmra.mxu1 %vm313_vm1, %v760_v11 }
  0x31   : > { %744 = vmatmul.msk.bf16.gmra.mxu2 %vm313_vm1, %v765_v12  ;;  %749 = vmatmul.msk.bf16.gmra.mxu3 %vm313_vm1, %v770_v13 }
  0x40   : > { %735 = vmatmul.msk.bf16.gmra.mxu0 %vm313_vm1, %v756_v14  ;;  %740 = vmatmul.msk.bf16.gmra.mxu1 %vm313_vm1, %v761_v15 }
  0x41   : > { %745 = vmatmul.msk.bf16.gmra.mxu2 %vm313_vm1, %v766_v16  ;;  %750 = vmatmul.msk.bf16.gmra.mxu3 %vm313_vm1, %v771_v17 }
  0x50   : > { %736 = vmatmul.msk.bf16.gmra.mxu0 %vm313_vm1, %v757_v18  ;;  %741 = vmatmul.msk.bf16.gmra.mxu1 %vm313_vm1, %v762_v19 }
  0x51   : > { %746 = vmatmul.msk.bf16.gmra.mxu2 %vm313_vm1, %v767_v20 }
  0x8d   : > { %v384_v21 = vpop.f32.mrf.mxu0  ;;  %v409_v22 = vpop.f32.mrf.mxu1 }
  0x8e   : > { %v385_v24 = vadd.f32 %v987_v23, %v384_v21  ;;  %v410_v25 = vadd.f32 %v987_v23, %v409_v22 }
  0x90   : > { %v479_v32 = vmax.f32 %v385_v24, 0.0  ;;  %v489_v33 = vmax.f32 %v410_v25, 0.0 }
  0x94   : > { %v434_v26 = vpop.f32.mrf.mxu2  ;;  %v459_v27 = vpop.f32.mrf.mxu3 }
  0x95   : > { %v386_v28 = vpop.f32.mrf.mxu0  ;;  %v411_v29 = vpop.f32.mrf.mxu1  ;;  %v460_v36 = vadd.f32 %v987_v23, %v459_v27  ;;  %v435_v39 = vadd.f32 %v987_v23, %v434_v26 }
  0x96   : > { %v387_v30 = vadd.f32 %v987_v23, %v386_v28  ;;  %v412_v31 = vadd.f32 %v987_v23, %v411_v29 }
  0x97   : > { %v509_v43 = vmax.f32 %v460_v36, 0.0  ;;  %v499_v47 = vmax.f32 %v435_v39, 0.0 }
  0x98   : > { %v480_v34 = vmax.f32 %v387_v30, 0.0  ;;  %v490_v35 = vmax.f32 %v412_v31, 0.0 }
  0x9a   : > { %v775_v37 = vpack.c.bf16 %v480_v34, %v479_v32  ;;  %v800_v38 = vpack.c.bf16 %v490_v35, %v489_v33 }
  0x9c   : > { %776 = vst [vmem:[%s998_s25] sm:$0xff] %v775_v37   ;;  %v436_v40 = vpop.f32.mrf.mxu2  ;;  %v461_v41 = vpop.f32.mrf.mxu3 }
  0x9d   : > { %871 = vst [vmem:[%s998_s25 + $0x28] sm:$0xff] %v800_v38   ;;  %v437_v42 = vadd.f32 %v987_v23, %v436_v40  ;;  %v389_v44 = vpop.f32.mrf.mxu0  ;;  %v414_v45 = vpop.f32.mrf.mxu1  ;;  %v462_v46 = vadd.f32 %v987_v23, %v461_v41 }
  0x9e   : > { %v390_v52 = vadd.f32 %v987_v23, %v389_v44  ;;  %v415_v53 = vadd.f32 %v987_v23, %v414_v45 }
  0x9f   : > { %v500_v48 = vmax.f32 %v437_v42, 0.0  ;;  %v510_v49 = vmax.f32 %v462_v46, 0.0 }
  0xa0   : > { %v481_v60 = vmax.f32 %v390_v52, 0.0  ;;  %v491_v61 = vmax.f32 %v415_v53, 0.0 }
  0xa1   : > { %v825_v50 = vpack.c.bf16 %v500_v48, %v499_v47  ;;  %v850_v51 = vpack.c.bf16 %v510_v49, %v509_v43 }
  0xa3   : > { %876 = vst [vmem:[%s998_s25 + $0x50] sm:$0xff] %v825_v50  }
  0xa4   : > { %v439_v54 = vpop.f32.mrf.mxu2  ;;  %881 = vst [vmem:[%s998_s25 + $0x78] sm:$0xff] %v850_v51   ;;  %v464_v55 = vpop.f32.mrf.mxu3 }
  0xa5   : > { %v391_v56 = vpop.f32.mrf.mxu0  ;;  %v416_v57 = vpop.f32.mrf.mxu1  ;;  %v465_v0 = vadd.f32 %v987_v23, %v464_v55  ;;  %v440_v3 = vadd.f32 %v987_v23, %v439_v54 }
  0xa6   : > { %v392_v58 = vadd.f32 %v987_v23, %v391_v56  ;;  %v417_v59 = vadd.f32 %v987_v23, %v416_v57 }
  0xa7   : > { %v511_v7 = vmax.f32 %v465_v0, 0.0  ;;  %v501_v11 = vmax.f32 %v440_v3, 0.0 }
  0xa8   : > { %v482_v62 = vmax.f32 %v392_v58, 0.0  ;;  %v492_v63 = vmax.f32 %v417_v59, 0.0 }
  0xaa   : > { %v780_v1 = vpack.c.bf16 %v482_v62, %v481_v60  ;;  %v805_v2 = vpack.c.bf16 %v492_v63, %v491_v61 }
  0xac   : > { %867 = vst [vmem:[%s998_s25 + $0x8] sm:$0xff] %v780_v1   ;;  %v441_v4 = vpop.f32.mrf.mxu2  ;;  %v466_v5 = vpop.f32.mrf.mxu3 }
  0xad   : > { %872 = vst [vmem:[%s998_s25 + $0x30] sm:$0xff] %v805_v2   ;;  %v442_v6 = vadd.f32 %v987_v23, %v441_v4  ;;  %v394_v8 = vpop.f32.mrf.mxu0  ;;  %v419_v9 = vpop.f32.mrf.mxu1  ;;  %v467_v10 = vadd.f32 %v987_v23, %v466_v5 }
  0xae   : > { %v395_v16 = vadd.f32 %v987_v23, %v394_v8  ;;  %v420_v17 = vadd.f32 %v987_v23, %v419_v9 }
  0xaf   : > { %v502_v12 = vmax.f32 %v442_v6, 0.0  ;;  %v512_v13 = vmax.f32 %v467_v10, 0.0 }
  0xb0   : > { %v483_v25 = vmax.f32 %v395_v16, 0.0  ;;  %v493_v26 = vmax.f32 %v420_v17, 0.0 }
  0xb1   : > { %v830_v14 = vpack.c.bf16 %v502_v12, %v501_v11  ;;  %v855_v15 = vpack.c.bf16 %v512_v13, %v511_v7 }
  0xb3   : > { %877 = vst [vmem:[%s998_s25 + $0x58] sm:$0xff] %v830_v14  }
  0xb4   : > { %v444_v18 = vpop.f32.mrf.mxu2  ;;  %882 = vst [vmem:[%s998_s25 + $0x80] sm:$0xff] %v855_v15   ;;  %v469_v19 = vpop.f32.mrf.mxu3 }
  0xb5   : > { %v396_v20 = vpop.f32.mrf.mxu0  ;;  %v421_v21 = vpop.f32.mrf.mxu1  ;;  %v470_v29 = vadd.f32 %v987_v23, %v469_v19  ;;  %v445_v32 = vadd.f32 %v987_v23, %v444_v18 }
  0xb6   : > { %v397_v22 = vadd.f32 %v987_v23, %v396_v20  ;;  %v422_v24 = vadd.f32 %v987_v23, %v421_v21 }
  0xb7   : > { %v513_v36 = vmax.f32 %v470_v29, 0.0  ;;  %v503_v40 = vmax.f32 %v445_v32, 0.0 }
  0xb8   : > { %v484_v27 = vmax.f32 %v397_v22, 0.0  ;;  %v494_v28 = vmax.f32 %v422_v24, 0.0 }
  0xba   : > { %v785_v30 = vpack.c.bf16 %v484_v27, %v483_v25  ;;  %v810_v31 = vpack.c.bf16 %v494_v28, %v493_v26 }
  0xbc   : > { %868 = vst [vmem:[%s998_s25 + $0x10] sm:$0xff] %v785_v30   ;;  %v446_v33 = vpop.f32.mrf.mxu2  ;;  %v471_v34 = vpop.f32.mrf.mxu3 }
  0xbd   : > { %873 = vst [vmem:[%s998_s25 + $0x38] sm:$0xff] %v810_v31   ;;  %v447_v35 = vadd.f32 %v987_v23, %v446_v33  ;;  %v399_v37 = vpop.f32.mrf.mxu0  ;;  %v424_v38 = vpop.f32.mrf.mxu1  ;;  %v472_v39 = vadd.f32 %v987_v23, %v471_v34 }
  0xbe   : > { %v400_v45 = vadd.f32 %v987_v23, %v399_v37  ;;  %v425_v46 = vadd.f32 %v987_v23, %v424_v38 }
  0xbf   : > { %v504_v41 = vmax.f32 %v447_v35, 0.0  ;;  %v514_v42 = vmax.f32 %v472_v39, 0.0 }
  0xc0   : > { %v485_v53 = vmax.f32 %v400_v45, 0.0  ;;  %v495_v54 = vmax.f32 %v425_v46, 0.0 }
  0xc1   : > { %v835_v43 = vpack.c.bf16 %v504_v41, %v503_v40  ;;  %v860_v44 = vpack.c.bf16 %v514_v42, %v513_v36 }
  0xc3   : > { %878 = vst [vmem:[%s998_s25 + $0x60] sm:$0xff] %v835_v43  }
  0xc4   : > { %v449_v47 = vpop.f32.mrf.mxu2  ;;  %883 = vst [vmem:[%s998_s25 + $0x88] sm:$0xff] %v860_v44   ;;  %v474_v48 = vpop.f32.mrf.mxu3 }
  0xc5   : > { %v401_v49 = vpop.f32.mrf.mxu0  ;;  %v426_v50 = vpop.f32.mrf.mxu1  ;;  %v475_v57 = vadd.f32 %v987_v23, %v474_v48  ;;  %v450_v60 = vadd.f32 %v987_v23, %v449_v47 }
  0xc6   : > { %v402_v51 = vadd.f32 %v987_v23, %v401_v49  ;;  %v427_v52 = vadd.f32 %v987_v23, %v426_v50 }
  0xc7   : > { %v515_v0 = vmax.f32 %v475_v57, 0.0  ;;  %v505_v4 = vmax.f32 %v450_v60, 0.0 }
  0xc8   : > { %v486_v55 = vmax.f32 %v402_v51, 0.0  ;;  %v496_v56 = vmax.f32 %v427_v52, 0.0 }
  0xca   : > { %v790_v58 = vpack.c.bf16 %v486_v55, %v485_v53  ;;  %v815_v59 = vpack.c.bf16 %v496_v56, %v495_v54 }
  0xcc   : > { %869 = vst [vmem:[%s998_s25 + $0x18] sm:$0xff] %v790_v58   ;;  %v451_v61 = vpop.f32.mrf.mxu2  ;;  %v476_v62 = vpop.f32.mrf.mxu3 }
  0xcd   : > { %874 = vst [vmem:[%s998_s25 + $0x40] sm:$0xff] %v815_v59   ;;  %v452_v63 = vadd.f32 %v987_v23, %v451_v61  ;;  %v404_v1 = vpop.f32.mrf.mxu0  ;;  %v429_v2 = vpop.f32.mrf.mxu1  ;;  %v477_v3 = vadd.f32 %v987_v23, %v476_v62 }
  0xce   : > { %v405_v9 = vadd.f32 %v987_v23, %v404_v1  ;;  %v430_v10 = vadd.f32 %v987_v23, %v429_v2 }
  0xcf   : > { %v506_v5 = vmax.f32 %v452_v63, 0.0  ;;  %v516_v6 = vmax.f32 %v477_v3, 0.0 }
  0xd0   : > { %v487_v16 = vmax.f32 %v405_v9, 0.0  ;;  %v497_v17 = vmax.f32 %v430_v10, 0.0 }
  0xd1   : > { %v840_v7 = vpack.c.bf16 %v506_v5, %v505_v4  ;;  %v865_v8 = vpack.c.bf16 %v516_v6, %v515_v0 }
  0xd3   : > { %879 = vst [vmem:[%s998_s25 + $0x68] sm:$0xff] %v840_v7  }
  0xd4   : > { %v454_v11 = vpop.f32.mrf.mxu2  ;;  %884 = vst [vmem:[%s998_s25 + $0x90] sm:$0xff] %v865_v8  }
  0xd5   : > { %v406_v12 = vpop.f32.mrf.mxu0  ;;  %v431_v13 = vpop.f32.mrf.mxu1  ;;  %v455_v22 = vadd.f32 %v987_v23, %v454_v11 }
  0xd6   : > { %v407_v14 = vadd.f32 %v987_v23, %v406_v12  ;;  %v432_v15 = vadd.f32 %v987_v23, %v431_v13 }
  0xd7   : > { %v507_v26 = vmax.f32 %v455_v22, 0.0 }
  0xd8   : > { %v488_v18 = vmax.f32 %v407_v14, 0.0  ;;  %v498_v19 = vmax.f32 %v432_v15, 0.0 }
  0xda   : > { %v795_v20 = vpack.c.bf16 %v488_v18, %v487_v16  ;;  %v820_v21 = vpack.c.bf16 %v498_v19, %v497_v17 }
  0xdc   : > { %870 = vst [vmem:[%s998_s25 + $0x20] sm:$0xff] %v795_v20   ;;  %v456_v24 = vpop.f32.mrf.mxu2 }
  0xdd   : > { %875 = vst [vmem:[%s998_s25 + $0x48] sm:$0xff] %v820_v21   ;;  %v457_v25 = vadd.f32 %v987_v23, %v456_v24 }
  0xdf   : > { %v508_v27 = vmax.f32 %v457_v25, 0.0 }
  0xe1   : > { %v845_v28 = vpack.c.bf16 %v508_v27, %v507_v26 }
  0xe3   : > { %880 = vst [vmem:[%s998_s25 + $0x70] sm:$0xff] %v845_v28  }
  0xe4 PF: > { %s13_s12 = sadd.s32 1, %s903_s12  }
  0xe5   : > { %p10_p4 = scmp.ge.s32.totalorder %s13_s12, 4  }
  0xe7   :  { %12 = sbr.rel (!%p10_p4) target bundleno = 1 (0x1), region = 62 }

// kernel: inception_b.4
= control target key start
LH: loop header
LB: loop body
LE: loop exit
PB: predicated region body
PF: predicated region fallthrough
CT: control target
= control target key end

     0   :  { %s2666_s12 = smov 0   ;;  %s3182_s0 = inlined_call_operand.vmem [shape: bf16[608,576], index: 0, kind: input, shape index: {}]   ;;  %s3183_s1 = inlined_call_operand.vmem [shape: bf16[576,128], index: 1, kind: input, shape index: {}]   ;;  %s3184_s2 = inlined_call_operand.vmem [shape: f32[1,128], index: 2, kind: input, shape index: {}]   ;;  %s3185_s3 = inlined_call_operand.vmem [shape: bf16[608,128], index: 3, kind: output, shape index: {}]  }
   0x1 LB: > { %s1807_s13 = sadd.s32 4294967295, %s2644_s12   ;;  %p1811_p0 = scmp.ge.s32.totalorder %s2644_s12, 1  ;;  %s2644_s12 = sphi %s2666_s12, %s13_s12  }
   0x2   : > { %p139_p1 = scmp.lt.s32.totalorder %s2644_s12, 3 }
   0x4   : > { %p140_p2 = pnand %p1811_p0, %p139_p1 }
   0x6   : > { %143 = sbr.rel (%p140_p2) target bundleno = 562 (0x232), region = 32 }
   0xb   : > { %v2461_v0 = vld [vmem:[%s3183_s1 + $0x38] sm:$0xff]  ;;  %v2460_v1 = vld [vmem:[%s3183_s1 + $0x30] sm:$0xff]  ;;  %v2459_v2 = vld [vmem:[%s3183_s1 + $0x28] sm:$0xff]  ;;  %s164_s20 = smul.u32 38, %s1807_s13  ;;  %vm1059_vm0 = vcmask 523264  }
   0xc   : > { %2603 = vmatpush.bf16.msra.mxu1 %v2461_v0  ;;  %2604 = vmatpush.bf16.msra.mxu2 %v2461_v0  ;;  %v2458_v3 = vld [vmem:[%s3183_s1 + $0x20] sm:$0xff]  ;;  %v2457_v4 = vld [vmem:[%s3183_s1 + $0x18] sm:$0xff]  ;;  %v2456_v5 = vld [vmem:[%s3183_s1 + $0x10] sm:$0xff] }
   0xd   : > { %1117 = vmatpush.bf16.msra.mxu0 %v2461_v0  ;;  %2605 = vmatpush.bf16.msra.mxu3 %v2461_v0  ;;  %p165_p3 = scmp.lt.s32.totalorder %s164_s20, 75  ;;  %v2455_v6 = vld [vmem:[%s3183_s1 + $0x8] sm:$0xff]  ;;  %v2454_v7 = vld [vmem:[%s3183_s1] sm:$0xff]  ;;  %v2477_v12 = vld [vmem:[%s3183_s1 + $0xb8] sm:$0xff] }
   0xe   : > { %v2469_v15 = vld [vmem:[%s3183_s1 + $0x78] sm:$0xff]  ;;  %v2476_v23 = vld [vmem:[%s3183_s1 + $0xb0] sm:$0xff]  ;;  %v2475_v27 = vld [vmem:[%s3183_s1 + $0xa8] sm:$0xff] }
   0xf   : > { %s3193_s20 = smov (!%p165_p3, %s164_s20), 75  ;;  %v2485_v21 = vld [vmem:[%s3183_s1 + $0xf8] sm:$0xff]  ;;  %v2468_v25 = vld [vmem:[%s3183_s1 + $0x70] sm:$0xff]  ;;  %v2467_v28 = vld [vmem:[%s3183_s1 + $0x68] sm:$0xff] }
  0x10   : > { %2606 = vmatpush.bf16.msra.mxu1 %v2460_v1  ;;  %2607 = vmatpush.bf16.msra.mxu2 %v2460_v1  ;;  %s2627_s27 = smul.u32 20, %s3193_s20  ;;  %v2489_v24 = vld [vmem:[%s3183_s1 + $0x118] sm:$0xff]  ;;  %v2484_v26 = vld [vmem:[%s3183_s1 + $0xf0] sm:$0xff]  ;;  %v2483_v30 = vld [vmem:[%s3183_s1 + $0xe8] sm:$0xff]  ;;  %s1813_s19 = sshll.u32 %s3193_s20, 2 }
  0x11   : > { %1118 = vmatpush.bf16.msra.mxu0 %v2460_v1  ;;  %2608 = vmatpush.bf16.msra.mxu3 %v2460_v1  ;;  %v2488_v29 = vld [vmem:[%s3183_s1 + $0x110] sm:$0xff]  ;;  %v2474_v31 = vld [vmem:[%s3183_s1 + $0xa0] sm:$0xff]  ;;  %v2473_v40 = vld [vmem:[%s3183_s1 + $0x98] sm:$0xff]  ;;  %s3011_s23 = scalar_lea.vmem %s3185_s3, %s1813_s19 }
  0x12   : > { %s2701_s5 = scalar_lea.vmem %s3182_s0, %s2627_s27  ;;  %v2466_v32 = vld [vmem:[%s3183_s1 + $0x60] sm:$0xff]  ;;  %v2465_v43 = vld [vmem:[%s3183_s1 + $0x58] sm:$0xff]  ;;  %v2472_v48 = vld [vmem:[%s3183_s1 + $0x90] sm:$0xff] }
  0x13   : > { %v1916_v8 = vld [vmem:[%s2701_s5 + $0xc8] sm:$0xf]  ;;  %v2386_v9 = vld [vmem:[%s2701_s5 + $0xd8] sm:$0xf0]  ;;  %v2016_v10 = vld [vmem:[%s2701_s5 + $0x190] sm:$0xf] }
  0x14   : > { %2609 = vmatpush.bf16.msra.mxu1 %v2459_v2  ;;  %2610 = vmatpush.bf16.msra.mxu2 %v2459_v2  ;;  %v2411_v11 = vld [vmem:[%s2701_s5 + $0x1a0] sm:$0xf0]  ;;  %v1816_v13 = vld [vmem:[%s2701_s5] sm:$0xf]  ;;  %v2361_v14 = vld [vmem:[%s2701_s5 + $0x10] sm:$0xf0]  ;;  %v1917_v18 = vor.u32 %v2386_v9, %v1916_v8 }
  0x15   : > { %1119 = vmatpush.bf16.msra.mxu0 %v2459_v2  ;;  %2611 = vmatpush.bf16.msra.mxu3 %v2459_v2  ;;  %v2116_v16 = vld [vmem:[%s2701_s5 + $0x258] sm:$0xf]  ;;  %v2436_v17 = vld [vmem:[%s2701_s5 + $0x268] sm:$0xf0]  ;;  %v2017_v19 = vor.u32 %v2411_v11, %v2016_v10  ;;  %v1817_v20 = vor.u32 %v2361_v14, %v1816_v13  ;;  %v1936_v33 = vld [vmem:[%s2701_s5 + $0xf0] sm:$0xf] }
  0x16   : > { %v2117_v22 = vor.u32 %v2436_v17, %v2116_v16  ;;  %v2391_v34 = vld [vmem:[%s2701_s5 + $0x100] sm:$0xf0]  ;;  %v2036_v35 = vld [vmem:[%s2701_s5 + $0x1b8] sm:$0xf]  ;;  %v2416_v36 = vld [vmem:[%s2701_s5 + $0x1c8] sm:$0xf0] }
  0x17   : > { %v2482_v37 = vld [vmem:[%s3183_s1 + $0xe0] sm:$0xff]  ;;  %v1836_v38 = vld [vmem:[%s2701_s5 + $0x28] sm:$0xf]  ;;  %v2366_v39 = vld [vmem:[%s2701_s5 + $0x38] sm:$0xf0]  ;;  %v1937_v44 = vor.u32 %v2391_v34, %v1936_v33  ;;  %v2037_v45 = vor.u32 %v2416_v36, %v2036_v35 }
  0x18   : > { %2612 = vmatpush.bf16.msra.mxu1 %v2458_v3  ;;  %2613 = vmatpush.bf16.msra.mxu2 %v2458_v3  ;;  %v2136_v41 = vld [vmem:[%s2701_s5 + $0x280] sm:$0xf]  ;;  %v2441_v42 = vld [vmem:[%s2701_s5 + $0x290] sm:$0xf0]  ;;  %v1837_v46 = vor.u32 %v2366_v39, %v1836_v38  ;;  %v2481_v49 = vld [vmem:[%s3183_s1 + $0xd8] sm:$0xff] }
  0x19   : > { %1120 = vmatpush.bf16.msra.mxu0 %v2458_v3  ;;  %2614 = vmatpush.bf16.msra.mxu3 %v2458_v3  ;;  %v2137_v47 = vor.u32 %v2441_v42, %v2136_v41  ;;  %v2487_v50 = vld [vmem:[%s3183_s1 + $0x108] sm:$0xff]  ;;  %v2464_v51 = vld [vmem:[%s3183_s1 + $0x50] sm:$0xff]  ;;  %v1956_v54 = vld [vmem:[%s2701_s5 + $0x118] sm:$0xf] }
  0x1a   : > { %v2480_v52 = vld [vmem:[%s3183_s1 + $0xd0] sm:$0xff]  ;;  %v2471_v53 = vld [vmem:[%s3183_s1 + $0x88] sm:$0xff]  ;;  %v2056_v56 = vld [vmem:[%s2701_s5 + $0x1e0] sm:$0xf] }
  0x1b   : > { %v2396_v55 = vld [vmem:[%s2701_s5 + $0x128] sm:$0xf0]  ;;  %v2421_v57 = vld [vmem:[%s2701_s5 + $0x1f0] sm:$0xf0]  ;;  %v1856_v58 = vld [vmem:[%s2701_s5 + $0x50] sm:$0xf] }
  0x1c   : > { %2615 = vmatpush.bf16.msra.mxu1 %v2457_v4  ;;  %2616 = vmatpush.bf16.msra.mxu2 %v2457_v4  ;;  %v2371_v59 = vld [vmem:[%s2701_s5 + $0x60] sm:$0xf0]  ;;  %v2156_v60 = vld [vmem:[%s2701_s5 + $0x2a8] sm:$0xf]  ;;  %v2446_v61 = vld [vmem:[%s2701_s5 + $0x2b8] sm:$0xf0]  ;;  %v1957_v62 = vor.u32 %v2396_v55, %v1956_v54  ;;  %v2057_v63 = vor.u32 %v2421_v57, %v2056_v56 }
  0x1d   : > { %1121 = vmatpush.bf16.msra.mxu0 %v2457_v4  ;;  %2617 = vmatpush.bf16.msra.mxu3 %v2457_v4  ;;  %v1857_v0 = vor.u32 %v2371_v59, %v1856_v58  ;;  %v2157_v1 = vor.u32 %v2446_v61, %v2156_v60  ;;  %v2463_v2 = vld [vmem:[%s3183_s1 + $0x48] sm:$0xff]  ;;  %v2470_v4 = vld [vmem:[%s3183_s1 + $0x80] sm:$0xff]  ;;  %v2401_v9 = vld [vmem:[%s2701_s5 + $0x150] sm:$0xf0] }
  0x1e   : > { %v2479_v3 = vld [vmem:[%s3183_s1 + $0xc8] sm:$0xff]  ;;  %v1976_v8 = vld [vmem:[%s2701_s5 + $0x140] sm:$0xf]  ;;  %v2426_v11 = vld [vmem:[%s2701_s5 + $0x218] sm:$0xf0] }
  0x1f   : > { %v2076_v10 = vld [vmem:[%s2701_s5 + $0x208] sm:$0xf]  ;;  %v2376_v13 = vld [vmem:[%s2701_s5 + $0x88] sm:$0xf0]  ;;  %v2176_v14 = vld [vmem:[%s2701_s5 + $0x2d0] sm:$0xf]  ;;  %v1977_v16 = vor.u32 %v2401_v9, %v1976_v8 }
  0x20   : > { %2618 = vmatpush.bf16.msra.mxu1 %v2456_v5  ;;  %2619 = vmatpush.bf16.msra.mxu2 %v2456_v5  ;;  %v2077_v17 = vor.u32 %v2426_v11, %v2076_v10  ;;  %v1818_v33 = vld [vmem:[%s2701_s5 + $0x14] sm:$0xf0]  ;;  %v1824_v34 = vld [vmem:[%s2701_s5 + $0x8] sm:$0xf]  ;;  %v2362_v35 = vld [vmem:[%s2701_s5 + $0x18] sm:$0xf0] }
  0x21   : > { %1122 = vmatpush.bf16.msra.mxu0 %v2456_v5  ;;  %2620 = vmatpush.bf16.msra.mxu3 %v2456_v5  ;;  %v2486_v5 = vld [vmem:[%s3183_s1 + $0x100] sm:$0xff]  ;;  %v1832_v36 = vld [vmem:[%s2701_s5 + $0x10] sm:$0xf]  ;;  %v2365_v38 = vld [vmem:[%s2701_s5 + $0x34] sm:$0xf]  ;;  %v1825_v41 = vor.u32 %v2362_v35, %v1824_v34 }
  0x22   : > { %v1846_v39 = vld [vmem:[%s2701_s5 + $0x44] sm:$0xf0]  ;;  %v2369_v56 = vld [vmem:[%s2701_s5 + $0x54] sm:$0xf]  ;;  %v1864_v58 = vld [vmem:[%s2701_s5 + $0x58] sm:$0xf] }
  0x23   : > { %v1858_v57 = vld [vmem:[%s2701_s5 + $0x64] sm:$0xf0]  ;;  %v2372_v59 = vld [vmem:[%s2701_s5 + $0x68] sm:$0xf0]  ;;  %v1872_v60 = vld [vmem:[%s2701_s5 + $0x60] sm:$0xf] }
  0x24   : > { %2621 = vmatpush.bf16.msra.mxu1 %v2455_v6  ;;  %2622 = vmatpush.bf16.msra.mxu2 %v2455_v6  ;;  %v2373_v61 = vld [vmem:[%s2701_s5 + $0x70] sm:$0xf0]  ;;  %v1892_v8 = vld [vmem:[%s2701_s5 + $0x88] sm:$0xf]  ;;  %v2378_v9 = vld [vmem:[%s2701_s5 + $0x98] sm:$0xf0] }
  0x25   : > { %1123 = vmatpush.bf16.msra.mxu0 %v2455_v6  ;;  %2623 = vmatpush.bf16.msra.mxu3 %v2455_v6  ;;  %v2462_v6 = vld [vmem:[%s3183_s1 + $0x40] sm:$0xff]  ;;  %v2380_v10 = vld [vmem:[%s2701_s5 + $0xac] sm:$0xf] }
  0x26   : > { %v1906_v11 = vld [vmem:[%s2701_s5 + $0xbc] sm:$0xf0] }
  0x28   : > { %2624 = vmatpush.bf16.msra.mxu1 %v2454_v7  ;;  %2625 = vmatpush.bf16.msra.mxu2 %v2454_v7 }
  0x29   : > { %1124 = vmatpush.bf16.msra.mxu0 %v2454_v7  ;;  %2626 = vmatpush.bf16.msra.mxu3 %v2454_v7  ;;  %v2478_v7 = vld [vmem:[%s3183_s1 + $0xc0] sm:$0xff] }
  0x2b   : > { %1150 = vmatmul.bf16.vlgmr.msra.gmra.mxu1 %v1917_v18  ;;  %1175 = vmatmul.bf16.vlgmr.msra.gmra.mxu2 %v2017_v19 }
  0x2c   : > { %1325 = vmatpush.bf16.msrb.mxu2 %v2477_v12  ;;  %1221 = vmatpush.bf16.msrb.mxu1 %v2469_v15  ;;  %v1876_v12 = vld [vmem:[%s2701_s5 + $0x78] sm:$0xf]  ;;  %v2451_v15 = vld [vmem:[%s2701_s5 + $0x2e0] sm:$0xf0] }
  0x2d   : > { %1125 = vmatmul.bf16.vlgmr.msra.gmra.mxu0 %v1817_v20  ;;  %1429 = vmatpush.bf16.msrb.mxu3 %v2485_v21  ;;  %v1877_v18 = vor.u32 %v2376_v13, %v1876_v12  ;;  %v2177_v19 = vor.u32 %v2451_v15, %v2176_v14  ;;  %v1996_v20 = vld [vmem:[%s2701_s5 + $0x168] sm:$0xf]  ;;  %v2406_v21 = vld [vmem:[%s2701_s5 + $0x178] sm:$0xf0]  ;;  %v1893_v15 = vor.u32 %v2378_v9, %v1892_v8 }
  0x2e   : > { %1200 = vmatmul.bf16.vlgmr.msra.gmra.mxu3 %v2117_v22  ;;  %1537 = vmatpush.bf16.msrb.mxu0 %v2489_v24  ;;  %v2096_v22 = vld [vmem:[%s2701_s5 + $0x230] sm:$0xf]  ;;  %v1896_v24 = vld [vmem:[%s2701_s5 + $0xa0] sm:$0xf] }
  0x30   : > { %1326 = vmatpush.bf16.msrb.mxu2 %v2476_v23  ;;  %1222 = vmatpush.bf16.msrb.mxu1 %v2468_v25  ;;  %v2431_v23 = vld [vmem:[%s2701_s5 + $0x240] sm:$0xf0]  ;;  %v2381_v25 = vld [vmem:[%s2701_s5 + $0xb0] sm:$0xf0] }
  0x31   : > { %1430 = vmatpush.bf16.msrb.mxu3 %v2484_v26  ;;  %v2360_v26 = vld [vmem:[%s2701_s5 + $0xc] sm:$0xf] }
  0x32   : > { %1538 = vmatpush.bf16.msrb.mxu0 %v2488_v29  ;;  %v2097_v29 = vor.u32 %v2431_v23, %v2096_v22  ;;  %v2379_v22 = vld [vmem:[%s2701_s5 + $0xa4] sm:$0xf]  ;;  %v1898_v23 = vld [vmem:[%s2701_s5 + $0xb4] sm:$0xf0] }
  0x34   : > { %1327 = vmatpush.bf16.msrb.mxu2 %v2475_v27  ;;  %1223 = vmatpush.bf16.msrb.mxu1 %v2467_v28  ;;  %v1826_v27 = vld [vmem:[%s2701_s5 + $0x1c] sm:$0xf0]  ;;  %v1997_v28 = vor.u32 %v2406_v21, %v1996_v20 }
  0x35   : > { %1431 = vmatpush.bf16.msrb.mxu3 %v2483_v30  ;;  %v1897_v30 = vor.u32 %v2381_v25, %v1896_v24  ;;  %v1904_v24 = vld [vmem:[%s2701_s5 + $0xa8] sm:$0xf]  ;;  %v2382_v25 = vld [vmem:[%s2701_s5 + $0xb8] sm:$0xf0] }
  0x36   : > { %1539 = vmatpush.bf16.msrb.mxu0 %v2487_v50  ;;  %v2370_v50 = vld [vmem:[%s2701_s5 + $0x5c] sm:$0xf] }
  0x38   : > { %1328 = vmatpush.bf16.msrb.mxu2 %v2474_v31  ;;  %1224 = vmatpush.bf16.msrb.mxu1 %v2466_v32  ;;  %v1829_v31 = vor.u32 %v2360_v26, %v1826_v27  ;;  %v2359_v32 = vld [vmem:[%s2701_s5 + $0x4] sm:$0xf]  ;;  %v1912_v26 = vld [vmem:[%s2701_s5 + $0xb0] sm:$0xf] }
  0x39   : > { %1432 = vmatpush.bf16.msrb.mxu3 %v2482_v37  ;;  %v2363_v37 = vld [vmem:[%s2701_s5 + $0x20] sm:$0xf0] }
  0x3a   : > { %1540 = vmatpush.bf16.msrb.mxu0 %v2486_v5  ;;  %v1833_v42 = vor.u32 %v2363_v37, %v1832_v36  ;;  %v1878_v5 = vld [vmem:[%s2701_s5 + $0x8c] sm:$0xf0]  ;;  %v2383_v27 = vld [vmem:[%s2701_s5 + $0xc0] sm:$0xf0] }
  0x3b   : > { %1155 = vmatmul.bf16.gmra.mxu1 %v1937_v44  ;;  %1180 = vmatmul.bf16.gmra.mxu2 %v2037_v45  ;;  %v2364_v44 = vld [vmem:[%s2701_s5 + $0x2c] sm:$0xf]  ;;  %v1838_v45 = vld [vmem:[%s2701_s5 + $0x3c] sm:$0xf0]  ;;  %v1913_v34 = vor.u32 %v2383_v27, %v1912_v26  ;;  %v2397_v27 = vld [vmem:[%s2701_s5 + $0x130] sm:$0xf0] }
  0x3c   : > { %1329 = vmatpush.bf16.msrb.mxu2 %v2473_v40  ;;  %1225 = vmatpush.bf16.msrb.mxu1 %v2465_v43  ;;  %v1821_v40 = vor.u32 %v2359_v32, %v1818_v33  ;;  %v1849_v43 = vor.u32 %v2365_v38, %v1846_v39  ;;  %v1905_v32 = vor.u32 %v2382_v25, %v1904_v24  ;;  %v2394_v24 = vld [vmem:[%s2701_s5 + $0x11c] sm:$0xf]  ;;  %v1958_v25 = vld [vmem:[%s2701_s5 + $0x12c] sm:$0xf0]  ;;  %v1964_v26 = vld [vmem:[%s2701_s5 + $0x120] sm:$0xf] }
  0x3d   : > { %1130 = vmatmul.bf16.gmra.mxu0 %v1837_v46  ;;  %1433 = vmatpush.bf16.msrb.mxu3 %v2481_v49  ;;  %v1844_v46 = vld [vmem:[%s2701_s5 + $0x30] sm:$0xf]  ;;  %v2368_v49 = vld [vmem:[%s2701_s5 + $0x48] sm:$0xf0] }
  0x3e   : > { %1205 = vmatmul.bf16.gmra.mxu3 %v2137_v47  ;;  %v2367_v47 = vld [vmem:[%s2701_s5 + $0x40] sm:$0xf0] }
  0x40   : > { %1330 = vmatpush.bf16.msrb.mxu2 %v2472_v48  ;;  %1226 = vmatpush.bf16.msrb.mxu1 %v2464_v51  ;;  %v1852_v48 = vld [vmem:[%s2701_s5 + $0x38] sm:$0xf]  ;;  %v1866_v51 = vld [vmem:[%s2701_s5 + $0x6c] sm:$0xf0] }
  0x41   : > { %1434 = vmatpush.bf16.msrb.mxu3 %v2480_v52  ;;  %v1841_v52 = vor.u32 %v2364_v44, %v1838_v45  ;;  %v1853_v54 = vor.u32 %v2368_v49, %v1852_v48  ;;  %v1869_v55 = vor.u32 %v2370_v50, %v1866_v51  ;;  %v1924_v44 = vld [vmem:[%s2701_s5 + $0xd0] sm:$0xf]  ;;  %v2387_v45 = vld [vmem:[%s2701_s5 + $0xe0] sm:$0xf0]  ;;  %v2390_v49 = vld [vmem:[%s2701_s5 + $0xfc] sm:$0xf] }
  0x42   : > { %v1946_v50 = vld [vmem:[%s2701_s5 + $0x10c] sm:$0xf0] }
  0x44   : > { %1331 = vmatpush.bf16.msrb.mxu2 %v2471_v53  ;;  %1227 = vmatpush.bf16.msrb.mxu1 %v2463_v2  ;;  %v1845_v53 = vor.u32 %v2367_v47, %v1844_v46  ;;  %v1873_v2 = vor.u32 %v2373_v61, %v1872_v60  ;;  %v1932_v46 = vld [vmem:[%s2701_s5 + $0xd8] sm:$0xf]  ;;  %v2388_v47 = vld [vmem:[%s2701_s5 + $0xe8] sm:$0xf0] }
  0x45   : > { %1435 = vmatpush.bf16.msrb.mxu3 %v2479_v3 }
  0x48   : > { %1332 = vmatpush.bf16.msrb.mxu2 %v2470_v4  ;;  %1228 = vmatpush.bf16.msrb.mxu1 %v2462_v6  ;;  %v2374_v4 = vld [vmem:[%s2701_s5 + $0x7c] sm:$0xf]  ;;  %v1884_v6 = vld [vmem:[%s2701_s5 + $0x80] sm:$0xf] }
  0x49   : > { %1436 = vmatpush.bf16.msrb.mxu3 %v2478_v7  ;;  %v2377_v7 = vld [vmem:[%s2701_s5 + $0x90] sm:$0xf0]  ;;  %v1881_v12 = vor.u32 %v2374_v4, %v1878_v5  ;;  %v2395_v5 = vld [vmem:[%s2701_s5 + $0x124] sm:$0xf] }
  0x4a   : > { %v1885_v13 = vor.u32 %v2377_v7, %v1884_v6  ;;  %v1966_v6 = vld [vmem:[%s2701_s5 + $0x134] sm:$0xf0] }
  0x4b   : > { %1160 = vmatmul.bf16.gmra.mxu1 %v1957_v62  ;;  %1185 = vmatmul.bf16.gmra.mxu2 %v2057_v63  ;;  %v2375_v62 = vld [vmem:[%s2701_s5 + $0x84] sm:$0xf]  ;;  %v1886_v63 = vld [vmem:[%s2701_s5 + $0x94] sm:$0xf0] }
  0x4c   : > { %v1889_v3 = vor.u32 %v2375_v62, %v1886_v63  ;;  %v2389_v62 = vld [vmem:[%s2701_s5 + $0xf4] sm:$0xf]  ;;  %v1938_v63 = vld [vmem:[%s2701_s5 + $0x104] sm:$0xf0] }
  0x4d   : > { %1135 = vmatmul.bf16.gmra.mxu0 %v1857_v0  ;;  %v1861_v0 = vor.u32 %v2369_v56, %v1858_v57  ;;  %v1949_v57 = vor.u32 %v2390_v49, %v1946_v50  ;;  %v1941_v7 = vor.u32 %v2389_v62, %v1938_v63  ;;  %v1984_v62 = vld [vmem:[%s2701_s5 + $0x148] sm:$0xf]  ;;  %v2402_v63 = vld [vmem:[%s2701_s5 + $0x158] sm:$0xf0] }
  0x4e   : > { %1210 = vmatmul.bf16.gmra.mxu3 %v2157_v1  ;;  %v1865_v1 = vor.u32 %v2372_v59, %v1864_v58 }
  0x5b   : > { %1165 = vmatmul.bf16.gmra.mxu1 %v1977_v16  ;;  %1190 = vmatmul.bf16.gmra.mxu2 %v2077_v17  ;;  %v1909_v17 = vor.u32 %v2380_v10, %v1906_v11 }
  0x5d   : > { %1140 = vmatmul.bf16.gmra.mxu0 %v1877_v18 }
  0x5e   : > { %1215 = vmatmul.bf16.gmra.mxu3 %v2177_v19 }
  0x6b   : > { %1170 = vmatmul.bf16.gmra.mxu1 %v1997_v28  ;;  %1195 = vmatmul.bf16.gmra.mxu2 %v2097_v29  ;;  %v2385_v29 = vld [vmem:[%s2701_s5 + $0xd4] sm:$0xf] }
  0x6d   : > { %1145 = vmatmul.bf16.gmra.mxu0 %v1897_v30  ;;  %v1926_v30 = vld [vmem:[%s2701_s5 + $0xe4] sm:$0xf0] }
  0x6e   : > { %1437 = vmatmul.bf16.vlgmr.msrb.gmra.mxu3 %v1829_v31  ;;  %v1901_v31 = vor.u32 %v2379_v22, %v1898_v23  ;;  %v1929_v37 = vor.u32 %v2385_v29, %v1926_v30  ;;  %v1972_v29 = vld [vmem:[%s2701_s5 + $0x128] sm:$0xf]  ;;  %v2398_v30 = vld [vmem:[%s2701_s5 + $0x138] sm:$0xf0] }
  0x7b   : > { %1229 = vmatmul.bf16.vlgmr.msrb.gmra.mxu1 %v1821_v40  ;;  %1333 = vmatmul.bf16.vlgmr.msrb.gmra.mxu2 %v1825_v41 }
  0x7d   : > { %2338 = vmatmul.msk.bf16.vlgmr.msrb.gmra.mxu0 %vm1059_vm0, %v1833_v42  ;;  %v2384_v42 = vld [vmem:[%s2701_s5 + $0xcc] sm:$0xf] }
  0x7e   : > { %1442 = vmatmul.bf16.gmra.mxu3 %v1849_v43  ;;  %v1918_v43 = vld [vmem:[%s2701_s5 + $0xdc] sm:$0xf0] }
  0x7f   : > { %v1921_v51 = vor.u32 %v2384_v42, %v1918_v43  ;;  %v1965_v42 = vor.u32 %v2397_v27, %v1964_v26  ;;  %v2989_v26 = vld [vmem:[%s3184_s2] ss:$0 sm:$0xff] }
  0x8b   : > { %1234 = vmatmul.bf16.gmra.mxu1 %v1841_v52  ;;  %1338 = vmatmul.bf16.gmra.mxu2 %v1845_v53  ;;  %v1925_v52 = vor.u32 %v2387_v45, %v1924_v44  ;;  %v1973_v44 = vor.u32 %v2398_v30, %v1972_v29 }
  0x8d   : > { %2339 = vmatmul.msk.bf16.gmra.mxu0 %vm1059_vm0, %v1853_v54  ;;  %v1933_v54 = vor.u32 %v2388_v47, %v1932_v46 }
  0x8e   : > { %1447 = vmatmul.bf16.gmra.mxu3 %v1869_v55 }
  0x9b   : > { %1239 = vmatmul.bf16.gmra.mxu1 %v1861_v0  ;;  %1343 = vmatmul.bf16.gmra.mxu2 %v1865_v1  ;;  %v1944_v0 = vld [vmem:[%s2701_s5 + $0xf8] sm:$0xf]  ;;  %v2392_v1 = vld [vmem:[%s2701_s5 + $0x108] sm:$0xf0] }
  0x9c   : > { %v1945_v8 = vor.u32 %v2392_v1, %v1944_v0  ;;  %v1992_v0 = vld [vmem:[%s2701_s5 + $0x150] sm:$0xf]  ;;  %v2403_v1 = vld [vmem:[%s2701_s5 + $0x160] sm:$0xf0] }
  0x9d   : > { %2340 = vmatmul.msk.bf16.gmra.mxu0 %vm1059_vm0, %v1873_v2  ;;  %v1952_v2 = vld [vmem:[%s2701_s5 + $0x100] sm:$0xf] }
  0x9e   : > { %1452 = vmatmul.bf16.gmra.mxu3 %v1889_v3  ;;  %v2393_v3 = vld [vmem:[%s2701_s5 + $0x110] sm:$0xf0] }
  0x9f   : > { %v1953_v10 = vor.u32 %v2393_v3, %v1952_v2  ;;  %v2405_v3 = vld [vmem:[%s2701_s5 + $0x174] sm:$0xf] }
  0xa8   : > { %v2865_v14 = vpop.f32.mrf.mxu1 }
  0xaa   : > { %v2867_v16 = vpop.f32.mrf.mxu0 }
  0xab   : > { %1244 = vmatmul.bf16.gmra.mxu1 %v1881_v12  ;;  %1348 = vmatmul.bf16.gmra.mxu2 %v1885_v13  ;;  %v1969_v13 = vor.u32 %v2395_v5, %v1966_v6  ;;  %v2006_v5 = vld [vmem:[%s2701_s5 + $0x184] sm:$0xf0]  ;;  %v1127_v27 = vadd.f32 %v2989_v26, %v2867_v16  ;;  %v2012_v16 = vld [vmem:[%s2701_s5 + $0x178] sm:$0xf] }
  0xad   : > { %2341 = vmatmul.msk.bf16.gmra.mxu0 %vm1059_vm0, %v1893_v15 }
  0xae   : > { %1457 = vmatmul.bf16.gmra.mxu3 %v1909_v17  ;;  %v2870_v18 = vpop.f32.mrf.mxu2 }
  0xb0   : > { %v2872_v19 = vpop.f32.mrf.mxu1 }
  0xb1   : > { %v2874_v20 = vpop.f32.mrf.mxu3 }
  0xb2   : > { %v2876_v21 = vpop.f32.mrf.mxu0 }
  0xb6   : > { %v2884_v28 = vpop.f32.mrf.mxu2 }
  0xb8   : > { %v2888_v33 = vpop.f32.mrf.mxu1 }
  0xb9   : > { %v2890_v35 = vpop.f32.mrf.mxu3 }
  0xba   : > { %v2892_v36 = vpop.f32.mrf.mxu0 }
  0xbb   : > { %1249 = vmatmul.bf16.gmra.mxu1 %v1901_v31  ;;  %1353 = vmatmul.bf16.gmra.mxu2 %v1905_v32  ;;  %v2400_v32 = vld [vmem:[%s2701_s5 + $0x14c] sm:$0xf] }
  0xbd   : > { %2342 = vmatmul.msk.bf16.gmra.mxu0 %vm1059_vm0, %v1913_v34  ;;  %v1986_v34 = vld [vmem:[%s2701_s5 + $0x15c] sm:$0xf0] }
  0xbe   : > { %1462 = vmatmul.bf16.gmra.mxu3 %v1929_v37  ;;  %v2895_v38 = vpop.f32.mrf.mxu2  ;;  %v1961_v37 = vor.u32 %v2394_v24, %v1958_v25  ;;  %v1989_v47 = vor.u32 %v2400_v32, %v1986_v34  ;;  %v2009_v25 = vor.u32 %v2405_v3, %v2006_v5  ;;  %v2410_v5 = vld [vmem:[%s2701_s5 + $0x19c] sm:$0xf] }
  0xc0   : > { %v2897_v39 = vpop.f32.mrf.mxu1 }
  0xc1   : > { %v2899_v40 = vpop.f32.mrf.mxu3 }
  0xc2   : > { %v2901_v41 = vpop.f32.mrf.mxu0 }
  0xc6   : > { %v2909_v48 = vpop.f32.mrf.mxu2 }
  0xc8   : > { %v2913_v53 = vpop.f32.mrf.mxu1 }
  0xc9   : > { %v2915_v55 = vpop.f32.mrf.mxu3 }
  0xca   : > { %v2917_v56 = vpop.f32.mrf.mxu0 }
  0xcb   : > { %1254 = vmatmul.bf16.gmra.mxu1 %v1921_v51  ;;  %1358 = vmatmul.bf16.gmra.mxu2 %v1925_v52 }
  0xcd   : > { %2343 = vmatmul.msk.bf16.gmra.mxu0 %vm1059_vm0, %v1933_v54  ;;  %v2399_v54 = vld [vmem:[%s2701_s5 + $0x144] sm:$0xf] }
  0xce   : > { %1467 = vmatmul.bf16.gmra.mxu3 %v1949_v57  ;;  %v2920_v58 = vpop.f32.mrf.mxu2  ;;  %v1978_v57 = vld [vmem:[%s2701_s5 + $0x154] sm:$0xf0] }
  0xcf   : > { %v1981_v6 = vor.u32 %v2399_v54, %v1978_v57  ;;  %v1998_v54 = vld [vmem:[%s2701_s5 + $0x17c] sm:$0xf0]  ;;  %v2004_v57 = vld [vmem:[%s2701_s5 + $0x170] sm:$0xf] }
  0xd0   : > { %v2922_v59 = vpop.f32.mrf.mxu1 }
  0xd1   : > { %v2924_v60 = vpop.f32.mrf.mxu3 }
  0xd2   : > { %v2926_v61 = vpop.f32.mrf.mxu0 }
  0xd6   : > { %v2934_v4 = vpop.f32.mrf.mxu2 }
  0xd8   : > { %v2938_v9 = vpop.f32.mrf.mxu1 }
  0xd9   : > { %v2940_v11 = vpop.f32.mrf.mxu3 }
  0xda   : > { %3186 = vst [vmem:[#allocation2_spill] sm:$0xff] %v2940_v11  ;;  %v2942_v12 = vpop.f32.mrf.mxu0 }
  0xdb   : > { %1259 = vmatmul.bf16.gmra.mxu1 %v1941_v7  ;;  %1363 = vmatmul.bf16.gmra.mxu2 %v1945_v8  ;;  %v1985_v7 = vor.u32 %v2402_v63, %v1984_v62  ;;  %v2407_v62 = vld [vmem:[%s2701_s5 + $0x180] sm:$0xf0] }
  0xdd   : > { %2344 = vmatmul.msk.bf16.gmra.mxu0 %vm1059_vm0, %v1953_v10  ;;  %v1993_v10 = vor.u32 %v2403_v1, %v1992_v0  ;;  %v2408_v1 = vld [vmem:[%s2701_s5 + $0x188] sm:$0xf0] }
  0xde   : > { %1472 = vmatmul.bf16.gmra.mxu3 %v1969_v13  ;;  %v2945_v15 = vpop.f32.mrf.mxu2 }
  0xe0   : > { %v2947_v17 = vpop.f32.mrf.mxu1 }
  0xe1   : > { %v2949_v22 = vpop.f32.mrf.mxu3 }
  0xe2   : > { %3187 = vst [vmem:[#allocation3_spill] sm:$0xff] %v2949_v22  ;;  %v2951_v23 = vpop.f32.mrf.mxu0 }
  0xe6   : > { %v2959_v31 = vpop.f32.mrf.mxu2 }
  0xe8   : > { %v2963_v43 = vpop.f32.mrf.mxu1 }
  0xe9   : > { %v2965_v45 = vpop.f32.mrf.mxu3 }
  0xea   : > { %3188 = vst [vmem:[#allocation4_spill] sm:$0xff] %v2965_v45  ;;  %v2967_v46 = vpop.f32.mrf.mxu0 }
  0xeb   : > { %1264 = vmatmul.bf16.gmra.mxu1 %v1961_v37  ;;  %1368 = vmatmul.bf16.gmra.mxu2 %v1965_v42 }
  0xed   : > { %2345 = vmatmul.msk.bf16.gmra.mxu0 %vm1059_vm0, %v1973_v44  ;;  %v1129_v44 = vadd.f32 %v2989_v26, %v2876_v21 }
  0xee   : > { %1477 = vmatmul.bf16.gmra.mxu3 %v1989_v47  ;;  %v2970_v49 = vpop.f32.mrf.mxu2  ;;  %v2404_v47 = vld [vmem:[%s2701_s5 + $0x16c] sm:$0xf] }
  0xf0   : > { %v2972_v50 = vpop.f32.mrf.mxu1 }
  0xf1   : > { %v1438_v51 = vpop.f32.mrf.mxu3 }
  0xf2   : > { %v2974_v52 = vpop.f32.mrf.mxu0 }
  0xf6   : > { %v2982_v2 = vpop.f32.mrf.mxu2 }
  0xf8   : > { %v1230_v8 = vpop.f32.mrf.mxu1 }
  0xf9   : > { %v1440_v13 = vpop.f32.mrf.mxu3  ;;  %v1231_v30 = vadd.f32 %v1230_v8, %v1127_v27  ;;  %v2001_v8 = vor.u32 %v2404_v47, %v1998_v54  ;;  %v2013_v27 = vor.u32 %v2408_v1, %v2012_v16  ;;  %v2032_v1 = vld [vmem:[%s2701_s5 + $0x1a0] sm:$0xf] }
  0xfa   : > { %v1542_v24 = vpop.f32.mrf.mxu0 }
  0xfb   : > { %1269 = vmatmul.bf16.gmra.mxu1 %v1981_v6  ;;  %1373 = vmatmul.bf16.gmra.mxu2 %v1985_v7  ;;  %v2026_v6 = vld [vmem:[%s2701_s5 + $0x1ac] sm:$0xf0] }
  0xfc   : > { %v2029_v22 = vor.u32 %v2410_v5, %v2026_v6  ;;  %v2415_v6 = vld [vmem:[%s2701_s5 + $0x1c4] sm:$0xf] }
  0xfd   : > { %2346 = vmatmul.msk.bf16.gmra.mxu0 %vm1059_vm0, %v1993_v10  ;;  %v2005_v10 = vor.u32 %v2407_v62, %v2004_v57  ;;  %v2018_v57 = vld [vmem:[%s2701_s5 + $0x1a4] sm:$0xf0]  ;;  %v2024_v62 = vld [vmem:[%s2701_s5 + $0x198] sm:$0xf] }
  0xfe   : > { %1482 = vmatmul.bf16.gmra.mxu3 %v2009_v25  ;;  %v1334_v29 = vpop.f32.mrf.mxu2 }
  0xff   : > { %v1335_v37 = vadd.f32 %v1334_v29, %v1231_v30 }
 0x100   : > { %v1232_v32 = vpop.f32.mrf.mxu1 }
 0x101   : > { %v1443_v34 = vpop.f32.mrf.mxu3  ;;  %v1439_v63 = vadd.f32 %v1438_v51, %v1335_v37  ;;  %v1233_v0 = vadd.f32 %v1232_v32, %v1129_v44  ;;  %v1132_v51 = vadd.f32 %v2989_v26, %v2892_v36 }
 0x102   : > { %v1544_v42 = vpop.f32.mrf.mxu0 }
 0x103   : > { %v1543_v30 = vadd.f32 %v1542_v24, %v1439_v63  ;;  %v2412_v63 = vld [vmem:[%s2701_s5 + $0x1a8] sm:$0xf0] }
 0x105   : > { %v1637_v32 = vmax.f32 %v1543_v30, 0.0 }
 0x106   : > { %v1336_v3 = vpop.f32.mrf.mxu2 }
 0x107   : > { %v1337_v7 = vadd.f32 %v1336_v3, %v1233_v0  ;;  %v2413_v3 = vld [vmem:[%s2701_s5 + $0x1b0] sm:$0xf0] }
 0x108   : > { %v1235_v25 = vpop.f32.mrf.mxu1  ;;  %v2033_v30 = vor.u32 %v2413_v3, %v2032_v1  ;;  %v2052_v3 = vld [vmem:[%s2701_s5 + $0x1c8] sm:$0xf] }
 0x109   : > { %v1445_v29 = vpop.f32.mrf.mxu3  ;;  %v1441_v21 = vadd.f32 %v1440_v13, %v1337_v7  ;;  %v2046_v7 = vld [vmem:[%s2701_s5 + $0x1d4] sm:$0xf0] }
 0x10a   : > { %v1547_v45 = vpop.f32.mrf.mxu0 }
 0x10b   : > { %v1545_v11 = vadd.f32 %v1544_v42, %v1441_v21  ;;  %1274 = vmatmul.bf16.gmra.mxu1 %v2001_v8  ;;  %1378 = vmatmul.bf16.gmra.mxu2 %v2005_v10  ;;  %v1236_v42 = vadd.f32 %v1235_v25, %v1132_v51  ;;  %v2025_v25 = vor.u32 %v2412_v63, %v2024_v62  ;;  %v2038_v62 = vld [vmem:[%s2701_s5 + $0x1cc] sm:$0xf0]  ;;  %v2044_v63 = vld [vmem:[%s2701_s5 + $0x1c0] sm:$0xf] }
 0x10d   : > { %2347 = vmatmul.msk.bf16.gmra.mxu0 %vm1059_vm0, %v2013_v27  ;;  %v1638_v37 = vmax.f32 %v1545_v11, 0.0  ;;  %v1134_v11 = vadd.f32 %v2989_v26, %v2901_v41 }
 0x10e   : > { %1487 = vmatmul.bf16.gmra.mxu3 %v2029_v22  ;;  %v1339_v13 = vpop.f32.mrf.mxu2  ;;  %v2409_v22 = vld [vmem:[%s2701_s5 + $0x194] sm:$0xf] }
 0x10f   : > { %v2493_v24 = vpack.c.bf16 %v1638_v37, %v1637_v32  ;;  %v1340_v47 = vadd.f32 %v1339_v13, %v1236_v42  ;;  %v2021_v10 = vor.u32 %v2409_v22, %v2018_v57  ;;  %v2049_v37 = vor.u32 %v2415_v6, %v2046_v7  ;;  %v2420_v7 = vld [vmem:[%s2701_s5 + $0x1ec] sm:$0xf] }
 0x110   : > { %v1237_v44 = vpop.f32.mrf.mxu1  ;;  %v1139_v57 = vadd.f32 %v2989_v26, %v2926_v61 }
 0x111   : > { %v1448_v36 = vpop.f32.mrf.mxu3  ;;  %2494 = vst [vmem:[%s3011_s23] sm:$0xff] %v2493_v24   ;;  %v1444_v0 = vadd.f32 %v1443_v34, %v1340_v47  ;;  %v1238_v16 = vadd.f32 %v1237_v44, %v1134_v11  ;;  %v1137_v34 = vadd.f32 %v2989_v26, %v2917_v56  ;;  %v2414_v56 = vld [vmem:[%s2701_s5 + $0x1bc] sm:$0xf] }
 0x112   : > { %v1549_v54 = vpop.f32.mrf.mxu0 }
 0x113   : > { %v1548_v51 = vadd.f32 %v1547_v45, %v1444_v0  ;;  %v2417_v0 = vld [vmem:[%s2701_s5 + $0x1d0] sm:$0xf0] }
 0x115   : > { %v1639_v24 = vmax.f32 %v1548_v51, 0.0 }
 0x116   : > { %v1341_v5 = vpop.f32.mrf.mxu2 }
 0x117   : > { %v1342_v8 = vadd.f32 %v1341_v5, %v1238_v16  ;;  %v2418_v5 = vld [vmem:[%s2701_s5 + $0x1d8] sm:$0xf0] }
 0x118   : > { %v1240_v27 = vpop.f32.mrf.mxu1  ;;  %v2053_v51 = vor.u32 %v2418_v5, %v2052_v3  ;;  %v2423_v3 = vld [vmem:[%s2701_s5 + $0x200] sm:$0xf0] }
 0x119   : > { %v1450_v21 = vpop.f32.mrf.mxu3  ;;  %v1446_v32 = vadd.f32 %v1445_v29, %v1342_v8  ;;  %v1241_v44 = vadd.f32 %v1240_v27, %v1137_v34  ;;  %v2066_v8 = vld [vmem:[%s2701_s5 + $0x1fc] sm:$0xf0]  ;;  %v2045_v27 = vor.u32 %v2417_v0, %v2044_v63  ;;  %v2422_v63 = vld [vmem:[%s2701_s5 + $0x1f8] sm:$0xf0] }
 0x11a   : > { %v1552_v41 = vpop.f32.mrf.mxu0  ;;  %v2069_v34 = vor.u32 %v2420_v7, %v2066_v8  ;;  %v2086_v7 = vld [vmem:[%s2701_s5 + $0x224] sm:$0xf0] }
 0x11b   : > { %v1550_v13 = vadd.f32 %v1549_v54, %v1446_v32  ;;  %1279 = vmatmul.bf16.gmra.mxu1 %v2021_v10  ;;  %1383 = vmatmul.bf16.gmra.mxu2 %v2025_v25  ;;  %v2041_v25 = vor.u32 %v2414_v56, %v2038_v62  ;;  %v2058_v56 = vld [vmem:[%s2701_s5 + $0x1f4] sm:$0xf0]  ;;  %v2064_v62 = vld [vmem:[%s2701_s5 + $0x1e8] sm:$0xf] }
 0x11d   : > { %2348 = vmatmul.msk.bf16.gmra.mxu0 %vm1059_vm0, %v2033_v30  ;;  %v1640_v42 = vmax.f32 %v1550_v13, 0.0 }
 0x11e   : > { %1492 = vmatmul.bf16.gmra.mxu3 %v2049_v37  ;;  %v1344_v45 = vpop.f32.mrf.mxu2 }
 0x11f   : > { %v2498_v29 = vpack.c.bf16 %v1640_v42, %v1639_v24  ;;  %v1345_v11 = vadd.f32 %v1344_v45, %v1241_v44 }
 0x120   : > { %v1242_v47 = vpop.f32.mrf.mxu1 }
 0x121   : > { %v1453_v54 = vpop.f32.mrf.mxu3  ;;  %2585 = vst [vmem:[%s3011_s23 + $0x8] sm:$0xff] %v2498_v29   ;;  %v1449_v16 = vadd.f32 %v1448_v36, %v1345_v11  ;;  %v1243_v1 = vadd.f32 %v1242_v47, %v1139_v57  ;;  %v1142_v36 = vadd.f32 %v2989_v26, %v2942_v12  ;;  %v1144_v57 = vadd.f32 %v2989_v26, %v2951_v23  ;;  %v2419_v12 = vld [vmem:[%s2701_s5 + $0x1e4] sm:$0xf] }
 0x122   : > { %v1554_v22 = vpop.f32.mrf.mxu0 }
 0x123   : > { %v1553_v37 = vadd.f32 %v1552_v41, %v1449_v16 }
 0x125   : > { %v1641_v42 = vmax.f32 %v1553_v37, 0.0 }
 0x126   : > { %v1346_v6 = vpop.f32.mrf.mxu2 }
 0x127   : > { %v1347_v10 = vadd.f32 %v1346_v6, %v1243_v1  ;;  %v2072_v1 = vld [vmem:[%s2701_s5 + $0x1f0] sm:$0xf]  ;;  %v2425_v6 = vld [vmem:[%s2701_s5 + $0x214] sm:$0xf] }
 0x128   : > { %v1245_v30 = vpop.f32.mrf.mxu1 }
 0x129   : > { %v1455_v32 = vpop.f32.mrf.mxu3  ;;  %v1451_v13 = vadd.f32 %v1450_v21, %v1347_v10  ;;  %v1246_v29 = vadd.f32 %v1245_v30, %v1142_v36  ;;  %v2061_v10 = vor.u32 %v2419_v12, %v2058_v56  ;;  %v2073_v30 = vor.u32 %v2423_v3, %v2072_v1  ;;  %v2427_v12 = vld [vmem:[%s2701_s5 + $0x220] sm:$0xf0]  ;;  %v2430_v1 = vld [vmem:[%s2701_s5 + $0x23c] sm:$0xf]  ;;  %v2106_v3 = vld [vmem:[%s2701_s5 + $0x24c] sm:$0xf0] }
 0x12a   : > { %v1557_v61 = vpop.f32.mrf.mxu0 }
 0x12b   : > { %v1555_v24 = vadd.f32 %v1554_v22, %v1451_v13  ;;  %1284 = vmatmul.bf16.gmra.mxu1 %v2041_v25  ;;  %1388 = vmatmul.bf16.gmra.mxu2 %v2045_v27  ;;  %v2065_v25 = vor.u32 %v2422_v63, %v2064_v62  ;;  %v2092_v63 = vld [vmem:[%s2701_s5 + $0x218] sm:$0xf] }
 0x12d   : > { %2349 = vmatmul.msk.bf16.gmra.mxu0 %vm1059_vm0, %v2053_v51  ;;  %v1642_v45 = vmax.f32 %v1555_v24, 0.0 }
 0x12e   : > { %1497 = vmatmul.bf16.gmra.mxu3 %v2069_v34  ;;  %v1349_v21 = vpop.f32.mrf.mxu2  ;;  %v2089_v34 = vor.u32 %v2425_v6, %v2086_v7 }
 0x12f   : > { %v2503_v41 = vpack.c.bf16 %v1642_v45, %v1641_v42  ;;  %v1350_v11 = vadd.f32 %v1349_v21, %v1246_v29 }
 0x130   : > { %v1247_v44 = vpop.f32.mrf.mxu1 }
 0x131   : > { %v1458_v47 = vpop.f32.mrf.mxu3  ;;  %2586 = vst [vmem:[%s3011_s23 + $0x10] sm:$0xff] %v2503_v41   ;;  %v1454_v0 = vadd.f32 %v1453_v54, %v1350_v11  ;;  %v1248_v16 = vadd.f32 %v1247_v44, %v1144_v57  ;;  %v1147_v54 = vadd.f32 %v2989_v26, %v2967_v46  ;;  %v1149_v11 = vadd.f32 %v2989_v26, %v2974_v52  ;;  %v2424_v46 = vld [vmem:[%s2701_s5 + $0x20c] sm:$0xf]  ;;  %v2084_v57 = vld [vmem:[%s2701_s5 + $0x210] sm:$0xf] }
 0x132   : > { %v1559_v22 = vpop.f32.mrf.mxu0  ;;  %v2085_v7 = vor.u32 %v2427_v12, %v2084_v57  ;;  %v2433_v57 = vld [vmem:[%s2701_s5 + $0x250] sm:$0xf0] }
 0x133   : > { %v1558_v37 = vadd.f32 %v1557_v61, %v1454_v0  ;;  %v2428_v0 = vld [vmem:[%s2701_s5 + $0x228] sm:$0xf0] }
 0x135   : > { %v1643_v36 = vmax.f32 %v1558_v37, 0.0  ;;  %v2109_v37 = vor.u32 %v2430_v1, %v2106_v3 }
 0x136   : > { %v1351_v5 = vpop.f32.mrf.mxu2 }
 0x137   : > { %v1352_v8 = vadd.f32 %v1351_v5, %v1248_v16 }
 0x138   : > { %v1250_v27 = vpop.f32.mrf.mxu1 }
 0x139   : > { %v1460_v51 = vpop.f32.mrf.mxu3  ;;  %v1456_v13 = vadd.f32 %v1455_v32, %v1352_v8  ;;  %v1251_v45 = vadd.f32 %v1250_v27, %v1147_v54 }
 0x13a   : > { %v1562_v23 = vpop.f32.mrf.mxu0 }
 0x13b   : > { %v1560_v24 = vadd.f32 %v1559_v22, %v1456_v13  ;;  %1289 = vmatmul.bf16.gmra.mxu1 %v2061_v10  ;;  %1393 = vmatmul.bf16.gmra.mxu2 %v2065_v25  ;;  %v2078_v22 = vld [vmem:[%s2701_s5 + $0x21c] sm:$0xf0]  ;;  %v2093_v10 = vor.u32 %v2428_v0, %v2092_v63 }
 0x13c   : > { %v2081_v6 = vor.u32 %v2424_v46, %v2078_v22  ;;  %v2112_v22 = vld [vmem:[%s2701_s5 + $0x240] sm:$0xf] }
 0x13d   : > { %2350 = vmatmul.msk.bf16.gmra.mxu0 %vm1059_vm0, %v2073_v30  ;;  %v1644_v42 = vmax.f32 %v1560_v24, 0.0  ;;  %v2113_v3 = vor.u32 %v2433_v57, %v2112_v22 }
 0x13e   : > { %1502 = vmatmul.bf16.gmra.mxu3 %v2089_v34  ;;  %v1354_v32 = vpop.f32.mrf.mxu2 }
 0x13f   : > { %v2508_v61 = vpack.c.bf16 %v1644_v42, %v1643_v36  ;;  %v1355_v29 = vadd.f32 %v1354_v32, %v1251_v45  ;;  %v1154_v45 = vadd.f32 %v2989_v26, %v2872_v19 }
 0x140   : > { %v1252_v21 = vpop.f32.mrf.mxu1 }
 0x141   : > { %v1463_v41 = vpop.f32.mrf.mxu3  ;;  %2587 = vst [vmem:[%s3011_s23 + $0x18] sm:$0xff] %v2508_v61   ;;  %v1459_v56 = vadd.f32 %v1458_v47, %v1355_v29  ;;  %v1253_v62 = vadd.f32 %v1252_v21, %v1149_v11  ;;  %v1152_v47 = vadd.f32 %v2989_v26, %v2865_v14  ;;  %v2429_v14 = vld [vmem:[%s2701_s5 + $0x234] sm:$0xf]  ;;  %v2098_v21 = vld [vmem:[%s2701_s5 + $0x244] sm:$0xf0] }
 0x142   : > { %v1564_v44 = vpop.f32.mrf.mxu0  ;;  %v2104_v29 = vld [vmem:[%s2701_s5 + $0x238] sm:$0xf]  ;;  %v2101_v0 = vor.u32 %v2429_v14, %v2098_v21  ;;  %v2438_v14 = vld [vmem:[%s2701_s5 + $0x278] sm:$0xf0] }
 0x143   : > { %v1563_v27 = vadd.f32 %v1562_v23, %v1459_v56  ;;  %v2435_v56 = vld [vmem:[%s2701_s5 + $0x264] sm:$0xf] }
 0x145   : > { %v1645_v34 = vmax.f32 %v1563_v27, 0.0 }
 0x146   : > { %v1356_v16 = vpop.f32.mrf.mxu2 }
 0x147   : > { %v1357_v5 = vadd.f32 %v1356_v16, %v1253_v62  ;;  %v2126_v62 = vld [vmem:[%s2701_s5 + $0x274] sm:$0xf0] }
 0x148   : > { %v1255_v8 = vpop.f32.mrf.mxu1 }
 0x149   : > { %v1465_v25 = vpop.f32.mrf.mxu3  ;;  %v1461_v30 = vadd.f32 %v1460_v51, %v1357_v5  ;;  %v1256_v54 = vadd.f32 %v1255_v8, %v1152_v47  ;;  %v2129_v8 = vor.u32 %v2435_v56, %v2126_v62 }
 0x14a   : > { %v1567_v52 = vpop.f32.mrf.mxu0 }
 0x14b   : > { %v1565_v13 = vadd.f32 %v1564_v44, %v1461_v30  ;;  %1294 = vmatmul.bf16.gmra.mxu1 %v2081_v6  ;;  %1398 = vmatmul.bf16.gmra.mxu2 %v2085_v7  ;;  %v2432_v44 = vld [vmem:[%s2701_s5 + $0x248] sm:$0xf0] }
 0x14c   : > { %v2105_v16 = vor.u32 %v2432_v44, %v2104_v29  ;;  %v2440_v29 = vld [vmem:[%s2701_s5 + $0x28c] sm:$0xf]  ;;  %v2146_v44 = vld [vmem:[%s2701_s5 + $0x29c] sm:$0xf0] }
 0x14d   : > { %2351 = vmatmul.msk.bf16.gmra.mxu0 %vm1059_vm0, %v2093_v10  ;;  %v1646_v24 = vmax.f32 %v1565_v13, 0.0 }
 0x14e   : > { %1507 = vmatmul.bf16.gmra.mxu3 %v2109_v37  ;;  %v1359_v51 = vpop.f32.mrf.mxu2 }
 0x14f   : > { %v2513_v23 = vpack.c.bf16 %v1646_v24, %v1645_v34  ;;  %v1360_v32 = vadd.f32 %v1359_v51, %v1256_v54  ;;  %v1159_v51 = vadd.f32 %v2989_v26, %v2897_v39  ;;  %v2124_v54 = vld [vmem:[%s2701_s5 + $0x260] sm:$0xf] }
 0x150   : > { %v1257_v36 = vpop.f32.mrf.mxu1 }
 0x151   : > { %v1468_v42 = vpop.f32.mrf.mxu3  ;;  %2588 = vst [vmem:[%s3011_s23 + $0x20] sm:$0xff] %v2513_v23   ;;  %v1464_v11 = vadd.f32 %v1463_v41, %v1360_v32  ;;  %v1258_v46 = vadd.f32 %v1257_v36, %v1154_v45  ;;  %v1157_v41 = vadd.f32 %v2989_v26, %v2888_v33  ;;  %v2434_v33 = vld [vmem:[%s2701_s5 + $0x25c] sm:$0xf]  ;;  %v2118_v23 = vld [vmem:[%s2701_s5 + $0x26c] sm:$0xf0] }
 0x152   : > { %v1569_v61 = vpop.f32.mrf.mxu0  ;;  %v2437_v36 = vld [vmem:[%s2701_s5 + $0x270] sm:$0xf0]  ;;  %v2132_v45 = vld [vmem:[%s2701_s5 + $0x268] sm:$0xf] }
 0x153   : > { %v1568_v6 = vadd.f32 %v1567_v52, %v1464_v11  ;;  %v2125_v22 = vor.u32 %v2437_v36, %v2124_v54 }
 0x155   : > { %v1647_v27 = vmax.f32 %v1568_v6, 0.0 }
 0x156   : > { %v1361_v12 = vpop.f32.mrf.mxu2 }
 0x157   : > { %v1362_v63 = vadd.f32 %v1361_v12, %v1258_v46  ;;  %v2121_v46 = vor.u32 %v2434_v33, %v2118_v23  ;;  %v2133_v12 = vor.u32 %v2438_v14, %v2132_v45  ;;  %v2445_v33 = vld [vmem:[%s2701_s5 + $0x2b4] sm:$0xf]  ;;  %v2166_v23 = vld [vmem:[%s2701_s5 + $0x2c4] sm:$0xf0] }
 0x158   : > { %v1260_v1 = vpop.f32.mrf.mxu1 }
 0x159   : > { %v1470_v5 = vpop.f32.mrf.mxu3  ;;  %v1466_v7 = vadd.f32 %v1465_v25, %v1362_v63  ;;  %v1261_v37 = vadd.f32 %v1260_v1, %v1157_v41 }
 0x15a   : > { %v1572_v19 = vpop.f32.mrf.mxu0 }
 0x15b   : > { %v1570_v10 = vadd.f32 %v1569_v61, %v1466_v7  ;;  %1299 = vmatmul.bf16.gmra.mxu1 %v2101_v0  ;;  %1403 = vmatmul.bf16.gmra.mxu2 %v2105_v16  ;;  %v2149_v0 = vor.u32 %v2440_v29, %v2146_v44  ;;  %v2169_v44 = vor.u32 %v2445_v33, %v2166_v23 }
 0x15d   : > { %2352 = vmatmul.msk.bf16.gmra.mxu0 %vm1059_vm0, %v2113_v3  ;;  %v1648_v30 = vmax.f32 %v1570_v10, 0.0 }
 0x15e   : > { %1512 = vmatmul.bf16.gmra.mxu3 %v2129_v8  ;;  %v1364_v25 = vpop.f32.mrf.mxu2 }
 0x15f   : > { %v2518_v52 = vpack.c.bf16 %v1648_v30, %v1647_v27  ;;  %v1365_v34 = vadd.f32 %v1364_v25, %v1261_v37  ;;  %v1164_v27 = vadd.f32 %v2989_v26, %v2922_v59  ;;  %v2138_v30 = vld [vmem:[%s2701_s5 + $0x294] sm:$0xf0]  ;;  %v2144_v25 = vld [vmem:[%s2701_s5 + $0x288] sm:$0xf] }
 0x160   : > { %v1262_v13 = vpop.f32.mrf.mxu1 }
 0x161   : > { %v1473_v47 = vpop.f32.mrf.mxu3  ;;  %2589 = vst [vmem:[%s3011_s23 + $0x28] sm:$0xff] %v2518_v52   ;;  %v1469_v32 = vadd.f32 %v1468_v42, %v1365_v34  ;;  %v1263_v61 = vadd.f32 %v1262_v13, %v1159_v51  ;;  %v1162_v42 = vadd.f32 %v2989_v26, %v2913_v53  ;;  %v2439_v53 = vld [vmem:[%s2701_s5 + $0x284] sm:$0xf]  ;;  %v2442_v52 = vld [vmem:[%s2701_s5 + $0x298] sm:$0xf0] }
 0x162   : > { %v1574_v24 = vpop.f32.mrf.mxu0  ;;  %v2152_v34 = vld [vmem:[%s2701_s5 + $0x290] sm:$0xf]  ;;  %v2141_v36 = vor.u32 %v2439_v53, %v2138_v30 }
 0x163   : > { %v1573_v62 = vadd.f32 %v1572_v19, %v1469_v32  ;;  %v2145_v32 = vor.u32 %v2442_v52, %v2144_v25 }
 0x165   : > { %v1649_v1 = vmax.f32 %v1573_v62, 0.0 }
 0x166   : > { %v1366_v21 = vpop.f32.mrf.mxu2 }
 0x167   : > { %v1367_v11 = vadd.f32 %v1366_v21, %v1263_v61 }
 0x168   : > { %v1265_v57 = vpop.f32.mrf.mxu1 }
 0x169   : > { %v1475_v56 = vpop.f32.mrf.mxu3  ;;  %v1471_v63 = vadd.f32 %v1470_v5, %v1367_v11  ;;  %v1266_v7 = vadd.f32 %v1265_v57, %v1162_v42  ;;  %v2158_v42 = vld [vmem:[%s2701_s5 + $0x2bc] sm:$0xf0] }
 0x16a   : > { %v1577_v39 = vpop.f32.mrf.mxu0 }
 0x16b   : > { %v1575_v16 = vadd.f32 %v1574_v24, %v1471_v63  ;;  %1304 = vmatmul.bf16.gmra.mxu1 %v2121_v46  ;;  %1408 = vmatmul.bf16.gmra.mxu2 %v2125_v22  ;;  %v2443_v24 = vld [vmem:[%s2701_s5 + $0x2a0] sm:$0xf0] }
 0x16c   : > { %v2153_v45 = vor.u32 %v2443_v24, %v2152_v34 }
 0x16d   : > { %2353 = vmatmul.msk.bf16.gmra.mxu0 %vm1059_vm0, %v2133_v12  ;;  %v1650_v3 = vmax.f32 %v1575_v16, 0.0  ;;  %v1169_v16 = vadd.f32 %v2989_v26, %v2947_v17 }
 0x16e   : > { %1517 = vmatmul.bf16.gmra.mxu3 %v2149_v0  ;;  %v1369_v5 = vpop.f32.mrf.mxu2 }
 0x16f   : > { %v2523_v6 = vpack.c.bf16 %v1650_v3, %v1649_v1  ;;  %v1370_v10 = vadd.f32 %v1369_v5, %v1266_v7  ;;  %v2164_v1 = vld [vmem:[%s2701_s5 + $0x2b0] sm:$0xf]  ;;  %v2447_v3 = vld [vmem:[%s2701_s5 + $0x2c0] sm:$0xf0]  ;;  %v2172_v7 = vld [vmem:[%s2701_s5 + $0x2b8] sm:$0xf] }
 0x170   : > { %v1267_v19 = vpop.f32.mrf.mxu1  ;;  %v2165_v25 = vor.u32 %v2447_v3, %v2164_v1 }
 0x171   : > { %v1478_v8 = vpop.f32.mrf.mxu3  ;;  %2590 = vst [vmem:[%s3011_s23 + $0x30] sm:$0xff] %v2523_v6   ;;  %v1474_v37 = vadd.f32 %v1473_v47, %v1370_v10  ;;  %v1268_v13 = vadd.f32 %v1267_v19, %v1164_v27  ;;  %v1167_v47 = vadd.f32 %v2989_v26, %v2938_v9  ;;  %v2444_v9 = vld [vmem:[%s2701_s5 + $0x2ac] sm:$0xf]  ;;  %v2186_v27 = vld [vmem:[%s2701_s5 + $0x2ec] sm:$0xf0] }
 0x172   : > { %v1579_v41 = vpop.f32.mrf.mxu0  ;;  %v2448_v19 = vld [vmem:[%s2701_s5 + $0x2c8] sm:$0xf0]  ;;  %v2161_v30 = vor.u32 %v2444_v9, %v2158_v42 }
 0x173   : > { %v1578_v21 = vadd.f32 %v1577_v39, %v1474_v37  ;;  %v2173_v37 = vor.u32 %v2448_v19, %v2172_v7 }
 0x175   : > { %v1651_v46 = vmax.f32 %v1578_v21, 0.0 }
 0x176   : > { %v1371_v51 = vpop.f32.mrf.mxu2 }
 0x177   : > { %v1372_v54 = vadd.f32 %v1371_v51, %v1268_v13 }
 0x178   : > { %v1270_v61 = vpop.f32.mrf.mxu1 }
 0x179   : > { %v1480_v14 = vpop.f32.mrf.mxu3  ;;  %v1476_v29 = vadd.f32 %v1475_v56, %v1372_v54  ;;  %v1271_v56 = vadd.f32 %v1270_v61, %v1167_v47  ;;  %v2452_v47 = vld [vmem:[%s2701_s5 + $0x2e8] sm:$0xf0] }
 0x17a   : > { %v1582_v59 = vpop.f32.mrf.mxu0 }
 0x17b   : > { %v1580_v11 = vadd.f32 %v1579_v41, %v1476_v29  ;;  %1309 = vmatmul.bf16.gmra.mxu1 %v2141_v36  ;;  %1413 = vmatmul.bf16.gmra.mxu2 %v2145_v32  ;;  %v2450_v41 = vld [vmem:[%s2701_s5 + $0x2dc] sm:$0xf] }
 0x17c   : > { %v2189_v51 = vor.u32 %v2450_v41, %v2186_v27 }
 0x17d   : > { %2354 = vmatmul.msk.bf16.gmra.mxu0 %vm1059_vm0, %v2153_v45  ;;  %v1652_v22 = vmax.f32 %v1580_v11, 0.0  ;;  %v2178_v11 = vld [vmem:[%s2701_s5 + $0x2e4] sm:$0xf0] }
 0x17e   : > { %1522 = vmatmul.bf16.gmra.mxu3 %v2169_v44  ;;  %v1374_v57 = vpop.f32.mrf.mxu2  ;;  %v2449_v44 = vld [vmem:[%s2701_s5 + $0x2d4] sm:$0xf] }
 0x17f   : > { %v2528_v12 = vpack.c.bf16 %v1652_v22, %v1651_v46  ;;  %v1375_v39 = vadd.f32 %v1374_v57, %v1271_v56  ;;  %v2192_v57 = vld [vmem:[%s2701_s5 + $0x2e0] sm:$0xf] }
 0x180   : > { %v1272_v62 = vpop.f32.mrf.mxu1 }
 0x181   : > { %v1483_v63 = vpop.f32.mrf.mxu3  ;;  %2591 = vst [vmem:[%s3011_s23 + $0x38] sm:$0xff] %v2528_v12   ;;  %v1479_v5 = vadd.f32 %v1478_v8, %v1375_v39  ;;  %v1273_v6 = vadd.f32 %v1272_v62, %v1169_v16  ;;  %v1172_v8 = vadd.f32 %v2989_v26, %v2963_v43  ;;  %v2184_v43 = vld [vmem:[%s2701_s5 + $0x2d8] sm:$0xf]  ;;  %v2453_v12 = vld [vmem:[%s2701_s5 + $0x2f0] sm:$0xf0]  ;;  %v2181_v39 = vor.u32 %v2449_v44, %v2178_v11 }
 0x182   : > { %v1584_v0 = vpop.f32.mrf.mxu0  ;;  %v2193_v9 = vor.u32 %v2453_v12, %v2192_v57  ;;  %v1184_v44 = vadd.f32 %v2989_v26, %v2909_v48 }
 0x183   : > { %v1583_v34 = vadd.f32 %v1582_v59, %v1479_v5  ;;  %v1174_v59 = vadd.f32 %v2989_v26, %v2972_v50 }
 0x185   : > { %v1653_v23 = vmax.f32 %v1583_v34, 0.0 }
 0x186   : > { %v1376_v10 = vpop.f32.mrf.mxu2 }
 0x187   : > { %v1377_v53 = vadd.f32 %v1376_v10, %v1273_v6 }
 0x188   : > { %v1275_v52 = vpop.f32.mrf.mxu1 }
 0x189   : > { %v1485_v13 = vpop.f32.mrf.mxu3  ;;  %v1481_v24 = vadd.f32 %v1480_v14, %v1377_v53  ;;  %v1276_v61 = vadd.f32 %v1275_v52, %v1172_v8  ;;  %v1179_v52 = vadd.f32 %v2989_v26, %v2884_v28 }
 0x18a   : > { %v1587_v17 = vpop.f32.mrf.mxu0 }
 0x18b   : > { %v1585_v33 = vadd.f32 %v1584_v0, %v1481_v24  ;;  %1314 = vmatmul.bf16.gmra.mxu1 %v2161_v30  ;;  %1418 = vmatmul.bf16.gmra.mxu2 %v2165_v25  ;;  %v2185_v0 = vor.u32 %v2452_v47, %v2184_v43 }
 0x18d   : > { %2355 = vmatmul.msk.bf16.gmra.mxu0 %vm1059_vm0, %v2173_v37  ;;  %v1654_v54 = vmax.f32 %v1585_v33, 0.0 }
 0x18e   : > { %1527 = vmatmul.bf16.gmra.mxu3 %v2189_v51  ;;  %v1379_v36 = vpop.f32.mrf.mxu2 }
 0x18f   : > { %v2533_v32 = vpack.c.bf16 %v1654_v54, %v1653_v23  ;;  %v1380_v21 = vadd.f32 %v1379_v36, %v1276_v61  ;;  %v1182_v54 = vadd.f32 %v2989_v26, %v2895_v38 }
 0x190   : > { %v1277_v45 = vpop.f32.mrf.mxu1 }
 0x191   : > { %v1488_v14 = vpop.f32.mrf.mxu3  ;;  %2592 = vst [vmem:[%s3011_s23 + $0x40] sm:$0xff] %v2533_v32   ;;  %v1484_v46 = vadd.f32 %v1483_v63, %v1380_v21  ;;  %v1278_v22 = vadd.f32 %v1277_v45, %v1174_v59  ;;  %v1177_v63 = vadd.f32 %v2989_v26, %v2870_v18 }
 0x192   : > { %v1589_v29 = vpop.f32.mrf.mxu0 }
 0x193   : > { %v1588_v1 = vadd.f32 %v1587_v17, %v1484_v46 }
 0x195   : > { %v1655_v6 = vmax.f32 %v1588_v1, 0.0 }
 0x196   : > { %v1381_v56 = vpop.f32.mrf.mxu2 }
 0x197   : > { %v1382_v62 = vadd.f32 %v1381_v56, %v1278_v22 }
 0x198   : > { %v1280_v16 = vpop.f32.mrf.mxu1 }
 0x199   : > { %v1490_v42 = vpop.f32.mrf.mxu3  ;;  %v1486_v3 = vadd.f32 %v1485_v13, %v1382_v62  ;;  %v1281_v41 = vadd.f32 %v1280_v16, %v1177_v63  ;;  %v1189_v63 = vadd.f32 %v2989_v26, %v2934_v4 }
 0x19a   : > { %v1592_v5 = vpop.f32.mrf.mxu0 }
 0x19b   : > { %v1590_v50 = vadd.f32 %v1589_v29, %v1486_v3  ;;  %1319 = vmatmul.bf16.gmra.mxu1 %v2181_v39  ;;  %1423 = vmatmul.bf16.gmra.mxu2 %v2185_v0  ;;  %v1187_v39 = vadd.f32 %v2989_v26, %v2920_v58 }
 0x19d   : > { %2356 = vmatmul.msk.bf16.gmra.mxu0 %vm1059_vm0, %v2193_v9  ;;  %v1656_v7 = vmax.f32 %v1590_v50, 0.0 }
 0x19e   : > { %v1384_v19 = vpop.f32.mrf.mxu2 }
 0x19f   : > { %v2538_v10 = vpack.c.bf16 %v1656_v7, %v1655_v6  ;;  %v1385_v30 = vadd.f32 %v1384_v19, %v1281_v41 }
 0x1a0   : > { %v1282_v27 = vpop.f32.mrf.mxu1 }
 0x1a1   : > { %v1493_v53 = vpop.f32.mrf.mxu3  ;;  %2593 = vst [vmem:[%s3011_s23 + $0x48] sm:$0xff] %v2538_v10   ;;  %v1489_v37 = vadd.f32 %v1488_v14, %v1385_v30  ;;  %v1283_v13 = vadd.f32 %v1282_v27, %v1179_v52  ;;  %v1192_v52 = vadd.f32 %v2989_v26, %v2945_v15 }
 0x1a2   : > { %v1594_v25 = vpop.f32.mrf.mxu0 }
 0x1a3   : > { %v1593_v51 = vadd.f32 %v1592_v5, %v1489_v37 }
 0x1a5   : > { %v1657_v36 = vmax.f32 %v1593_v51, 0.0 }
 0x1a6   : > { %v1386_v34 = vpop.f32.mrf.mxu2 }
 0x1a7   : > { %v1387_v24 = vadd.f32 %v1386_v34, %v1283_v13 }
 0x1a8   : > { %v1285_v17 = vpop.f32.mrf.mxu1 }
 0x1a9   : > { %v1495_v18 = vpop.f32.mrf.mxu3  ;;  %v1491_v33 = vadd.f32 %v1490_v42, %v1387_v24  ;;  %v1286_v21 = vadd.f32 %v1285_v17, %v1182_v54 }
 0x1aa   : > { %v1597_v8 = vpop.f32.mrf.mxu0 }
 0x1ab   : > { %v1595_v23 = vadd.f32 %v1594_v25, %v1491_v33 }
 0x1ad   : > { %v1658_v32 = vmax.f32 %v1595_v23, 0.0 }
 0x1ae   : > { %v1389_v61 = vpop.f32.mrf.mxu2 }
 0x1af   : > { %v2543_v45 = vpack.c.bf16 %v1658_v32, %v1657_v36  ;;  %v1390_v29 = vadd.f32 %v1389_v61, %v1286_v21 }
 0x1b0   : > { %v1287_v28 = vpop.f32.mrf.mxu1 }
 0x1b1   : > { %v1498_v14 = vpop.f32.mrf.mxu3  ;;  %2594 = vst [vmem:[%s3011_s23 + $0x50] sm:$0xff] %v2543_v45   ;;  %v1494_v11 = vadd.f32 %v1493_v53, %v1390_v29  ;;  %v1288_v43 = vadd.f32 %v1287_v28, %v1184_v44  ;;  %v1197_v29 = vadd.f32 %v2989_v26, %v2970_v49 }
 0x1b2   : > { %v1599_v59 = vpop.f32.mrf.mxu0 }
 0x1b3   : > { %v1598_v57 = vadd.f32 %v1597_v8, %v1494_v11  ;;  %v1194_v8 = vadd.f32 %v2989_v26, %v2959_v31 }
 0x1b5   : > { %v1659_v0 = vmax.f32 %v1598_v57, 0.0  ;;  %v1199_v57 = vadd.f32 %v2989_v26, %v2982_v2 }
 0x1b6   : > { %v1391_v47 = vpop.f32.mrf.mxu2 }
 0x1b7   : > { %v1392_v46 = vadd.f32 %v1391_v47, %v1288_v43 }
 0x1b8   : > { %v1290_v22 = vpop.f32.mrf.mxu1 }
 0x1b9   : > { %v1500_v38 = vpop.f32.mrf.mxu3  ;;  %v1496_v12 = vadd.f32 %v1495_v18, %v1392_v46  ;;  %v1291_v1 = vadd.f32 %v1290_v22, %v1187_v39 }
 0x1ba   : > { %v1602_v56 = vpop.f32.mrf.mxu0 }
 0x1bb   : > { %v1600_v62 = vadd.f32 %v1599_v59, %v1496_v12 }
 0x1bd   : > { %v1660_v16 = vmax.f32 %v1600_v62, 0.0 }
 0x1be   : > { %v1394_v9 = vpop.f32.mrf.mxu2 }
 0x1bf   : > { %v2548_v42 = vpack.c.bf16 %v1660_v16, %v1659_v0  ;;  %v1395_v5 = vadd.f32 %v1394_v9, %v1291_v1 }
 0x1c0   : > { %v1292_v48 = vpop.f32.mrf.mxu1 }
 0x1c1   : > { %v1503_v3 = vpop.f32.mrf.mxu3  ;;  %2595 = vst [vmem:[%s3011_s23 + $0x58] sm:$0xff] %v2548_v42   ;;  %v1499_v6 = vadd.f32 %v1498_v14, %v1395_v5  ;;  %v1293_v7 = vadd.f32 %v1292_v48, %v1189_v63  ;;  %v1202_v48 = vadd.f32 %v2989_v26, %v2874_v20 }
 0x1c2   : > { %v1604_v50 = vpop.f32.mrf.mxu0 }
 0x1c3   : > { %v1603_v27 = vadd.f32 %v1602_v56, %v1499_v6 }
 0x1c5   : > { %v1661_v37 = vmax.f32 %v1603_v27, 0.0 }
 0x1c6   : > { %v1396_v19 = vpop.f32.mrf.mxu2 }
 0x1c7   : > { %v1397_v10 = vadd.f32 %v1396_v19, %v1293_v7 }
 0x1c8   : > { %v1295_v41 = vpop.f32.mrf.mxu1 }
 0x1c9   : > { %v1505_v58 = vpop.f32.mrf.mxu3  ;;  %v1501_v53 = vadd.f32 %v1500_v38, %v1397_v10  ;;  %v1296_v17 = vadd.f32 %v1295_v41, %v1192_v52  ;;  %v1204_v10 = vadd.f32 %v2989_v26, %v2890_v35 }
 0x1ca   : > { %v1607_v30 = vpop.f32.mrf.mxu0 }
 0x1cb   : > { %v1605_v25 = vadd.f32 %v1604_v50, %v1501_v53 }
 0x1cd   : > { %v1662_v13 = vmax.f32 %v1605_v25, 0.0 }
 0x1ce   : > { %v1399_v34 = vpop.f32.mrf.mxu2 }
 0x1cf   : > { %v2553_v24 = vpack.c.bf16 %v1662_v13, %v1661_v37  ;;  %v1400_v51 = vadd.f32 %v1399_v34, %v1296_v17  ;;  %v1207_v34 = vadd.f32 %v2989_v26, %v2899_v40 }
 0x1d0   : > { %v1297_v4 = vpop.f32.mrf.mxu1 }
 0x1d1   : > { %v1508_v18 = vpop.f32.mrf.mxu3  ;;  %2596 = vst [vmem:[%s3011_s23 + $0x60] sm:$0xff] %v2553_v24   ;;  %v1504_v23 = vadd.f32 %v1503_v3, %v1400_v51  ;;  %v1298_v54 = vadd.f32 %v1297_v4, %v1194_v8 }
 0x1d2   : > { %v1609_v33 = vpop.f32.mrf.mxu0 }
 0x1d3   : > { %v1608_v45 = vadd.f32 %v1607_v30, %v1504_v23 }
 0x1d5   : > { %v1663_v59 = vmax.f32 %v1608_v45, 0.0 }
 0x1d6   : > { %v1401_v36 = vpop.f32.mrf.mxu2 }
 0x1d7   : > { %v1402_v32 = vadd.f32 %v1401_v36, %v1298_v54  ;;  %v2637_v54 = vld [vmem:[%s3184_s2] ss:$0 sm:$0xff] }
 0x1d8   : > { %v1300_v61 = vpop.f32.mrf.mxu1  ;;  %v1209_v36 = vadd.f32 %v2637_v54, %v2915_v55 }
 0x1d9   : > { %v1510_v15 = vpop.f32.mrf.mxu3  ;;  %v1506_v21 = vadd.f32 %v1505_v58, %v1402_v32  ;;  %v1301_v47 = vadd.f32 %v1300_v61, %v1197_v29 }
 0x1da   : > { %v1612_v28 = vpop.f32.mrf.mxu0 }
 0x1db   : > { %v1610_v14 = vadd.f32 %v1609_v33, %v1506_v21 }
 0x1dd   : > { %v1664_v44 = vmax.f32 %v1610_v14, 0.0 }
 0x1de   : > { %v1404_v11 = vpop.f32.mrf.mxu2 }
 0x1df   : > { %v2558_v43 = vpack.c.bf16 %v1664_v44, %v1663_v59  ;;  %v1405_v46 = vadd.f32 %v1404_v11, %v1301_v47  ;;  %v1212_v59 = vadd.f32 %v2637_v54, %v2924_v60 }
 0x1e0   : > { %v1302_v31 = vpop.f32.mrf.mxu1 }
 0x1e1   : > { %2597 = vst [vmem:[%s3011_s23 + $0x68] sm:$0xff] %v2558_v43   ;;  %v1513_v38 = vpop.f32.mrf.mxu3  ;;  %v1509_v12 = vadd.f32 %v1508_v18, %v1405_v46  ;;  %v1303_v56 = vadd.f32 %v1302_v31, %v1199_v57 }
 0x1e2   : > { %v1614_v22 = vpop.f32.mrf.mxu0 }
 0x1e3   : > { %v1613_v49 = vadd.f32 %v1612_v28, %v1509_v12 }
 0x1e5   : > { %v1665_v3 = vmax.f32 %v1613_v49, 0.0 }
 0x1e6   : > { %v1406_v62 = vpop.f32.mrf.mxu2 }
 0x1e7   : > { %v1407_v39 = vadd.f32 %v1406_v62, %v1303_v56 }
 0x1e8   : > { %v1305_v0 = vpop.f32.mrf.mxu1 }
 0x1e9   : > { %v1511_v16 = vadd.f32 %v1510_v15, %v1407_v39  ;;  %v1515_v1 = vpop.f32.mrf.mxu3  ;;  %v1306_v6 = vadd.f32 %v1305_v0, %v1202_v48 }
 0x1ea   : > { %v1617_v9 = vpop.f32.mrf.mxu0 }
 0x1eb   : > { %v1615_v42 = vadd.f32 %v1614_v22, %v1511_v16  ;;  %v3189_v22 = vld [vmem:[#allocation2_spill] sm:$0xff] }
 0x1ed   : > { %v1666_v5 = vmax.f32 %v1615_v42, 0.0  ;;  %v3190_v42 = vld [vmem:[#allocation3_spill] sm:$0xff] }
 0x1ee   : > { %v1409_v50 = vpop.f32.mrf.mxu2 }
 0x1ef   : > { %v2563_v63 = vpack.c.bf16 %v1666_v5, %v1665_v3  ;;  %v1410_v7 = vadd.f32 %v1409_v50, %v1306_v6 }
 0x1f0   : > { %v1307_v2 = vpop.f32.mrf.mxu1 }
 0x1f1   : > { %2598 = vst [vmem:[%s3011_s23 + $0x70] sm:$0xff] %v2563_v63   ;;  %v1514_v41 = vadd.f32 %v1513_v38, %v1410_v7  ;;  %v1308_v58 = vadd.f32 %v1307_v2, %v1204_v10  ;;  %v1518_v53 = vpop.f32.mrf.mxu3  ;;  %v1214_v38 = vadd.f32 %v2637_v54, %v3189_v22  ;;  %v3191_v10 = vld [vmem:[#allocation4_spill] sm:$0xff] }
 0x1f2   : > { %v1619_v19 = vpop.f32.mrf.mxu0 }
 0x1f3   : > { %v1618_v20 = vadd.f32 %v1617_v9, %v1514_v41  ;;  %v1219_v41 = vadd.f32 %v2637_v54, %v3191_v10 }
 0x1f5   : > { %v1667_v24 = vmax.f32 %v1618_v20, 0.0 }
 0x1f6   : > { %v1411_v27 = vpop.f32.mrf.mxu2 }
 0x1f7   : > { %v1412_v30 = vadd.f32 %v1411_v27, %v1308_v58 }
 0x1f8   : > { %v1310_v25 = vpop.f32.mrf.mxu1 }
 0x1f9   : > { %v1516_v52 = vadd.f32 %v1515_v1, %v1412_v30  ;;  %v1311_v51 = vadd.f32 %v1310_v25, %v1207_v34  ;;  %v1520_v33 = vpop.f32.mrf.mxu3  ;;  %v1217_v1 = vadd.f32 %v2637_v54, %v3190_v42 }
 0x1fa   : > { %v1622_v37 = vpop.f32.mrf.mxu0 }
 0x1fb   : > { %v1620_v13 = vadd.f32 %v1619_v19, %v1516_v52 }
 0x1fd   : > { %v1668_v17 = vmax.f32 %v1620_v13, 0.0 }
 0x1fe   : > { %v1414_v4 = vpop.f32.mrf.mxu2 }
 0x1ff   : > { %v2568_v18 = vpack.c.bf16 %v1668_v17, %v1667_v24  ;;  %v1415_v8 = vadd.f32 %v1414_v4, %v1311_v51 }
 0x200   : > { %v1312_v35 = vpop.f32.mrf.mxu1 }
 0x201   : > { %2599 = vst [vmem:[%s3011_s23 + $0x78] sm:$0xff] %v2568_v18   ;;  %v1519_v32 = vadd.f32 %v1518_v53, %v1415_v8  ;;  %v1313_v61 = vadd.f32 %v1312_v35, %v1209_v36  ;;  %v1523_v28 = vpop.f32.mrf.mxu3 }
 0x202   : > { %v1624_v23 = vpop.f32.mrf.mxu0 }
 0x203   : > { %v1623_v45 = vadd.f32 %v1622_v37, %v1519_v32 }
 0x205   : > { %v1669_v44 = vmax.f32 %v1623_v45, 0.0 }
 0x206   : > { %v1416_v40 = vpop.f32.mrf.mxu2 }
 0x207   : > { %v1417_v26 = vadd.f32 %v1416_v40, %v1313_v61 }
 0x208   : > { %v1315_v15 = vpop.f32.mrf.mxu1 }
 0x209   : > { %v1521_v21 = vadd.f32 %v1520_v33, %v1417_v26  ;;  %v1316_v31 = vadd.f32 %v1315_v15, %v1212_v59  ;;  %v1525_v57 = vpop.f32.mrf.mxu3 }
 0x20a   : > { %v1627_v29 = vpop.f32.mrf.mxu0 }
 0x20b   : > { %v1625_v14 = vadd.f32 %v1624_v23, %v1521_v21 }
 0x20d   : > { %v1670_v11 = vmax.f32 %v1625_v14, 0.0 }
 0x20e   : > { %v1419_v43 = vpop.f32.mrf.mxu2 }
 0x20f   : > { %v2573_v47 = vpack.c.bf16 %v1670_v11, %v1669_v44  ;;  %v1420_v55 = vadd.f32 %v1419_v43, %v1316_v31 }
 0x210   : > { %v1317_v46 = vpop.f32.mrf.mxu1 }
 0x211   : > { %2600 = vst [vmem:[%s3011_s23 + $0x80] sm:$0xff] %v2573_v47   ;;  %v1524_v12 = vadd.f32 %v1523_v28, %v1420_v55  ;;  %v1318_v56 = vadd.f32 %v1317_v46, %v1214_v38  ;;  %v1528_v5 = vpop.f32.mrf.mxu3 }
 0x212   : > { %v1629_v62 = vpop.f32.mrf.mxu0 }
 0x213   : > { %v1628_v16 = vadd.f32 %v1627_v29, %v1524_v12 }
 0x215   : > { %v1671_v48 = vmax.f32 %v1628_v16, 0.0 }
 0x216   : > { %v1421_v39 = vpop.f32.mrf.mxu2 }
 0x217   : > { %v1422_v0 = vadd.f32 %v1421_v39, %v1318_v56 }
 0x218   : > { %v1320_v49 = vpop.f32.mrf.mxu1 }
 0x219   : > { %v1526_v60 = vadd.f32 %v1525_v57, %v1422_v0  ;;  %v1321_v6 = vadd.f32 %v1320_v49, %v1217_v1  ;;  %v1530_v25 = vpop.f32.mrf.mxu3 }
 0x21a   : > { %v1632_v2 = vpop.f32.mrf.mxu0 }
 0x21b   : > { %v1630_v9 = vadd.f32 %v1629_v62, %v1526_v60 }
 0x21d   : > { %v1672_v3 = vmax.f32 %v1630_v9, 0.0 }
 0x21e   : > { %v1424_v50 = vpop.f32.mrf.mxu2 }
 0x21f   : > { %v2578_v63 = vpack.c.bf16 %v1672_v3, %v1671_v48  ;;  %v1425_v7 = vadd.f32 %v1424_v50, %v1321_v6 }
 0x220   : > { %v1322_v19 = vpop.f32.mrf.mxu1 }
 0x221   : > { %2601 = vst [vmem:[%s3011_s23 + $0x88] sm:$0xff] %v2578_v63   ;;  %v1529_v58 = vadd.f32 %v1528_v5, %v1425_v7  ;;  %v1323_v27 = vadd.f32 %v1322_v19, %v1219_v41 }
 0x222   : > { %v1634_v37 = vpop.f32.mrf.mxu0 }
 0x223   : > { %v1633_v20 = vadd.f32 %v1632_v2, %v1529_v58 }
 0x225   : > { %v1673_v34 = vmax.f32 %v1633_v20, 0.0 }
 0x226   : > { %v1426_v53 = vpop.f32.mrf.mxu2 }
 0x227   : > { %v1427_v30 = vadd.f32 %v1426_v53, %v1323_v27 }
 0x229   : > { %v1531_v52 = vadd.f32 %v1530_v25, %v1427_v30 }
 0x22b   : > { %v1635_v13 = vadd.f32 %v1634_v37, %v1531_v52 }
 0x22d   : > { %v1674_v24 = vmax.f32 %v1635_v13, 0.0 }
 0x22f   : > { %v2583_v17 = vpack.c.bf16 %v1674_v24, %v1673_v34 }
 0x231   : > { %2602 = vst [vmem:[%s3011_s23 + $0x90] sm:$0xff] %v2583_v17  }
 0x232 PF: > { %s13_s12 = sadd.s32 1, %s2644_s12  }
 0x233   : > { %p10_p4 = scmp.ge.s32.totalorder %s13_s12, 4  }
 0x235   :  { %12 = sbr.rel (!%p10_p4) target bundleno = 1 (0x1), region = 62 }

// kernel: inception_b.5
= control target key start
LH: loop header
LB: loop body
LE: loop exit
PB: predicated region body
PF: predicated region fallthrough
CT: control target
= control target key end

     0   :  { %s2579_s21 = smov 0   ;;  %s3300_s0 = inlined_call_operand.vmem [shape: bf16[128,36], index: 0, kind: input, shape index: {}]   ;;  %s3301_s1 = inlined_call_operand.vmem [shape: bf16[36,384], index: 1, kind: input, shape index: {}]   ;;  %s3302_s2 = inlined_call_operand.vmem [shape: f32[1,384], index: 2, kind: input, shape index: {}]   ;;  %s3303_s3 = inlined_call_operand.vmem [shape: bf16[128,864], index: 3, kind: input, shape index: {}]   ;;  %s3304_s4 = inlined_call_operand.vmem [shape: bf16[864,128], index: 4, kind: input, shape index: {}]   ;;  %s3305_s5 = inlined_call_operand.vmem [shape: f32[1,128], index: 5, kind: input, shape index: {}]   ;;  %s3306_s6 = inlined_call_operand.vmem [shape: f32[128,640], index: 6, kind: output, shape index: {}]  }
   0x1 LB: > { %s1854_s22 = sadd.s32 4294967295, %s2534_s21   ;;  %p1858_p0 = scmp.ge.s32.totalorder %s2534_s21, 1  ;;  %s2534_s21 = sphi %s2579_s21, %s16_s21  }
   0x2   : > { %p225_p1 = scmp.lt.s32.totalorder %s2534_s21, 3 }
   0x4   : > { %p226_p2 = pnand %p1858_p0, %p225_p1 }
   0x5   : > { %s1859_s25 = sshll.u32 (!%p226_p2), %s1854_s22, 3  ;;  %s2536_s27 = smov (!%p226_p2), 124  }
   0x6   : > { %229 = sbr.rel (%p226_p2) target bundleno = 323 (0x143), region = 44  ;;  %p263_p3 = scmp.lt.s32.totalorder (!%p226_p2), %s1859_s25, 15 }
   0x7   : > { %s2537_s15 = smov (!%p226_p2), 120   ;;  %s2538_s13 = smov (!%p226_p2), 116  }
   0x8   : > { %s2539_s10 = smov (!%p226_p2), 112   ;;  %s2540_s26 = smov (!%p226_p2), 108  }
   0xb   : > { %v299_v0 = vld [vmem:[%s3301_s1 + $0x30] sm:$0x33]  ;;  %vm382_vm0 = vcmask 1041408   ;;  %v1895_v3 = vld [vmem:[%s3301_s1 + $0x18] sm:$0xf]  ;;  %s3308_s25 = smov (!%p263_p3, %s1859_s25), 15 }
   0xc   : > { %v351_v1 = vunpack.c.l.b16 %v299_v0  ;;  %v352_v2 = vunpack.c.h.b16 %v299_v0  ;;  %v2259_v4 = vld [vmem:[%s3301_s1 + $0x20] sm:$0xf0]  ;;  %v2258_v5 = vld [vmem:[%s3301_s1 + $0x1c] sm:$0xf]  ;;  %v1897_v8 = vld [vmem:[%s3301_s1 + $0x24] sm:$0xf0] }
   0xd   : > { %v300_v9 = vld [vmem:[%s3301_s1 + $0x38] sm:$0x3]  ;;  %v1896_v13 = vor.u32 %v2259_v4, %v1895_v3  ;;  %v1900_v14 = vor.u32 %v2258_v5, %v1897_v8  ;;  %v1883_v15 = vld [vmem:[%s3301_s1] sm:$0xf]  ;;  %v2256_v16 = vld [vmem:[%s3301_s1 + $0x8] sm:$0xf0] }
   0xe   : > { %v360_v6 = vpack.c.b16 %v351_v1, %v351_v1  ;;  %v361_v7 = vpack.c.b16 %v352_v2, %v352_v2  ;;  %v353_v10 = vunpack.c.l.b16 %v300_v9  ;;  %v2255_v17 = vld [vmem:[%s3301_s1 + $0x4] sm:$0xf]  ;;  %v1885_v18 = vld [vmem:[%s3301_s1 + $0xc] sm:$0xf0]  ;;  %s1860_s20 = sshll.u32 %s3308_s25, 2  ;;  %v1884_v20 = vor.u32 %v2256_v16, %v1883_v15  ;;  %v2296_v23 = vld [vmem:[%s3304_s4 + $0x38] sm:$0xff] }
   0xf   : > { %v1888_v21 = vor.u32 %v2255_v17, %v1885_v18  ;;  %s2625_s24 = scalar_lea.vmem %s3300_s0, %s1860_s20  ;;  %v1903_v26 = vld [vmem:[%s3301_s1 + $0x20] sm:$0xf]  ;;  %v2260_v27 = vld [vmem:[%s3301_s1 + $0x28] sm:$0xf0]  ;;  %vm369_vm1 = vcmask 293888   ;;  %v2312_v31 = vld [vmem:[%s3304_s4 + $0xb8] sm:$0xff] }
  0x10   : > { %v384_v11 = vsel %vm382_vm0, %v360_v6, 0  ;;  %v387_v12 = vsel %vm382_vm0, %v361_v7, 0  ;;  %v362_v19 = vpack.c.b16 %v353_v10, %v353_v10  ;;  %v2632_v24 = vld [vmem:[%s2625_s24] sm:$0xff]   ;;  %v2635_v25 = vld [vmem:[%s2625_s24 + $0x10] sm:$0xff]  ;;  %v2304_v32 = vld [vmem:[%s3304_s4 + $0x78] sm:$0xff]  ;;  %v1904_v35 = vor.u32 %v2260_v27, %v1903_v26  ;;  %s2349_s8 = smul.u32 28, %s3308_s25 }
  0x11   : > { %2343 = vmatpush.bf16.msra.mxu2 %v384_v11  ;;  %2346 = vmatpush.bf16.msra.mxu3 %v387_v12  ;;  %v1335_v28 = vunpack.c.l.bf16 %v2632_v24  ;;  %v1336_v29 = vunpack.c.h.bf16 %v2632_v24  ;;  %v2646_v30 = vld [vmem:[%s2625_s24] sm:$0xff]  ;;  %v2655_v33 = vld [vmem:[%s2625_s24 + $0x10] sm:$0xff]   ;;  %v1891_v38 = vld [vmem:[%s3301_s1 + $0x8] sm:$0xf]  ;;  %vm1111_vm2 = vcmask 785408   ;;  %vm1735_vm3 = vcmask 31744  }
  0x12   : > { %397 = vmatpush.bf16.msra.mxu0 %v384_v11  ;;  %426 = vmatpush.bf16.msra.mxu1 %v387_v12  ;;  %v390_v22 = vsel %vm382_vm0, %v362_v19, 0  ;;  %v2295_v34 = vld [vmem:[%s3304_s4 + $0x30] sm:$0xff]  ;;  %v1339_v36 = vunpack.c.l.bf16 %v2655_v33  ;;  %v1340_v37 = vunpack.c.h.bf16 %v2655_v33  ;;  %v2690_v43 = vld [vmem:[%s2625_s24 + $0x8] sm:$0xff]   ;;  %v2698_v45 = vld [vmem:[%s2625_s24 + $0x18] sm:$0xff]   ;;  %s2802_s20 = scalar_lea.vmem %s3303_s3, %s2349_s8 }
  0x13   : > { %v2257_v39 = vld [vmem:[%s3301_s1 + $0x10] sm:$0xf0]  ;;  %v2676_v40 = vpack.i.bf16 %v1336_v29, %v1335_v28  ;;  %v2294_v46 = vld [vmem:[%s3304_s4 + $0x28] sm:$0xff]  ;;  %v2320_v48 = vld [vmem:[%s3304_s4 + $0xf8] sm:$0xff]  ;;  %v1337_v49 = vunpack.c.l.bf16 %v2690_v43  ;;  %v1338_v50 = vunpack.c.h.bf16 %v2690_v43  ;;  %v1341_v52 = vunpack.c.l.bf16 %v2698_v45 }
  0x14   : > { %v2311_v41 = vld [vmem:[%s3304_s4 + $0xb0] sm:$0xff]  ;;  %v2687_v42 = vpack.i.bf16 %v1340_v37, %v1339_v36  ;;  %v1892_v47 = vor.u32 %v2257_v39, %v1891_v38  ;;  %v2310_v51 = vld [vmem:[%s3304_s4 + $0xa8] sm:$0xff]  ;;  %v1342_v53 = vunpack.c.h.bf16 %v2698_v45  ;;  %v2293_v55 = vld [vmem:[%s3304_s4 + $0x20] sm:$0xff] }
  0x15   : > { %2344 = vmatpush.bf16.msra.mxu2 %v1896_v13  ;;  %2347 = vmatpush.bf16.msra.mxu3 %v1900_v14  ;;  %v2303_v44 = vld [vmem:[%s3304_s4 + $0x70] sm:$0xff]  ;;  %v2302_v54 = vld [vmem:[%s3304_s4 + $0x68] sm:$0xff]  ;;  %v2727_v56 = vpack.i.bf16 %v1338_v50, %v1337_v49  ;;  %v2309_v58 = vld [vmem:[%s3304_s4 + $0xa0] sm:$0xff] }
  0x16   : > { %398 = vmatpush.bf16.msra.mxu0 %v1896_v13  ;;  %427 = vmatpush.bf16.msra.mxu1 %v1900_v14  ;;  %v2319_v57 = vld [vmem:[%s3304_s4 + $0xf0] sm:$0xff]  ;;  %v2739_v59 = vpack.i.bf16 %v1342_v53, %v1341_v52  ;;  %v2301_v60 = vld [vmem:[%s3304_s4 + $0x60] sm:$0xff]  ;;  %v2292_v61 = vld [vmem:[%s3304_s4 + $0x18] sm:$0xff] }
  0x17   : > { %2368 = vrot.lane.b32.xlu0 %v2676_v40, %s2536_s27  ;;  %2378 = vrot.lane.b32.xlu1 %v2687_v42, %s2536_s27  ;;  %v2748_v62 = vld [vmem:[%s2625_s24 + $0x18] sm:$0xff]  ;;  %v2753_v63 = vld [vmem:[%s2625_s24 + $0x8] sm:$0xff] }
  0x18   : > { %v2308_v0 = vld [vmem:[%s3304_s4 + $0x98] sm:$0xff]  ;;  %v2291_v2 = vld [vmem:[%s3304_s4 + $0x10] sm:$0xff]  ;;  %v2318_v3 = vld [vmem:[%s3304_s4 + $0xe8] sm:$0xff]  ;;  %2388 = vrot.lane.b32.xlu2 %v2676_v40, %s2537_s15 }
  0x19   : > { %2345 = vmatpush.bf16.msra.mxu2 %v1884_v20  ;;  %2348 = vmatpush.bf16.msra.mxu3 %v1888_v21  ;;  %v2300_v1 = vld [vmem:[%s3304_s4 + $0x58] sm:$0xff]  ;;  %v2307_v4 = vld [vmem:[%s3304_s4 + $0x90] sm:$0xff]  ;;  %v2290_v6 = vld [vmem:[%s3304_s4 + $0x8] sm:$0xff] }
  0x1a   : > { %399 = vmatpush.bf16.msra.mxu0 %v1884_v20  ;;  %428 = vmatpush.bf16.msra.mxu1 %v1888_v21  ;;  %v2299_v5 = vld [vmem:[%s3304_s4 + $0x50] sm:$0xff]  ;;  %v2317_v7 = vld [vmem:[%s3304_s4 + $0xe0] sm:$0xff]  ;;  %v2306_v8 = vld [vmem:[%s3304_s4 + $0x88] sm:$0xff] }
  0x1b   : > { %v2298_v9 = vld [vmem:[%s3304_s4 + $0x48] sm:$0xff]  ;;  %v2289_v10 = vld [vmem:[%s3304_s4] sm:$0xff]  ;;  %v2328_v12 = vld [vmem:[%s3304_s4 + $0x138] sm:$0xff] }
  0x1c   : > { %1907 = vmatmul.msk.bf16.vlgmr.msra.gmra.mxu2 %vm369_vm1, %v2635_v25  ;;  %1911 = vmatmul.msk.bf16.vlgmr.msra.gmra.mxu3 %vm369_vm1, %v2635_v25  ;;  %v2297_v11 = vld [vmem:[%s3304_s4 + $0x40] sm:$0xff]  ;;  %v2264_v14 = vld [vmem:[%s2802_s20 + $0x18] sm:$0xf0]  ;;  %v2342_v18 = vld [vmem:[%s3304_s4 + $0x1a8] sm:$0xff] }
  0x1d   : > { %455 = vmatpush.bf16.msrb.mxu2 %v390_v22  ;;  %1124 = vmatpush.bf16.msrb.mxu3 %v2296_v23  ;;  %v1919_v13 = vld [vmem:[%s2802_s20] sm:$0xf]  ;;  %v2261_v16 = vld [vmem:[%s2802_s20 + $0x4] sm:$0xf]  ;;  %v1927_v19 = vld [vmem:[%s2802_s20 + $0x8] sm:$0xf] }
  0x1e   : > { %1905 = vmatmul.msk.bf16.vlgmr.msra.gmra.mxu0 %vm369_vm1, %v2646_v30  ;;  %1182 = vmatpush.bf16.msrb.mxu1 %v2312_v31  ;;  %v2305_v15 = vld [vmem:[%s3304_s4 + $0x80] sm:$0xff]  ;;  %v2336_v21 = vld [vmem:[%s3304_s4 + $0x178] sm:$0xff]  ;;  %v1920_v22 = vor.u32 %v2264_v14, %v1919_v13  ;;  %v2327_v26 = vld [vmem:[%s3304_s4 + $0x130] sm:$0xff] }
  0x1f   : > { %1153 = vmatpush.bf16.msrb.mxu0 %v2304_v32  ;;  %1909 = vmatmul.msk.bf16.vlgmr.msra.gmra.mxu1 %vm369_vm1, %v2646_v30  ;;  %v1921_v17 = vld [vmem:[%s2802_s20 + $0x1c] sm:$0xf0]  ;;  %v2265_v20 = vld [vmem:[%s2802_s20 + $0x20] sm:$0xf0]  ;;  %v2335_v31 = vld [vmem:[%s3304_s4 + $0x170] sm:$0xff] }
  0x20   : > { %2373 = vrot.lane.b32.xlu0 %v2727_v56, %s2536_s27  ;;  %2383 = vrot.lane.b32.xlu1 %v2739_v59, %s2536_s27  ;;  %v1924_v23 = vor.u32 %v2261_v16, %v1921_v17  ;;  %v1928_v27 = vor.u32 %v2265_v20, %v1927_v19  ;;  %v2341_v32 = vld [vmem:[%s3304_s4 + $0x1a0] sm:$0xff]  ;;  %v2315_v38 = vld [vmem:[%s3304_s4 + $0xd0] sm:$0xff]  ;;  %s2350_s27 = smul.u32 40, %s3308_s25 }
  0x21   : > { %1125 = vmatpush.bf16.msrb.mxu3 %v2295_v34  ;;  %456 = vmatpush.bf16.msrb.mxu2 %v1904_v35  ;;  %v2316_v34 = vld [vmem:[%s3304_s4 + $0xd8] sm:$0xff]  ;;  %v2326_v35 = vld [vmem:[%s3304_s4 + $0x128] sm:$0xff]  ;;  %v1977_v13 = vld [vmem:[%s2802_s20 + $0x8c] sm:$0xf0] }
  0x22   : > { %1183 = vmatpush.bf16.msrb.mxu1 %v2311_v41  ;;  %v2340_v39 = vld [vmem:[%s3304_s4 + $0x198] sm:$0xff]  ;;  %2393 = vrot.lane.b32.xlu2 %v2727_v56, %s2537_s15  ;;  %v2325_v41 = vld [vmem:[%s3304_s4 + $0x120] sm:$0xff]  ;;  %v2003_v20 = vld [vmem:[%s2802_s20 + $0xa8] sm:$0xf]  ;;  %s3027_s8 = scalar_lea.vmem %s3306_s6, %s2350_s27 }
  0x23   : > { %1154 = vmatpush.bf16.msrb.mxu0 %v2303_v44  ;;  %v2333_v44 = vld [vmem:[%s3304_s4 + $0x160] sm:$0xff]  ;;  %v1983_v14 = vld [vmem:[%s2802_s20 + $0x78] sm:$0xf] }
  0x24   : > { %v2337_v19 = vld [vmem:[%s3304_s4 + $0x180] sm:$0xff] }
  0x25   : > { %1126 = vmatpush.bf16.msrb.mxu3 %v2294_v46  ;;  %457 = vmatpush.bf16.msrb.mxu2 %v1892_v47  ;;  %v2339_v46 = vld [vmem:[%s3304_s4 + $0x190] sm:$0xff]  ;;  %v1947_v47 = vld [vmem:[%s2802_s20 + $0x38] sm:$0xf] }
  0x26   : > { %1184 = vmatpush.bf16.msrb.mxu1 %v2310_v51  ;;  %v2324_v51 = vld [vmem:[%s3304_s4 + $0x118] sm:$0xff] }
  0x27   : > { %1155 = vmatpush.bf16.msrb.mxu0 %v2302_v54  ;;  %v2268_v54 = vld [vmem:[%s2802_s20 + $0x3c] sm:$0xf] }
  0x28   : > { %2398 = vrot.lane.b32.xlu0 %v2687_v42, %s2537_s15  ;;  %2403 = vrot.lane.b32.xlu1 %v2739_v59, %s2537_s15 }
  0x29   : > { %1211 = vmatpush.bf16.msra.mxu2 %v2320_v48  ;;  %1127 = vmatpush.bf16.msrb.mxu3 %v2293_v55  ;;  %v2271_v48 = vld [vmem:[%s2802_s20 + $0x50] sm:$0xf0]  ;;  %v1949_v55 = vld [vmem:[%s2802_s20 + $0x54] sm:$0xf0] }
  0x2a   : > { %1185 = vmatpush.bf16.msrb.mxu1 %v2309_v58  ;;  %v2272_v58 = vld [vmem:[%s2802_s20 + $0x58] sm:$0xf0]  ;;  %2408 = vrot.lane.b32.xlu2 %v2676_v40, %s2538_s13 }
  0x2b   : > { %1156 = vmatpush.bf16.msrb.mxu0 %v2301_v60  ;;  %v2332_v60 = vld [vmem:[%s3304_s4 + $0x158] sm:$0xff] }
  0x2c   : > { %1908 = vmatmul.msk.bf16.gmra.mxu2 %vm369_vm1, %v2748_v62  ;;  %1912 = vmatmul.msk.bf16.gmra.mxu3 %vm369_vm1, %v2748_v62 }
  0x2d   : > { %1212 = vmatpush.bf16.msra.mxu2 %v2319_v57  ;;  %1128 = vmatpush.bf16.msrb.mxu3 %v2292_v61  ;;  %v1955_v57 = vld [vmem:[%s2802_s20 + $0x40] sm:$0xf]  ;;  %v1948_v61 = vor.u32 %v2271_v48, %v1947_v47  ;;  %v2269_v48 = vld [vmem:[%s2802_s20 + $0x44] sm:$0xf] }
  0x2e   : > { %1906 = vmatmul.msk.bf16.gmra.mxu0 %vm369_vm1, %v2753_v63  ;;  %1186 = vmatpush.bf16.msrb.mxu1 %v2308_v0  ;;  %v1952_v0 = vor.u32 %v2268_v54, %v1949_v55  ;;  %v1963_v54 = vld [vmem:[%s2802_s20 + $0x48] sm:$0xf]  ;;  %v2273_v55 = vld [vmem:[%s2802_s20 + $0x60] sm:$0xf0] }
  0x2f   : > { %1157 = vmatpush.bf16.msrb.mxu0 %v2300_v1  ;;  %1910 = vmatmul.msk.bf16.gmra.mxu1 %vm369_vm1, %v2753_v63  ;;  %v2323_v1 = vld [vmem:[%s3304_s4 + $0x110] sm:$0xff] }
  0x30   : > { %2413 = vrot.lane.b32.xlu0 %v2727_v56, %s2538_s13  ;;  %2418 = vrot.lane.b32.xlu1 %v2687_v42, %s2538_s13 }
  0x31   : > { %1129 = vmatpush.bf16.msrb.mxu3 %v2291_v2  ;;  %1213 = vmatpush.bf16.msra.mxu2 %v2318_v3  ;;  %v1956_v2 = vor.u32 %v2272_v58, %v1955_v57  ;;  %v2314_v3 = vld [vmem:[%s3304_s4 + $0xc8] sm:$0xff]  ;;  %v1971_v58 = vld [vmem:[%s2802_s20 + $0x50] sm:$0xf] }
  0x32   : > { %1187 = vmatpush.bf16.msrb.mxu1 %v2307_v4  ;;  %v2322_v4 = vld [vmem:[%s3304_s4 + $0x108] sm:$0xff]  ;;  %2423 = vrot.lane.b32.xlu2 %v2739_v59, %s2538_s13  ;;  %s2541_s13 = smov 104  }
  0x33   : > { %1158 = vmatpush.bf16.msrb.mxu0 %v2299_v5  ;;  %v2331_v5 = vld [vmem:[%s3304_s4 + $0x150] sm:$0xff]  ;;  %v2270_v57 = vld [vmem:[%s2802_s20 + $0x4c] sm:$0xf] }
  0x35   : > { %1130 = vmatpush.bf16.msrb.mxu3 %v2290_v6  ;;  %1214 = vmatpush.bf16.msra.mxu2 %v2317_v7  ;;  %v2313_v6 = vld [vmem:[%s3304_s4 + $0xc0] sm:$0xff]  ;;  %v2330_v7 = vld [vmem:[%s3304_s4 + $0x148] sm:$0xff] }
  0x36   : > { %1188 = vmatpush.bf16.msrb.mxu1 %v2306_v8  ;;  %v2321_v8 = vld [vmem:[%s3304_s4 + $0x100] sm:$0xff] }
  0x37   : > { %1159 = vmatpush.bf16.msrb.mxu0 %v2298_v9  ;;  %v2329_v9 = vld [vmem:[%s3304_s4 + $0x140] sm:$0xff] }
  0x38   : > { %2428 = vrot.lane.b32.xlu0 %v2676_v40, %s2539_s10  ;;  %2433 = vrot.lane.b32.xlu1 %v2727_v56, %s2539_s10 }
  0x39   : > { %1131 = vmatpush.bf16.msrb.mxu3 %v2289_v10  ;;  %1215 = vmatpush.bf16.msra.mxu2 %v2316_v34  ;;  %v1975_v10 = vld [vmem:[%s2802_s20 + $0x70] sm:$0xf]  ;;  %v2262_v34 = vld [vmem:[%s2802_s20 + $0xc] sm:$0xf] }
  0x3a   : > { %1189 = vmatpush.bf16.msrb.mxu1 %v2305_v15  ;;  %v2279_v15 = vld [vmem:[%s2802_s20 + $0x90] sm:$0xf0]  ;;  %2438 = vrot.lane.b32.xlu2 %v2687_v42, %s2539_s10 }
  0x3b   : > { %1160 = vmatpush.bf16.msrb.mxu0 %v2297_v11  ;;  %v2278_v11 = vld [vmem:[%s2802_s20 + $0x88] sm:$0xf0] }
  0x3c   : > { %1132 = vmatmul.bf16.vlgmr.msrb.gmra.mxu3 %v1920_v22  ;;  %1913 = vmatmul.msk.bf16.vlgmr.msrb.gmra.mxu2 %vm369_vm1, %v2646_v30  ;;  %v2334_v30 = vld [vmem:[%s3304_s4 + $0x168] sm:$0xff]  ;;  %v1976_v16 = vor.u32 %v2278_v11, %v1975_v10  ;;  %v1993_v10 = vld [vmem:[%s2802_s20 + $0x9c] sm:$0xf0] }
  0x3d   : > { %1240 = vmatpush.bf16.msra.mxu3 %v2328_v12  ;;  %1216 = vmatpush.bf16.msra.mxu2 %v2315_v38  ;;  %v2275_v12 = vld [vmem:[%s2802_s20 + $0x74] sm:$0xf]  ;;  %v2282_v22 = vld [vmem:[%s2802_s20 + $0xac] sm:$0xf]  ;;  %v1935_v38 = vld [vmem:[%s2802_s20 + $0x10] sm:$0xf] }
  0x3e   : > { %1300 = vmatpush.bf16.msra.mxu1 %v2342_v18  ;;  %1161 = vmatmul.bf16.vlgmr.msrb.gmra.mxu0 %v1924_v23  ;;  %v1980_v17 = vor.u32 %v2275_v12, %v1977_v13  ;;  %v1984_v18 = vor.u32 %v2279_v15, %v1983_v14  ;;  %v2005_v23 = vld [vmem:[%s2802_s20 + $0xc4] sm:$0xf0]  ;;  %v2281_v12 = vld [vmem:[%s2802_s20 + $0xa0] sm:$0xf0] }
  0x3f   : > { %1269 = vmatpush.bf16.msra.mxu0 %v2336_v21  ;;  %1190 = vmatmul.bf16.vlgmr.msrb.gmra.mxu1 %v1928_v27  ;;  %v2285_v21 = vld [vmem:[%s2802_s20 + $0xc0] sm:$0xf0]  ;;  %v1999_v11 = vld [vmem:[%s2802_s20 + $0x88] sm:$0xf] }
  0x40   : > { %2443 = vrot.lane.b32.xlu0 %v2739_v59, %s2539_s10  ;;  %2448 = vrot.lane.b32.xlu1 %v2676_v40, %s2540_s26  ;;  %s2542_s10 = smov 100   ;;  %v2004_v27 = vor.u32 %v2285_v21, %v2003_v20 }
  0x41   : > { %1241 = vmatpush.bf16.msra.mxu3 %v2327_v26  ;;  %1217 = vmatpush.bf16.msra.mxu2 %v2314_v3  ;;  %v2011_v26 = vld [vmem:[%s2802_s20 + $0xb0] sm:$0xf] }
  0x42   : > { %1301 = vmatpush.bf16.msra.mxu1 %v2341_v32  ;;  %2453 = vrot.lane.b32.xlu2 %v2727_v56, %s2540_s26 }
  0x43   : > { %1270 = vmatpush.bf16.msra.mxu0 %v2335_v31  ;;  %v2008_v31 = vor.u32 %v2282_v22, %v2005_v23 }
  0x45   : > { %1242 = vmatpush.bf16.msra.mxu3 %v2326_v35  ;;  %1218 = vmatpush.bf16.msra.mxu2 %v2313_v6  ;;  %v1929_v35 = vld [vmem:[%s2802_s20 + $0x24] sm:$0xf0]  ;;  %v2280_v6 = vld [vmem:[%s2802_s20 + $0x98] sm:$0xf0] }
  0x46   : > { %1302 = vmatpush.bf16.msra.mxu1 %v2340_v39  ;;  %v1937_v39 = vld [vmem:[%s2802_s20 + $0x2c] sm:$0xf0] }
  0x47   : > { %1271 = vmatpush.bf16.msra.mxu0 %v2334_v30  ;;  %v2263_v30 = vld [vmem:[%s2802_s20 + $0x14] sm:$0xf] }
  0x48   : > { %2458 = vrot.lane.b32.xlu0 %v2687_v42, %s2540_s26  ;;  %2463 = vrot.lane.b32.xlu1 %v2739_v59, %s2540_s26  ;;  %s2543_s26 = smov 96  }
  0x49   : > { %1243 = vmatpush.bf16.msra.mxu3 %v2325_v41  ;;  %v2267_v41 = vld [vmem:[%s2802_s20 + $0x30] sm:$0xf0] }
  0x4a   : > { %1303 = vmatpush.bf16.msra.mxu1 %v2339_v46  ;;  %2468 = vrot.lane.b32.xlu2 %v2676_v40, %s2541_s13 }
  0x4b   : > { %1272 = vmatpush.bf16.msra.mxu0 %v2333_v44  ;;  %v1932_v44 = vor.u32 %v2262_v34, %v1929_v35 }
  0x4c   : > { %1137 = vmatmul.bf16.gmra.mxu3 %v1948_v61  ;;  %1914 = vmatmul.msk.bf16.gmra.mxu2 %vm369_vm1, %v2753_v63  ;;  %v2338_v63 = vld [vmem:[%s3304_s4 + $0x188] sm:$0xff] }
  0x4d   : > { %1244 = vmatpush.bf16.msra.mxu3 %v2324_v51  ;;  %v1957_v51 = vld [vmem:[%s2802_s20 + $0x5c] sm:$0xf0] }
  0x4e   : > { %1166 = vmatmul.bf16.gmra.mxu0 %v1952_v0  ;;  %1304 = vmatpush.bf16.msra.mxu1 %v2338_v63  ;;  %v1960_v61 = vor.u32 %v2269_v48, %v1957_v51  ;;  %v1964_v0 = vor.u32 %v2273_v55, %v1963_v54  ;;  %v1991_v63 = vld [vmem:[%s2802_s20 + $0x80] sm:$0xf]  ;;  %v2013_v48 = vld [vmem:[%s2802_s20 + $0xcc] sm:$0xf0]  ;;  %v2019_v54 = vld [vmem:[%s2802_s20 + $0xb8] sm:$0xf] }
  0x4f   : > { %1273 = vmatpush.bf16.msra.mxu0 %v2332_v60  ;;  %1195 = vmatmul.bf16.gmra.mxu1 %v1956_v2  ;;  %v2274_v60 = vld [vmem:[%s2802_s20 + $0x68] sm:$0xf0]  ;;  %v1992_v14 = vor.u32 %v2280_v6, %v1991_v63  ;;  %v2287_v55 = vld [vmem:[%s2802_s20 + $0xd0] sm:$0xf0] }
  0x50   : > { %2473 = vrot.lane.b32.xlu0 %v2727_v56, %s2541_s13  ;;  %2478 = vrot.lane.b32.xlu1 %v2687_v42, %s2541_s13  ;;  %v1972_v2 = vor.u32 %v2274_v60, %v1971_v58  ;;  %v2284_v58 = vld [vmem:[%s2802_s20 + $0xbc] sm:$0xf]  ;;  %v2021_v60 = vld [vmem:[%s2802_s20 + $0xd4] sm:$0xf0]  ;;  %v2020_v6 = vor.u32 %v2287_v55, %v2019_v54 }
  0x51   : > { %1245 = vmatpush.bf16.msra.mxu3 %v2323_v1 }
  0x52   : > { %1305 = vmatpush.bf16.msra.mxu1 %v2337_v19  ;;  %2483 = vrot.lane.b32.xlu2 %v2739_v59, %s2541_s13  ;;  %v2000_v19 = vor.u32 %v2281_v12, %v1999_v11 }
  0x53   : > { %1274 = vmatpush.bf16.msra.mxu0 %v2331_v5  ;;  %v1985_v5 = vld [vmem:[%s2802_s20 + $0x94] sm:$0xf0] }
  0x55   : > { %1246 = vmatpush.bf16.msra.mxu3 %v2322_v4  ;;  %v2276_v4 = vld [vmem:[%s2802_s20 + $0x7c] sm:$0xf] }
  0x56   : > { %v1988_v13 = vor.u32 %v2276_v4, %v1985_v5 }
  0x57   : > { %1275 = vmatpush.bf16.msra.mxu0 %v2330_v7 }
  0x58   : > { %2488 = vrot.lane.b32.xlu0 %v2676_v40, %s2542_s10  ;;  %2493 = vrot.lane.b32.xlu1 %v2727_v56, %s2542_s10 }
  0x59   : > { %1247 = vmatpush.bf16.msra.mxu3 %v2321_v8  ;;  %v3003_v8 = vld [vmem:[%s3302_s2] sm:$0x7] }
  0x5a   : > { %2498 = vrot.lane.b32.xlu2 %v2687_v42, %s2542_s10  ;;  %v3010_v15 = vperm.slane %v3003_v8, 0 }
  0x5b   : > { %1276 = vmatpush.bf16.msra.mxu0 %v2329_v9  ;;  %v2277_v9 = vld [vmem:[%s2802_s20 + $0x84] sm:$0xf] }
  0x5c   : > { %1142 = vmatmul.bf16.gmra.mxu3 %v1976_v16  ;;  %1915 = vmatmul.msk.bf16.gmra.mxu2 %vm369_vm1, %v2635_v25  ;;  %v2286_v25 = vld [vmem:[%s2802_s20 + $0xc8] sm:$0xf0]  ;;  %v1996_v16 = vor.u32 %v2277_v9, %v1993_v10  ;;  %v2024_v9 = vor.u32 %v2284_v58, %v2021_v60 }
  0x5d   : > { %v2012_v32 = vor.u32 %v2286_v25, %v2011_v26 }
  0x5e   : > { %1171 = vmatmul.bf16.gmra.mxu0 %v1980_v17 }
  0x5f   : > { %1200 = vmatmul.bf16.gmra.mxu1 %v1984_v18  ;;  %v3014_v18 = vperm.slane %v3003_v8, 1 }
  0x60   : > { %2503 = vrot.lane.b32.xlu0 %v2739_v59, %s2542_s10  ;;  %2508 = vrot.lane.b32.xlu1 %v2676_v40, %s2543_s26  ;;  %v2266_v40 = vld [vmem:[%s2802_s20 + $0x28] sm:$0xf0] }
  0x61   : > { %v1936_v46 = vor.u32 %v2266_v40, %v1935_v38 }
  0x62   : > { %2513 = vrot.lane.b32.xlu2 %v2727_v56, %s2543_s26 }
  0x68   : > { %2518 = vrot.lane.b32.xlu0 %v2687_v42, %s2543_s26  ;;  %2523 = vrot.lane.b32.xlu1 %v2739_v59, %s2543_s26  ;;  %v1940_v59 = vor.u32 %v2263_v30, %v1937_v39  ;;  %v1965_v42 = vld [vmem:[%s2802_s20 + $0x64] sm:$0xf0] }
  0x69   : > { %v1968_v1 = vor.u32 %v2270_v57, %v1965_v42 }
  0x6c   : > { %1916 = vmatmul.msk.bf16.gmra.mxu2 %vm369_vm1, %v2748_v62  ;;  %1147 = vmatmul.bf16.gmra.mxu3 %v2004_v27  ;;  %v1943_v62 = vld [vmem:[%s2802_s20 + $0x18] sm:$0xf] }
  0x6d   : > { %v1944_v47 = vor.u32 %v2267_v41, %v1943_v62 }
  0x6e   : > { %1176 = vmatmul.bf16.gmra.mxu0 %v2008_v31 }
  0x6f   : > { %1205 = vmatmul.bf16.gmra.mxu1 %v2012_v32 }
  0x72   : > { %v2998_v7 = vpop.permute.xlu2 %2388 }
  0x7c   : > { %1219 = vmatmul.bf16.vlgmr.msra.gmra.mxu2 %v1932_v44  ;;  %1248 = vmatmul.bf16.vlgmr.msra.gmra.mxu3 %v1936_v46  ;;  %v3022_v27 = vpop.permute.xlu2 %2393 }
  0x7e   : > { %1277 = vmatmul.bf16.vlgmr.msra.gmra.mxu0 %v1940_v59 }
  0x7f   : > { %2245 = vmatmul.msk.bf16.vlgmr.msra.gmra.mxu1 %vm1111_vm2, %v1944_v47  ;;  %v2283_v47 = vld [vmem:[%s2802_s20 + $0xb4] sm:$0xf] }
  0x80   : > { %v2016_v63 = vor.u32 %v2283_v47, %v2013_v48 }
  0x84   : > { %v3046_v57 = vpop.permute.xlu2 %2408 }
  0x89   : > { %v2990_v56 = vpop.permute.xlu0 %2368  ;;  %v2992_v3 = vpop.permute.xlu1 %2378 }
  0x8c   : > { %1224 = vmatmul.bf16.gmra.mxu2 %v1960_v61  ;;  %1253 = vmatmul.bf16.gmra.mxu3 %v1964_v0 }
  0x8e   : > { %1282 = vmatmul.bf16.gmra.mxu0 %v1968_v1  ;;  %v2027_v1 = vld [vmem:[%s2802_s20 + $0xc0] sm:$0xf] }
  0x8f   : > { %2246 = vmatmul.msk.bf16.gmra.mxu1 %vm1111_vm2, %v1972_v2  ;;  %v2288_v2 = vld [vmem:[%s2802_s20 + $0xd8] sm:$0xf0] }
  0x92   : > { %v3016_v20 = vpop.permute.xlu0 %2373  ;;  %v3019_v23 = vpop.permute.xlu1 %2383 }
  0x9a   : > { %v3034_v62 = vpop.permute.xlu0 %2398  ;;  %v3037_v46 = vpop.permute.xlu1 %2403 }
  0x9b   : > { %v401_v17 = vpop.f32.mrf.mxu0 }
  0x9c   : > { %v402_v21 = vadd.f32 %v401_v17, %v3010_v15  ;;  %v430_v22 = vpop.f32.mrf.mxu1  ;;  %1229 = vmatmul.bf16.gmra.mxu2 %v1988_v13  ;;  %1258 = vmatmul.bf16.gmra.mxu3 %v1992_v14  ;;  %v2028_v13 = vor.u32 %v2288_v2, %v2027_v1 }
  0x9d   : > { %v431_v26 = vadd.f32 %v430_v22, %v3014_v18 }
  0x9e   : > { %v479_v25 = vmax.f32 %v402_v21, 0.0  ;;  %1287 = vmatmul.bf16.gmra.mxu0 %v1996_v16 }
  0x9f   : > { %v480_v31 = vmax.f32 %v431_v26, 0.0  ;;  %2247 = vmatmul.msk.bf16.gmra.mxu1 %vm1111_vm2, %v2000_v19  ;;  %v411_v32 = vpop.f32.mrf.mxu2  ;;  %v440_v34 = vpop.f32.mrf.mxu3 }
  0xa0   : > { %1744 = vst [vmem:[%s3027_s8] sm:$0xff] %v479_v25  ;;  %v412_v35 = vadd.f32 %v411_v32, %v3010_v15  ;;  %v441_v38 = vadd.f32 %v440_v34, %v3014_v18  ;;  %v3064_v26 = vpop.permute.xlu2 %2423 }
  0xa1   : > { %1745 = vst [vmem:[%s3027_s8 + $0x8] sm:$0xff] %v480_v31 }
  0xa2   : > { %v491_v40 = vmax.f32 %v412_v35, 0.0  ;;  %v492_v30 = vmax.f32 %v441_v38, 0.0  ;;  %v3056_v14 = vpop.permute.xlu0 %2413  ;;  %v3059_v19 = vpop.permute.xlu1 %2418 }
  0xa3   : > { %v403_v39 = vpop.f32.mrf.mxu0 }
  0xa4   : > { %v404_v41 = vadd.f32 %v403_v39, %v3010_v15  ;;  %v432_v44 = vpop.f32.mrf.mxu1  ;;  %1756 = vst [vmem:[%s3027_s8 + $0xa0] sm:$0xff] %v491_v40 }
  0xa5   : > { %v433_v59 = vadd.f32 %v432_v44, %v3014_v18  ;;  %1757 = vst [vmem:[%s3027_s8 + $0xa8] sm:$0xff] %v492_v30 }
  0xa6   : > { %v482_v51 = vmax.f32 %v404_v41, 0.0 }
  0xa7   : > { %v483_v42 = vmax.f32 %v433_v59, 0.0  ;;  %v413_v61 = vpop.f32.mrf.mxu2  ;;  %v442_v0 = vpop.f32.mrf.mxu3 }
  0xa8   : > { %1747 = vst [vmem:[%s3027_s8 + $0x28] sm:$0xff] %v482_v51  ;;  %v414_v4 = vadd.f32 %v413_v61, %v3010_v15  ;;  %v443_v5 = vadd.f32 %v442_v0, %v3014_v18  ;;  %v3079_v51 = vpop.permute.xlu2 %2438 }
  0xa9   : > { %1748 = vst [vmem:[%s3027_s8 + $0x30] sm:$0xff] %v483_v42 }
  0xaa   : > { %v494_v10 = vmax.f32 %v414_v4, 0.0  ;;  %v495_v11 = vmax.f32 %v443_v5, 0.0  ;;  %v3071_v39 = vpop.permute.xlu0 %2428  ;;  %v3074_v59 = vpop.permute.xlu1 %2433 }
  0xab   : > { %v406_v12 = vpop.f32.mrf.mxu0 }
  0xac   : > { %v407_v16 = vadd.f32 %v406_v12, %v3010_v15  ;;  %v435_v17 = vpop.f32.mrf.mxu1  ;;  %1759 = vst [vmem:[%s3027_s8 + $0xc8] sm:$0xff] %v494_v10  ;;  %1234 = vmatmul.bf16.gmra.mxu2 %v2016_v63  ;;  %1263 = vmatmul.bf16.gmra.mxu3 %v2020_v6  ;;  %v3095_v63 = vperm.slane %v3003_v8, 2  ;;  %v2371_v6 = vunpack.i.h.bf16 %v2990_v56  ;;  %v2375_v10 = vunpack.i.l.bf16 %v3016_v20 }
  0xad   : > { %v436_v21 = vadd.f32 %v435_v17, %v3014_v18  ;;  %1760 = vst [vmem:[%s3027_s8 + $0xd0] sm:$0xff] %v495_v11 }
  0xae   : > { %v485_v22 = vmax.f32 %v407_v16, 0.0  ;;  %1292 = vmatmul.bf16.gmra.mxu0 %v2024_v9  ;;  %v2376_v9 = vunpack.i.h.bf16 %v3016_v20  ;;  %v2380_v16 = vunpack.i.l.bf16 %v2992_v3  ;;  %v1376_v17 = vmax.f32 %v1336_v29, %v2371_v6 }
  0xaf   : > { %v486_v25 = vmax.f32 %v436_v21, 0.0  ;;  %2248 = vmatmul.msk.bf16.gmra.mxu1 %vm1111_vm2, %v2028_v13  ;;  %v416_v31 = vpop.f32.mrf.mxu2  ;;  %v445_v32 = vpop.f32.mrf.mxu3  ;;  %v2381_v13 = vunpack.i.h.bf16 %v2992_v3  ;;  %v2391_v21 = vunpack.i.h.bf16 %v2998_v7  ;;  %v2386_v20 = vunpack.i.h.bf16 %v3019_v23 }
  0xb0   : > { %1750 = vst [vmem:[%s3027_s8 + $0x50] sm:$0xff] %v485_v22  ;;  %v417_v34 = vadd.f32 %v416_v31, %v3010_v15  ;;  %v446_v35 = vadd.f32 %v445_v32, %v3014_v18  ;;  %v2390_v22 = vunpack.i.l.bf16 %v2998_v7  ;;  %v1378_v29 = vmax.f32 %v1338_v50, %v2376_v9 }
  0xb1   : > { %1751 = vst [vmem:[%s3027_s8 + $0x58] sm:$0xff] %v486_v25  ;;  %v2385_v25 = vunpack.i.l.bf16 %v3019_v23  ;;  %v1377_v24 = vmax.f32 %v1337_v49, %v2375_v10  ;;  %v2395_v7 = vunpack.i.l.bf16 %v3022_v27  ;;  %v1380_v23 = vmax.f32 %v1340_v37, %v2381_v13 }
  0xb2   : > { %v497_v38 = vmax.f32 %v417_v34, 0.0  ;;  %v498_v40 = vmax.f32 %v446_v35, 0.0  ;;  %v3087_v2 = vpop.permute.xlu0 %2443  ;;  %v3091_v5 = vpop.permute.xlu1 %2448  ;;  %v2400_v50 = vunpack.i.l.bf16 %v3034_v62  ;;  %v1424_v49 = vmax.f32 %v1376_v17, %v2391_v21 }
  0xb3   : > { %v408_v30 = vpop.f32.mrf.mxu0  ;;  %v1381_v33 = vmax.f32 %v1341_v52, %v2385_v25  ;;  %v2430_v52 = vunpack.i.l.bf16 %v3071_v39  ;;  %v2425_v13 = vunpack.i.l.bf16 %v3064_v26  ;;  %v2436_v21 = vunpack.i.h.bf16 %v3074_v59 }
  0xb4   : > { %v409_v41 = vadd.f32 %v408_v30, %v3010_v15  ;;  %v437_v44 = vpop.f32.mrf.mxu1  ;;  %1762 = vst [vmem:[%s3027_s8 + $0xf0] sm:$0xff] %v497_v38  ;;  %v1379_v38 = vmax.f32 %v1339_v36, %v2380_v16  ;;  %v2411_v30 = vunpack.i.h.bf16 %v3046_v57  ;;  %v1425_v36 = vmax.f32 %v1377_v24, %v2395_v7 }
  0xb5   : > { %v438_v47 = vadd.f32 %v437_v44, %v3014_v18  ;;  %1763 = vst [vmem:[%s3027_s8 + $0xf8] sm:$0xff] %v498_v40  ;;  %v2401_v40 = vunpack.i.h.bf16 %v3034_v62  ;;  %v1382_v44 = vmax.f32 %v1342_v53, %v2386_v20  ;;  %v2405_v62 = vunpack.i.l.bf16 %v3037_v46 }
  0xb6   : > { %v488_v48 = vmax.f32 %v409_v41, 0.0  ;;  %v2416_v53 = vunpack.i.h.bf16 %v3056_v14  ;;  %v1472_v45 = vmax.f32 %v1424_v49, %v2411_v30 }
  0xb7   : > { %v489_v54 = vmax.f32 %v438_v47, 0.0  ;;  %v418_v55 = vpop.f32.mrf.mxu2  ;;  %v447_v42 = vpop.f32.mrf.mxu3  ;;  %v2406_v47 = vunpack.i.h.bf16 %v3037_v46  ;;  %v2420_v46 = vunpack.i.l.bf16 %v3059_v19  ;;  %v1429_v10 = vmax.f32 %v1381_v33, %v2405_v62 }
  0xb8   : > { %1753 = vst [vmem:[%s3027_s8 + $0x78] sm:$0xff] %v488_v48  ;;  %v419_v58 = vadd.f32 %v418_v55, %v3010_v15  ;;  %v448_v60 = vadd.f32 %v447_v42, %v3014_v18  ;;  %v2370_v15 = vunpack.i.l.bf16 %v2990_v56  ;;  %v3100_v18 = vpop.permute.xlu2 %2453  ;;  %v1428_v55 = vmax.f32 %v1380_v23, %v2401_v40 }
  0xb9   : > { %1754 = vst [vmem:[%s3027_s8 + $0x80] sm:$0xff] %v489_v54  ;;  %v1427_v42 = vmax.f32 %v1379_v38, %v2400_v50  ;;  %v2441_v38 = vunpack.i.h.bf16 %v3079_v51  ;;  %v2440_v40 = vunpack.i.l.bf16 %v3079_v51 }
  0xba   : > { %v500_v61 = vmax.f32 %v419_v58, 0.0  ;;  %v501_v0 = vmax.f32 %v448_v60, 0.0  ;;  %v1375_v56 = vmax.f32 %v1335_v28, %v2370_v15  ;;  %v3119_v3 = vpop.permute.xlu0 %2458  ;;  %v2396_v28 = vunpack.i.h.bf16 %v3022_v27  ;;  %v3129_v35 = vpop.permute.xlu1 %2463 }
  0xbb   : > { %v3085_v1 = vpop.f32.mrf.mxu0  ;;  %v2410_v27 = vunpack.i.l.bf16 %v3046_v57  ;;  %v2415_v57 = vunpack.i.l.bf16 %v3056_v14  ;;  %v2426_v14 = vunpack.i.h.bf16 %v3064_v26  ;;  %v1475_v25 = vmax.f32 %v1427_v42, %v2420_v46 }
  0xbc   : > { %v3089_v4 = vpop.f32.mrf.mxu1  ;;  %1765 = vst [vmem:[%s3027_s8 + $0x118] sm:$0xff] %v500_v61  ;;  %v1423_v43 = vmax.f32 %v1375_v56, %v2390_v22  ;;  %v1426_v37 = vmax.f32 %v1378_v29, %v2396_v28  ;;  %v2421_v61 = vunpack.i.h.bf16 %v3059_v19  ;;  %v2435_v19 = vunpack.i.l.bf16 %v3074_v59 }
  0xbd   : > { %1766 = vst [vmem:[%s3027_s8 + $0x120] sm:$0xff] %v501_v0  ;;  %v2431_v0 = vunpack.i.h.bf16 %v3071_v39  ;;  %v1473_v17 = vmax.f32 %v1425_v36, %v2415_v57  ;;  %v2450_v22 = vunpack.i.l.bf16 %v3091_v5  ;;  %v2451_v26 = vunpack.i.h.bf16 %v3091_v5 }
  0xbe   : > { %v1471_v60 = vmax.f32 %v1423_v43, %v2410_v27  ;;  %v1474_v39 = vmax.f32 %v1426_v37, %v2416_v53  ;;  %v1477_v28 = vmax.f32 %v1429_v10, %v2425_v13  ;;  %v2446_v59 = vunpack.i.h.bf16 %v3087_v2 }
  0xbf   : > { %v459_v11 = vpop.f32.mrf.mxu2  ;;  %v3104_v12 = vpop.f32.mrf.mxu3  ;;  %v1520_v29 = vmax.f32 %v1472_v45, %v2431_v0  ;;  %v1521_v50 = vmax.f32 %v1473_v17, %v2435_v19  ;;  %v2445_v43 = vunpack.i.l.bf16 %v3087_v2  ;;  %v2456_v5 = vunpack.i.h.bf16 %v3100_v18 }
  0xc0   : > { %v460_v8 = vadd.f32 %v459_v11, %v3095_v63  ;;  %v3140_v41 = vpop.permute.xlu2 %2468  ;;  %v1430_v11 = vmax.f32 %v1382_v44, %v2406_v47  ;;  %v1519_v56 = vmax.f32 %v1471_v60, %v2430_v52  ;;  %v1522_v30 = vmax.f32 %v1474_v39, %v2436_v21 }
  0xc1   : > { %v2455_v44 = vunpack.i.l.bf16 %v3100_v18  ;;  %v1568_v37 = vmax.f32 %v1520_v29, %v2451_v26  ;;  %v2471_v51 = vunpack.i.h.bf16 %v3140_v41  ;;  %v2470_v47 = vunpack.i.l.bf16 %v3140_v41 }
  0xc2   : > { %v481_v31 = vmax.f32 %v460_v8, 0.0  ;;  %v3159_v9 = vpop.permute.xlu0 %2473  ;;  %v3165_v8 = vpop.permute.xlu1 %2478  ;;  %v1478_v24 = vmax.f32 %v1430_v11, %v2426_v14  ;;  %v1567_v27 = vmax.f32 %v1519_v56, %v2450_v22  ;;  %v2461_v42 = vunpack.i.h.bf16 %v3119_v3 }
  0xc3   : > { %v3117_v32 = vpop.f32.mrf.mxu0  ;;  %v2460_v57 = vunpack.i.l.bf16 %v3119_v3  ;;  %v1525_v18 = vmax.f32 %v1477_v28, %v2445_v43  ;;  %v2466_v60 = vunpack.i.h.bf16 %v3129_v35  ;;  %v2465_v45 = vunpack.i.l.bf16 %v3129_v35 }
  0xc4   : > { %v3127_v34 = vpop.f32.mrf.mxu1  ;;  %1746 = vst [vmem:[%s3027_s8 + $0x10] sm:$0xff] %v481_v31  ;;  %v1476_v31 = vmax.f32 %v1428_v55, %v2421_v61  ;;  %v1526_v53 = vmax.f32 %v1478_v24, %v2446_v59  ;;  %v1569_v52 = vmax.f32 %v1521_v50, %v2455_v44  ;;  %v1570_v61 = vmax.f32 %v1522_v30, %v2456_v5 }
  0xc5   : > { %v2476_v41 = vunpack.i.h.bf16 %v3159_v9  ;;  %v2475_v46 = vunpack.i.l.bf16 %v3159_v9  ;;  %v1615_v0 = vmax.f32 %v1567_v27, %v2470_v47  ;;  %v2481_v39 = vunpack.i.h.bf16 %v3165_v8 }
  0xc6   : > { %v1524_v2 = vmax.f32 %v1476_v31, %v2441_v38  ;;  %v2480_v35 = vunpack.i.l.bf16 %v3165_v8  ;;  %v1573_v21 = vmax.f32 %v1525_v18, %v2465_v45  ;;  %v1574_v22 = vmax.f32 %v1526_v53, %v2466_v60 }
  0xc7   : > { %v461_v48 = vpop.f32.mrf.mxu2  ;;  %v3148_v54 = vpop.f32.mrf.mxu3  ;;  %v1618_v31 = vmax.f32 %v1570_v61, %v2476_v41 }
  0xc8   : > { %v462_v58 = vadd.f32 %v461_v48, %v3095_v63  ;;  %v3171_v20 = vpop.permute.xlu2 %2483  ;;  %v1523_v48 = vmax.f32 %v1475_v25, %v2440_v40  ;;  %v1572_v13 = vmax.f32 %v1524_v2, %v2461_v42  ;;  %v1617_v25 = vmax.f32 %v1569_v52, %v2475_v46 }
  0xc9   : > { %v2485_v9 = vunpack.i.l.bf16 %v3171_v20  ;;  %v2486_v40 = vunpack.i.h.bf16 %v3171_v20 }
  0xca   : > { %v484_v6 = vmax.f32 %v462_v58, 0.0  ;;  %v2489_v62 = vpop.permute.xlu0 %2488  ;;  %v2494_v58 = vpop.permute.xlu1 %2493  ;;  %v1571_v3 = vmax.f32 %v1523_v48, %v2460_v57  ;;  %v1620_v43 = vmax.f32 %v1572_v13, %v2481_v39 }
  0xcb   : > { %v3157_v15 = vpop.f32.mrf.mxu0  ;;  %v2491_v10 = vunpack.i.h.bf16 %v2489_v62  ;;  %v2490_v11 = vunpack.i.l.bf16 %v2489_v62  ;;  %v2496_v29 = vunpack.i.h.bf16 %v2494_v58  ;;  %v2495_v26 = vunpack.i.l.bf16 %v2494_v58 }
  0xcc   : > { %v3163_v16 = vpop.f32.mrf.mxu1  ;;  %1749 = vst [vmem:[%s3027_s8 + $0x38] sm:$0xff] %v484_v6  ;;  %v1616_v6 = vmax.f32 %v1568_v37, %v2471_v51  ;;  %v1619_v59 = vmax.f32 %v1571_v3, %v2480_v35  ;;  %v1621_v30 = vmax.f32 %v1573_v21, %v2485_v9  ;;  %v1622_v62 = vmax.f32 %v1574_v22, %v2486_v40 }
  0xcd   : > { %v1666_v37 = vmax.f32 %v1618_v31, %v2496_v29 }
  0xce   : > { %v1664_v38 = vmax.f32 %v1616_v6, %v2491_v10 }
  0xcf   : > { %v464_v7 = vpop.f32.mrf.mxu2  ;;  %v3174_v23 = vpop.f32.mrf.mxu3 }
  0xd0   : > { %v465_v49 = vadd.f32 %v464_v7, %v3095_v63  ;;  %v2499_v14 = vpop.permute.xlu2 %2498  ;;  %v1663_v7 = vmax.f32 %v1615_v0, %v2490_v11 }
  0xd1   : > { %v2500_v27 = vunpack.i.l.bf16 %v2499_v14  ;;  %v2501_v47 = vunpack.i.h.bf16 %v2499_v14 }
  0xd2   : > { %v487_v33 = vmax.f32 %v465_v49, 0.0  ;;  %v2504_v50 = vpop.permute.xlu0 %2503  ;;  %v2509_v49 = vpop.permute.xlu1 %2508 }
  0xd3   : > { %v3183_v36 = vpop.f32.mrf.mxu0  ;;  %v2511_v5 = vunpack.i.h.bf16 %v2509_v49  ;;  %v2510_v44 = vunpack.i.l.bf16 %v2509_v49  ;;  %v2505_v51 = vunpack.i.l.bf16 %v2504_v50  ;;  %v2506_v48 = vunpack.i.h.bf16 %v2504_v50 }
  0xd4   : > { %v3187_v55 = vpop.f32.mrf.mxu1  ;;  %1752 = vst [vmem:[%s3027_s8 + $0x60] sm:$0xff] %v487_v33  ;;  %v1665_v33 = vmax.f32 %v1617_v25, %v2495_v26  ;;  %v1667_v45 = vmax.f32 %v1619_v59, %v2500_v27  ;;  %v1668_v46 = vmax.f32 %v1620_v43, %v2501_v47 }
  0xd5   : > { %v1711_v2 = vmax.f32 %v1663_v7, %v2510_v44  ;;  %v1712_v42 = vmax.f32 %v1664_v38, %v2511_v5  ;;  %v1669_v41 = vmax.f32 %v1621_v30, %v2505_v51  ;;  %v1670_v14 = vmax.f32 %v1622_v62, %v2506_v48 }
  0xd7   : > { %v466_v17 = vpop.f32.mrf.mxu2  ;;  %v3196_v19 = vpop.f32.mrf.mxu3  ;;  %v1719_v52 = vpack.c.bf16 %v1711_v2, %v1711_v2  ;;  %v1720_v61 = vpack.c.bf16 %v1712_v42, %v1712_v42 }
  0xd8   : > { %v467_v56 = vadd.f32 %v466_v17, %v3095_v63  ;;  %v2514_v20 = vpop.permute.xlu2 %2513 }
  0xd9   : > { %v2516_v53 = vunpack.i.h.bf16 %v2514_v20  ;;  %v2515_v18 = vunpack.i.l.bf16 %v2514_v20  ;;  %v1727_v3 = vunpack.c.l.bf16 %v1719_v52  ;;  %v1728_v13 = vunpack.c.l.bf16 %v1720_v61 }
  0xda   : > { %v490_v24 = vmax.f32 %v467_v56, 0.0  ;;  %v2519_v17 = vpop.permute.xlu0 %2518  ;;  %v2524_v21 = vpop.permute.xlu1 %2523 }
  0xdb   : > { %v3202_v28 = vpop.f32.mrf.mxu0  ;;  %v1713_v0 = vmax.f32 %v1665_v33, %v2515_v18  ;;  %v1714_v6 = vmax.f32 %v1666_v37, %v2516_v53  ;;  %v2521_v35 = vunpack.i.h.bf16 %v2519_v17  ;;  %v2520_v56 = vunpack.i.l.bf16 %v2519_v17 }
  0xdc   : > { %v3205_v8 = vpop.f32.mrf.mxu1  ;;  %1755 = vst [vmem:[%s3027_s8 + $0x88] sm:$0xff] %v490_v24  ;;  %v1736_v25 = vsel %vm1735_vm3, %v1727_v3, 0.0  ;;  %v1737_v31 = vsel %vm1735_vm3, %v1728_v13, 0.0  ;;  %v2526_v29 = vunpack.i.h.bf16 %v2524_v21  ;;  %v2525_v26 = vunpack.i.l.bf16 %v2524_v21 }
  0xdd   : > { %v1721_v22 = vpack.c.bf16 %v1713_v0, %v1713_v0  ;;  %v1722_v9 = vpack.c.bf16 %v1714_v6, %v1714_v6  ;;  %1776 = vst [vmem:[%s3027_s8 + $0x20] sm:$0xff] %v1736_v25  ;;  %v1715_v24 = vmax.f32 %v1667_v45, %v2520_v56  ;;  %v1716_v7 = vmax.f32 %v1668_v46, %v2521_v35  ;;  %v3246_v46 = vld [vmem:[%s3305_s5] ss:$0 sm:$0xff] }
  0xde   : > { %1777 = vst [vmem:[%s3027_s8 + $0x48] sm:$0xff] %v1737_v31  ;;  %v1717_v50 = vmax.f32 %v1669_v41, %v2525_v26  ;;  %v1718_v59 = vmax.f32 %v1670_v14, %v2526_v29  ;;  %v1134_v14 = vadd.f32 %v3246_v46, %v3104_v12 }
  0xdf   : > { %v469_v57 = vpop.f32.mrf.mxu2  ;;  %v3208_v58 = vpop.f32.mrf.mxu3  ;;  %v1729_v38 = vunpack.c.l.bf16 %v1721_v22  ;;  %v1730_v40 = vunpack.c.l.bf16 %v1722_v9  ;;  %v1723_v30 = vpack.c.bf16 %v1715_v24, %v1715_v24  ;;  %v1724_v27 = vpack.c.bf16 %v1716_v7, %v1716_v7 }
  0xe0   : > { %v470_v60 = vadd.f32 %v469_v57, %v3095_v63  ;;  %v1725_v37 = vpack.c.bf16 %v1717_v50, %v1717_v50  ;;  %v1726_v51 = vpack.c.bf16 %v1718_v59, %v1718_v59  ;;  %v1163_v35 = vadd.f32 %v3085_v1, %v1134_v14 }
  0xe1   : > { %v1738_v5 = vsel %vm1735_vm3, %v1729_v38, 0.0  ;;  %v1739_v44 = vsel %vm1735_vm3, %v1730_v40, 0.0  ;;  %v1731_v47 = vunpack.c.l.bf16 %v1723_v30  ;;  %v1732_v62 = vunpack.c.l.bf16 %v1724_v27 }
  0xe2   : > { %v493_v10 = vmax.f32 %v470_v60, 0.0  ;;  %1778 = vst [vmem:[%s3027_s8 + $0x70] sm:$0xff] %v1738_v5  ;;  %v1733_v42 = vunpack.c.l.bf16 %v1725_v37  ;;  %v1734_v20 = vunpack.c.l.bf16 %v1726_v51  ;;  %v1136_v9 = vadd.f32 %v3246_v46, %v3148_v54 }
  0xe3   : > { %v3211_v11 = vpop.f32.mrf.mxu0  ;;  %1779 = vst [vmem:[%s3027_s8 + $0x98] sm:$0xff] %v1739_v44  ;;  %v1740_v53 = vsel %vm1735_vm3, %v1731_v47, 0.0  ;;  %v1741_v18 = vsel %vm1735_vm3, %v1732_v62, 0.0  ;;  %v1192_v25 = vadd.f32 %v3089_v4, %v1163_v35  ;;  %v1139_v1 = vadd.f32 %v3246_v46, %v3174_v23 }
  0xe4   : > { %v3213_v39 = vpop.f32.mrf.mxu1  ;;  %1758 = vst [vmem:[%s3027_s8 + $0xb0] sm:$0xff] %v493_v10  ;;  %v1742_v60 = vsel %vm1735_vm3, %v1733_v42, 0.0  ;;  %v1743_v45 = vsel %vm1735_vm3, %v1734_v20, 0.0  ;;  %v1165_v26 = vadd.f32 %v3117_v32, %v1136_v9 }
  0xe5   : > { %1780 = vst [vmem:[%s3027_s8 + $0xc0] sm:$0xff] %v1740_v53  ;;  %v1168_v30 = vadd.f32 %v3157_v15, %v1139_v1 }
  0xe6   : > { %1781 = vst [vmem:[%s3027_s8 + $0xe8] sm:$0xff] %v1741_v18  ;;  %v1194_v50 = vadd.f32 %v3127_v34, %v1165_v26  ;;  %v1144_v18 = vadd.f32 %v3246_v46, %v3208_v58 }
  0xe7   : > { %v471_v43 = vpop.f32.mrf.mxu2  ;;  %v3220_v49 = vpop.f32.mrf.mxu3  ;;  %1782 = vst [vmem:[%s3027_s8 + $0x110] sm:$0xff] %v1742_v60  ;;  %v1197_v23 = vadd.f32 %v3163_v16, %v1168_v30 }
  0xe8   : > { %v472_v33 = vadd.f32 %v471_v43, %v3095_v63  ;;  %1783 = vst [vmem:[%s3027_s8 + $0x138] sm:$0xff] %v1743_v45 }
  0xea   : > { %v496_v48 = vmax.f32 %v472_v33, 0.0  ;;  %v1141_v33 = vadd.f32 %v3246_v46, %v3196_v19 }
  0xeb   : > { %v3227_v2 = vpop.f32.mrf.mxu0 }
  0xec   : > { %v3229_v57 = vpop.f32.mrf.mxu1  ;;  %1761 = vst [vmem:[%s3027_s8 + $0xd8] sm:$0xff] %v496_v48  ;;  %v1170_v48 = vadd.f32 %v3183_v36, %v1141_v33 }
  0xee   : > { %v1199_v19 = vadd.f32 %v3187_v55, %v1170_v48 }
  0xef   : > { %v474_v52 = vpop.f32.mrf.mxu2  ;;  %v3238_v61 = vpop.f32.mrf.mxu3 }
  0xf0   : > { %v475_v41 = vadd.f32 %v474_v52, %v3095_v63 }
  0xf2   : > { %v499_v0 = vmax.f32 %v475_v41, 0.0 }
  0xf3   : > { %v3248_v6 = vpop.f32.mrf.mxu0 }
  0xf4   : > { %v3250_v10 = vpop.f32.mrf.mxu1  ;;  %1764 = vst [vmem:[%s3027_s8 + $0x100] sm:$0xff] %v499_v0  ;;  %v1173_v0 = vadd.f32 %v3202_v28, %v1144_v18 }
  0xf6   : > { %v1202_v58 = vadd.f32 %v3205_v8, %v1173_v0 }
  0xf7   : > { %v476_v3 = vpop.f32.mrf.mxu2  ;;  %v3255_v13 = vpop.f32.mrf.mxu3 }
  0xf8   : > { %v477_v17 = vadd.f32 %v476_v3, %v3095_v63 }
  0xfa   : > { %v502_v56 = vmax.f32 %v477_v17, 0.0  ;;  %v1146_v17 = vadd.f32 %v3246_v46, %v3220_v49 }
  0xfb   : > { %v1278_v21 = vpop.f32.mrf.mxu0 }
  0xfc   : > { %v1307_v22 = vpop.f32.mrf.mxu1  ;;  %1767 = vst [vmem:[%s3027_s8 + $0x128] sm:$0xff] %v502_v56 }
  0xff   : > { %v1220_v31 = vpop.f32.mrf.mxu2  ;;  %v1249_v29 = vpop.f32.mrf.mxu3 }
 0x100   : > { %v1221_v12 = vadd.f32 %v1220_v31, %v1192_v25  ;;  %v1175_v25 = vadd.f32 %v3211_v11, %v1146_v17 }
 0x102   : > { %v1250_v24 = vadd.f32 %v1249_v29, %v1221_v12  ;;  %v1149_v29 = vadd.f32 %v3246_v46, %v3238_v61  ;;  %v1204_v49 = vadd.f32 %v3213_v39, %v1175_v25 }
 0x103   : > { %v1280_v7 = vpop.f32.mrf.mxu0 }
 0x104   : > { %v1309_v63 = vpop.f32.mrf.mxu1  ;;  %v1279_v38 = vadd.f32 %v1278_v21, %v1250_v24  ;;  %v1178_v1 = vadd.f32 %v3227_v2, %v1149_v29 }
 0x106   : > { %v1308_v40 = vadd.f32 %v1307_v22, %v1279_v38  ;;  %v1207_v61 = vadd.f32 %v3229_v57, %v1178_v1 }
 0x107   : > { %v1222_v59 = vpop.f32.mrf.mxu2  ;;  %v1251_v54 = vpop.f32.mrf.mxu3 }
 0x108   : > { %v1327_v43 = vmax.f32 %v1308_v40, 0.0  ;;  %v1223_v4 = vadd.f32 %v1222_v59, %v1194_v50  ;;  %v1151_v50 = vadd.f32 %v3246_v46, %v3255_v13 }
 0x10a   : > { %1768 = vst [vmem:[%s3027_s8 + $0x18] sm:$0xff] %v1327_v43  ;;  %v1252_v27 = vadd.f32 %v1251_v54, %v1223_v4 }
 0x10b   : > { %v1283_v32 = vpop.f32.mrf.mxu0 }
 0x10c   : > { %v1312_v5 = vpop.f32.mrf.mxu1  ;;  %v1281_v44 = vadd.f32 %v1280_v7, %v1252_v27  ;;  %v1180_v27 = vadd.f32 %v3248_v6, %v1151_v50 }
 0x10e   : > { %v1310_v37 = vadd.f32 %v1309_v63, %v1281_v44  ;;  %v1209_v33 = vadd.f32 %v3250_v10, %v1180_v27 }
 0x10f   : > { %v1225_v51 = vpop.f32.mrf.mxu2  ;;  %v1254_v34 = vpop.f32.mrf.mxu3 }
 0x110   : > { %v1328_v47 = vmax.f32 %v1310_v37, 0.0  ;;  %v1226_v62 = vadd.f32 %v1225_v51, %v1197_v23 }
 0x112   : > { %1769 = vst [vmem:[%s3027_s8 + $0x40] sm:$0xff] %v1328_v47  ;;  %v1255_v15 = vadd.f32 %v1254_v34, %v1226_v62 }
 0x113   : > { %v1285_v42 = vpop.f32.mrf.mxu0 }
 0x114   : > { %v1284_v20 = vadd.f32 %v1283_v32, %v1255_v15  ;;  %v1314_v53 = vpop.f32.mrf.mxu1 }
 0x116   : > { %v1313_v60 = vadd.f32 %v1312_v5, %v1284_v20 }
 0x117   : > { %v1227_v45 = vpop.f32.mrf.mxu2  ;;  %v1256_v16 = vpop.f32.mrf.mxu3 }
 0x118   : > { %v1329_v52 = vmax.f32 %v1313_v60, 0.0  ;;  %v1228_v41 = vadd.f32 %v1227_v45, %v1199_v19 }
 0x11a   : > { %1770 = vst [vmem:[%s3027_s8 + $0x68] sm:$0xff] %v1329_v52  ;;  %v1257_v36 = vadd.f32 %v1256_v16, %v1228_v41 }
 0x11b   : > { %v1288_v3 = vpop.f32.mrf.mxu0 }
 0x11c   : > { %v1286_v14 = vadd.f32 %v1285_v42, %v1257_v36  ;;  %v1317_v56 = vpop.f32.mrf.mxu1 }
 0x11e   : > { %v1315_v35 = vadd.f32 %v1314_v53, %v1286_v14 }
 0x11f   : > { %v1230_v21 = vpop.f32.mrf.mxu2  ;;  %v1259_v55 = vpop.f32.mrf.mxu3 }
 0x120   : > { %v1330_v22 = vmax.f32 %v1315_v35, 0.0  ;;  %v1231_v9 = vadd.f32 %v1230_v21, %v1202_v58 }
 0x122   : > { %1771 = vst [vmem:[%s3027_s8 + $0x90] sm:$0xff] %v1330_v22  ;;  %v1260_v28 = vadd.f32 %v1259_v55, %v1231_v9 }
 0x123   : > { %v1290_v26 = vpop.f32.mrf.mxu0 }
 0x124   : > { %v1289_v31 = vadd.f32 %v1288_v3, %v1260_v28  ;;  %v1319_v38 = vpop.f32.mrf.mxu1 }
 0x126   : > { %v1318_v12 = vadd.f32 %v1317_v56, %v1289_v31 }
 0x127   : > { %v1232_v24 = vpop.f32.mrf.mxu2  ;;  %v1261_v7 = vpop.f32.mrf.mxu3 }
 0x128   : > { %v1331_v8 = vmax.f32 %v1318_v12, 0.0  ;;  %v1233_v63 = vadd.f32 %v1232_v24, %v1204_v49 }
 0x12a   : > { %1772 = vst [vmem:[%s3027_s8 + $0xb8] sm:$0xff] %v1331_v8  ;;  %v1262_v11 = vadd.f32 %v1261_v7, %v1233_v63 }
 0x12b   : > { %v1293_v30 = vpop.f32.mrf.mxu0 }
 0x12c   : > { %v1291_v40 = vadd.f32 %v1290_v26, %v1262_v11  ;;  %v1322_v2 = vpop.f32.mrf.mxu1 }
 0x12e   : > { %v1320_v59 = vadd.f32 %v1319_v38, %v1291_v40 }
 0x12f   : > { %v1235_v54 = vpop.f32.mrf.mxu2  ;;  %v1264_v39 = vpop.f32.mrf.mxu3 }
 0x130   : > { %v1332_v43 = vmax.f32 %v1320_v59, 0.0  ;;  %v1236_v4 = vadd.f32 %v1235_v54, %v1207_v61 }
 0x132   : > { %1773 = vst [vmem:[%s3027_s8 + $0xe0] sm:$0xff] %v1332_v43  ;;  %v1265_v32 = vadd.f32 %v1264_v39, %v1236_v4 }
 0x133   : > { %v1295_v51 = vpop.f32.mrf.mxu0 }
 0x134   : > { %v1294_v5 = vadd.f32 %v1293_v30, %v1265_v32  ;;  %v1324_v47 = vpop.f32.mrf.mxu1 }
 0x136   : > { %v1323_v44 = vadd.f32 %v1322_v2, %v1294_v5 }
 0x137   : > { %v1237_v46 = vpop.f32.mrf.mxu2  ;;  %v1266_v57 = vpop.f32.mrf.mxu3 }
 0x138   : > { %v1333_v13 = vmax.f32 %v1323_v44, 0.0  ;;  %v1238_v37 = vadd.f32 %v1237_v46, %v1209_v33 }
 0x13a   : > { %1774 = vst [vmem:[%s3027_s8 + $0x108] sm:$0xff] %v1333_v13  ;;  %v1267_v23 = vadd.f32 %v1266_v57, %v1238_v37 }
 0x13c   : > { %v1296_v34 = vadd.f32 %v1295_v51, %v1267_v23 }
 0x13e   : > { %v1325_v62 = vadd.f32 %v1324_v47, %v1296_v34 }
 0x140   : > { %v1334_v48 = vmax.f32 %v1325_v62, 0.0 }
 0x142   : > { %1775 = vst [vmem:[%s3027_s8 + $0x130] sm:$0xff] %v1334_v48 }
 0x143 PF: > { %s16_s21 = sadd.s32 1, %s2534_s21  }
 0x144   : > { %p13_p4 = scmp.ge.s32.totalorder %s16_s21, 4  }
 0x146   :  { %15 = sbr.rel (!%p13_p4) target bundleno = 1 (0x1), region = 77 }

</bundles_post_ra>
